<compile_context>
chip_gen: v7x
topology: tpu7x:2x2x1
jax: 0.10.0
libtpu: 0.0.40
codegen_flags: <defaults>
</compile_context>

<pallas_src>
import functools

import jax
import jax.numpy as jnp
from jax import lax
from jax.experimental import pallas as pl
from jax.experimental.pallas import tpu as pltpu


def _attention_layer_kernel(
    x_ref, kvalid_ref,
    wq_ref, bq_ref, wkv_ref, bkv_ref, wc_ref, bc_ref,
    g1_ref, beta1_ref,
    w1_ref, b1_ref, w2_ref, b2_ref,
    g2_ref, beta2_ref,
    o_ref,
    k_sc, v_sc,
    *, n_head, tq,
):
    f32 = jnp.float32
    bf16 = jnp.bfloat16

    S = x_ref.shape[1]
    D = x_ref.shape[2]
    dt = D // n_head
    # NOTE: the reference module's custom LayerNorm uses eps=1e-12.
    eps = f32(1e-12)
    scale = f32(1.0 / (dt ** 0.5))

    qb = pl.program_id(1)

    # ---- K/V projection: once per batch row, into persistent VMEM scratch ----
    # (K and V weights fused into one (D, 2D) matmul for a wide MXU N dim.)
    @pl.when(qb == 0)
    def _():
        x_all = x_ref[0].astype(bf16)                                   # (S, D)
        kv = jnp.dot(x_all, wkv_ref[...], preferred_element_type=f32) + bkv_ref[0]
        k_sc[...] = kv[:, :D].astype(bf16)
        v_sc[...] = kv[:, D:].astype(bf16)

    # ---- query block: sliced from the resident full-seq block (no extra DMA) ----
    q_start = pl.multiple_of(qb * tq, tq)
    x_q = x_ref[0, pl.ds(q_start, tq), :]                               # (Tq, D) f32, residual

    # Additive key-padding bias, computed once and broadcast once (not per head).
    valid = kvalid_ref[0]                                               # (1, S) int32
    bias = jnp.where(valid == 0, f32(-10000.0), f32(0.0))               # (1, S)
    bias_b = jnp.broadcast_to(bias, (tq, S))                            # (Tq, S)

    def layer_norm(inp, gamma, beta):
        mean = jnp.mean(inp, axis=-1, keepdims=True)
        xc = inp - mean
        var = jnp.mean(xc * xc, axis=-1, keepdims=True)                 # unbiased=False, no cancellation
        inv = lax.rsqrt(var + eps)
        return gamma * (xc * inv) + beta

    # ---- MultiHeadAttention(q=x, k=x, v=x, mask=src_mask) ----
    q = jnp.dot(x_q.astype(bf16), wq_ref[...], preferred_element_type=f32) + bq_ref[0]
    q_bf = q.astype(bf16)                                               # (Tq, D)
    k_bf = k_sc[...]                                                    # (S, D) bf16
    v_bf = v_sc[...]                                                    # (S, D) bf16

    # Per-head scaled-dot-product attention.  QK^T contracts the last dims
    # directly (no explicit transpose).  Per-head contexts are collected and
    # concatenated so the output projection is a single full-K matmul.
    qk_dims = (((1,), (1,)), ((), ()))
    ctx_parts = []
    for h in range(n_head):                                             # static small loop
        sl = slice(h * dt, (h + 1) * dt)
        s = lax.dot_general(q_bf[:, sl], k_bf[:, sl], qk_dims,
                            preferred_element_type=f32)                 # (Tq, S)
        s = s * scale + bias_b                                          # scale in f32 (reference order)
        s = s - jnp.max(s, axis=-1, keepdims=True)
        e = jnp.exp(s)
        p = (e / jnp.sum(e, axis=-1, keepdims=True)).astype(bf16)       # exact softmax
        ctx_parts.append(
            jnp.dot(p, v_bf[:, sl], preferred_element_type=f32).astype(bf16))
    ctx = jnp.concatenate(ctx_parts, axis=-1)                           # (Tq, D) bf16
    attn = jnp.dot(ctx, wc_ref[...], preferred_element_type=f32) + bc_ref[0]

    # dropout1: identity in eval mode
    h1 = layer_norm(attn + x_q, g1_ref[0], beta1_ref[0])

    # ---- PositionwiseFeedForward (Linear -> ReLU -> Linear) ----
    ff = jnp.dot(h1.astype(bf16), w1_ref[...], preferred_element_type=f32) + b1_ref[0]
    ff = jnp.maximum(ff, f32(0.0))
    # dropout inside FFN: identity in eval mode
    ff = jnp.dot(ff.astype(bf16), w2_ref[...], preferred_element_type=f32) + b2_ref[0]

    # dropout2: identity in eval mode
    out = layer_norm(ff + h1, g2_ref[0], beta2_ref[0])
    o_ref[0] = out.astype(o_ref.dtype)


def attention_layer_forward(x, key_valid, params, n_head, *, tq=None,
                            single_buffer_weights=True):
    """x: (B, S, D) f32.  key_valid: (B, S) int (1=attend, 0=masked)."""
    B, S, D = x.shape
    assert D % n_head == 0
    F = params["w1"].shape[1]          # ffn_hidden (weights stored as (in, out))

    # Query-block tile.  TQ=128 suits v5e (128-wide MXU) and v7x (64 MiB VMEM
    # budget); on v6e (2x256 MXU, 128 MiB VMEM) pass tq=256 for better MXU fill
    # and fewer grid steps.
    if tq is None:
        tq = S if S <= 128 else 128
    assert S % tq == 0
    nq = S // tq

    bf16 = jnp.bfloat16
    wq = params["wq"].astype(bf16)
    wkv = jnp.concatenate([params["wk"], params["wv"]], axis=1).astype(bf16)   # (D, 2D)
    bkv = jnp.concatenate([params["bk"], params["bv"]], axis=1)                # (1, 2D)
    wc = params["wc"].astype(bf16)
    w1 = params["w1"].astype(bf16)
    w2 = params["w2"].astype(bf16)

    kernel = functools.partial(_attention_layer_kernel, n_head=n_head, tq=tq)

    def rep(shape):
        # Grid-invariant (replicated) block: its block index never changes, so
        # there is nothing to pipeline -> single-buffer it to halve VMEM use.
        nd = len(shape)
        imap = lambda b, qb, _nd=nd: (0,) * _nd
        if single_buffer_weights:
            return pl.BlockSpec(shape, imap, pipeline_mode=pl.Buffered(1))
        return pl.BlockSpec(shape, imap)

    in_specs = [
        pl.BlockSpec((1, S, D), lambda b, qb: (b, 0, 0)),     # x: full sequence (resident per b)
        pl.BlockSpec((1, 1, S), lambda b, qb: (b, 0, 0)),     # key validity (O(S) mask)
        rep((D, D)), rep((1, D)),                             # w_q (bf16), b_q
        rep((D, 2 * D)), rep((1, 2 * D)),                     # fused w_kv (bf16), b_kv
        rep((D, D)), rep((1, D)),                             # w_concat (bf16), b_concat
        rep((1, D)), rep((1, D)),                             # norm1 gamma, beta
        rep((D, F)), rep((1, F)),                             # ffn linear1 (bf16), bias
        rep((F, D)), rep((1, D)),                             # ffn linear2 (bf16), bias
        rep((1, D)), rep((1, D)),                             # norm2 gamma, beta
    ]

    return pl.pallas_call(
        kernel,
        out_shape=jax.ShapeDtypeStruct((B, S, D), x.dtype),
        grid_spec=pltpu.PrefetchScalarGridSpec(
            num_scalar_prefetch=0,
            grid=(B, nq),
            in_specs=in_specs,
            out_specs=pl.BlockSpec((1, tq, D), lambda b, qb: (b, qb, 0)),
            scratch_shapes=[pltpu.VMEM((S, D), bf16),          # K scratch (per batch row)
                            pltpu.VMEM((S, D), bf16)],         # V scratch (per batch row)
        ),
        compiler_params=pltpu.CompilerParams(
            # Batch axis parallel (feeds both v7x TensorCores when B >= 2);
            # qb axis "arbitrary" because the K/V scratch carries state across
            # query blocks of the same batch row.
            dimension_semantics=("parallel", "arbitrary"),
            vmem_limit_bytes=48 * 1024 * 1024,
        ),
    )(
        x, key_valid.reshape(B, 1, S).astype(jnp.int32),
        wq, params["bq"], wkv, bkv, wc, params["bc"],
        params["gamma1"], params["beta1"],
        w1, params["b1"], w2, params["b2"],
        params["gamma2"], params["beta2"],
    )


def init_params(key, d_model, ffn_hidden):
    """Deterministic synthetic parameters (nn.Linear-style, stored as (in, out))."""
    ks = jax.random.split(key, 6)
    scale = 0.05

    def w(k, shape):
        return (scale * jax.random.normal(k, shape)).astype(jnp.float32)

    return {
        "wq": w(ks[0], (d_model, d_model)), "bq": jnp.zeros((1, d_model), jnp.float32),
        "wk": w(ks[1], (d_model, d_model)), "bk": jnp.zeros((1, d_model), jnp.float32),
        "wv": w(ks[2], (d_model, d_model)), "bv": jnp.zeros((1, d_model), jnp.float32),
        "wc": w(ks[3], (d_model, d_model)), "bc": jnp.zeros((1, d_model), jnp.float32),
        "gamma1": jnp.ones((1, d_model), jnp.float32),
        "beta1": jnp.zeros((1, d_model), jnp.float32),
        "w1": w(ks[4], (d_model, ffn_hidden)), "b1": jnp.zeros((1, ffn_hidden), jnp.float32),
        "w2": w(ks[5], (ffn_hidden, d_model)), "b2": jnp.zeros((1, d_model), jnp.float32),
        "gamma2": jnp.ones((1, d_model), jnp.float32),
        "beta2": jnp.zeros((1, d_model), jnp.float32),
    }


def _reference_forward(x, key_valid, params, n_head):
    """Pure-JAX f32 reference of the PyTorch module (eval mode)."""
    B, S, D = x.shape
    dt = D // n_head

    def ln(v, g, b):
        mean = v.mean(-1, keepdims=True)
        var = ((v - mean) ** 2).mean(-1, keepdims=True)
        return g * (v - mean) / jnp.sqrt(var + 1e-12) + b

    q = x @ params["wq"] + params["bq"]
    k = x @ params["wk"] + params["bk"]
    v = x @ params["wv"] + params["bv"]

    def split(t):
        return t.reshape(B, S, n_head, dt).transpose(0, 2, 1, 3)

    qh, kh, vh = split(q), split(k), split(v)
    s = jnp.einsum("bhqd,bhkd->bhqk", qh, kh) / (dt ** 0.5)
    bias = jnp.where(key_valid[:, None, None, :] == 0, -10000.0, 0.0)
    p = jax.nn.softmax(s + bias, axis=-1)
    ctx = jnp.einsum("bhqk,bhkd->bhqd", p, vh).transpose(0, 2, 1, 3).reshape(B, S, D)
    attn = ctx @ params["wc"] + params["bc"]
    h1 = ln(attn + x, params["gamma1"], params["beta1"])
    ff = jnp.maximum(h1 @ params["w1"] + params["b1"], 0.0)
    ff = ff @ params["w2"] + params["b2"]
    return ln(ff + h1, params["gamma2"], params["beta2"])


if __name__ == "__main__":
    # Small shapes implied by the module: batch=2, seq=8, d_model=32,
    # ffn_hidden=64, att_n_head=4, drop_prob ignored (eval mode).
    B, S, D, F, H = 2, 8, 32, 64, 4

    key = jax.random.PRNGKey(0)
    kx, kp = jax.random.split(key, 2)

    x = jax.random.normal(kx, (B, S, D), dtype=jnp.float32)
    # Key-padding validity: 1 = attend, 0 = masked (compact (B, S) form).
    key_valid = jnp.array([[1] * S, [1] * (S - 3) + [0] * 3], dtype=jnp.int32)

    params = init_params(kp, D, F)

    try:
        out = attention_layer_forward(x, key_valid, params, n_head=H)
    except Exception:
        # Fallback if this JAX build rejects single-buffered (Buffered(1))
        # grid-invariant inputs; kernel math is identical.
        out = attention_layer_forward(x, key_valid, params, n_head=H,
                                      single_buffer_weights=False)
    out = jax.block_until_ready(out)
    assert out.shape == (B, S, D)
    assert bool(jnp.all(jnp.isfinite(out)))

    ref = _reference_forward(x, key_valid, params, H)
    assert bool(jnp.allclose(out, ref, atol=5e-2, rtol=5e-2))
    print("KERNEL_OK")
</pallas_src>

<mosaic_0001>
module attributes {stable_mosaic.version = 11 : i64} {
  func.func @_attention_layer_kernel(%arg0: i32, %arg1: i32, %arg2: memref<1x8x32xf32, #tpu.memory_space<vmem>>, %arg3: memref<1x1x8xi32, #tpu.memory_space<vmem>>, %arg4: memref<32x32xbf16, #tpu.memory_space<vmem>>, %arg5: memref<1x32xf32, #tpu.memory_space<vmem>>, %arg6: memref<32x64xbf16, #tpu.memory_space<vmem>>, %arg7: memref<1x64xf32, #tpu.memory_space<vmem>>, %arg8: memref<32x32xbf16, #tpu.memory_space<vmem>>, %arg9: memref<1x32xf32, #tpu.memory_space<vmem>>, %arg10: memref<1x32xf32, #tpu.memory_space<vmem>>, %arg11: memref<1x32xf32, #tpu.memory_space<vmem>>, %arg12: memref<32x64xbf16, #tpu.memory_space<vmem>>, %arg13: memref<1x64xf32, #tpu.memory_space<vmem>>, %arg14: memref<64x32xbf16, #tpu.memory_space<vmem>>, %arg15: memref<1x32xf32, #tpu.memory_space<vmem>>, %arg16: memref<1x32xf32, #tpu.memory_space<vmem>>, %arg17: memref<1x32xf32, #tpu.memory_space<vmem>>, %arg18: memref<1x8x32xf32, #tpu.memory_space<vmem>>, %arg19: memref<8x32xbf16, #tpu.memory_space<vmem>>, %arg20: memref<8x32xbf16, #tpu.memory_space<vmem>>) attributes {dimension_semantics = [#tpu.dimension_semantics<parallel>, #tpu.dimension_semantics<arbitrary>], iteration_bounds = array<i64: 2, 1>, scalar_prefetch = 0 : i64, scratch_operands = 2 : i64, tpu.core_type = #tpu.core_type<tc>, window_params = [{transform_indices = @transform_0, window_bounds = array<i64: 1, 8, 32>}, {transform_indices = @transform_1, window_bounds = array<i64: 1, 1, 8>}, {pipeline_mode = #tpu.pipeline_mode<synchronous>, transform_indices = @transform_2, window_bounds = array<i64: 32, 32>}, {pipeline_mode = #tpu.pipeline_mode<synchronous>, transform_indices = @transform_3, window_bounds = array<i64: 1, 32>}, {pipeline_mode = #tpu.pipeline_mode<synchronous>, transform_indices = @transform_4, window_bounds = array<i64: 32, 64>}, {pipeline_mode = #tpu.pipeline_mode<synchronous>, transform_indices = @transform_5, window_bounds = array<i64: 1, 64>}, {pipeline_mode = #tpu.pipeline_mode<synchronous>, transform_indices = @transform_6, window_bounds = array<i64: 32, 32>}, {pipeline_mode = #tpu.pipeline_mode<synchronous>, transform_indices = @transform_7, window_bounds = array<i64: 1, 32>}, {pipeline_mode = #tpu.pipeline_mode<synchronous>, transform_indices = @transform_8, window_bounds = array<i64: 1, 32>}, {pipeline_mode = #tpu.pipeline_mode<synchronous>, transform_indices = @transform_9, window_bounds = array<i64: 1, 32>}, {pipeline_mode = #tpu.pipeline_mode<synchronous>, transform_indices = @transform_10, window_bounds = array<i64: 32, 64>}, {pipeline_mode = #tpu.pipeline_mode<synchronous>, transform_indices = @transform_11, window_bounds = array<i64: 1, 64>}, {pipeline_mode = #tpu.pipeline_mode<synchronous>, transform_indices = @transform_12, window_bounds = array<i64: 64, 32>}, {pipeline_mode = #tpu.pipeline_mode<synchronous>, transform_indices = @transform_13, window_bounds = array<i64: 1, 32>}, {pipeline_mode = #tpu.pipeline_mode<synchronous>, transform_indices = @transform_14, window_bounds = array<i64: 1, 32>}, {pipeline_mode = #tpu.pipeline_mode<synchronous>, transform_indices = @transform_15, window_bounds = array<i64: 1, 32>}, {transform_indices = @transform_16, window_bounds = array<i64: 1, 8, 32>}]} {
    %c0_i32 = arith.constant 0 : i32
    %0 = arith.cmpi eq, %arg1, %c0_i32 : i32
    %1 = arith.extui %0 : i1 to i32
    %c0_i32_0 = arith.constant 0 : i32
    %2 = arith.cmpi ne, %1, %c0_i32_0 : i32
    scf.if %2 {
      %c0_73 = arith.constant 0 : index
      %c0_74 = arith.constant 0 : index
      %c0_75 = arith.constant 0 : index
      %187 = vector.load %arg2[%c0_73, %c0_74, %c0_75] : memref<1x8x32xf32, #tpu.memory_space<vmem>>, vector<1x8x32xf32>
      %188 = vector.shape_cast %187 : vector<1x8x32xf32> to vector<8x32xf32>
      %189 = arith.truncf %188 : vector<8x32xf32> to vector<8x32xbf16>
      %c0_76 = arith.constant 0 : index
      %c0_77 = arith.constant 0 : index
      %190 = vector.load %arg6[%c0_76, %c0_77] : memref<32x64xbf16, #tpu.memory_space<vmem>>, vector<32x64xbf16>
      %cst_78 = arith.constant dense<0.000000e+00> : vector<8x64xf32>
      %191 = tpu.matmul %189, %190, %cst_78 {dimension_numbers = #tpu.dot_dimension_numbers<[1], [0], [0], [1], [0, 0, 1, 1], [], []>} : vector<8x32xbf16>, vector<32x64xbf16>, vector<8x64xf32> -> vector<8x64xf32>
      %c0_79 = arith.constant 0 : index
      %c0_80 = arith.constant 0 : index
      %192 = vector.load %arg7[%c0_79, %c0_80] : memref<1x64xf32, #tpu.memory_space<vmem>>, vector<1x64xf32>
      %193 = vector.shape_cast %192 : vector<1x64xf32> to vector<64xf32>
      %194 = vector.shape_cast %193 : vector<64xf32> to vector<1x64xf32>
      %195 = vector.broadcast %194 : vector<1x64xf32> to vector<8x64xf32>
      %196 = arith.addf %191, %195 : vector<8x64xf32>
      %197 = vector.extract_strided_slice %196 {offsets = [0, 0], sizes = [8, 32], strides = [1, 1]} : vector<8x64xf32> to vector<8x32xf32>
      %198 = arith.truncf %197 : vector<8x32xf32> to vector<8x32xbf16>
      %c0_81 = arith.constant 0 : index
      %c0_82 = arith.constant 0 : index
      %199 = vector.load %arg19[%c0_81, %c0_82] : memref<8x32xbf16, #tpu.memory_space<vmem>>, vector<8x32xbf16>
      tpu.vector_store %arg19[%c0_81, %c0_82], %198 {strides = array<i32>} : memref<8x32xbf16, #tpu.memory_space<vmem>>, vector<8x32xbf16>,
      %200 = vector.extract_strided_slice %196 {offsets = [0, 32], sizes = [8, 32], strides = [1, 1]} : vector<8x64xf32> to vector<8x32xf32>
      %201 = arith.truncf %200 : vector<8x32xf32> to vector<8x32xbf16>
      %c0_83 = arith.constant 0 : index
      %c0_84 = arith.constant 0 : index
      %202 = vector.load %arg20[%c0_83, %c0_84] : memref<8x32xbf16, #tpu.memory_space<vmem>>, vector<8x32xbf16>
      tpu.vector_store %arg20[%c0_83, %c0_84], %201 {strides = array<i32>} : memref<8x32xbf16, #tpu.memory_space<vmem>>, vector<8x32xbf16>,
    } else {
    }
    %c8_i32 = arith.constant 8 : i32
    %3 = arith.muli %arg1, %c8_i32 : i32
    %4 = tpu.assume_multiple %3, 8 : i32
    %c0 = arith.constant 0 : index
    %5 = arith.index_cast %4 : i32 to index
    %c0_1 = arith.constant 0 : index
    %6 = vector.load %arg2[%c0, %5, %c0_1] : memref<1x8x32xf32, #tpu.memory_space<vmem>>, vector<1x8x32xf32>
    %7 = vector.shape_cast %6 : vector<1x8x32xf32> to vector<8x32xf32>
    %c0_2 = arith.constant 0 : index
    %c0_3 = arith.constant 0 : index
    %c0_4 = arith.constant 0 : index
    %8 = vector.load %arg3[%c0_2, %c0_3, %c0_4] : memref<1x1x8xi32, #tpu.memory_space<vmem>>, vector<1x1x8xi32>
    %9 = vector.shape_cast %8 : vector<1x1x8xi32> to vector<1x8xi32>
    %c0_i32_5 = arith.constant 0 : i32
    %10 = vector.broadcast %c0_i32_5 : i32 to vector<1x8xi32>
    %11 = arith.cmpi eq, %9, %10 : vector<1x8xi32>
    %cst = arith.constant -1.000000e+04 : f32
    %cst_6 = arith.constant 0.000000e+00 : f32
    %12 = vector.broadcast %cst : f32 to vector<1x8xf32>
    %13 = vector.broadcast %cst_6 : f32 to vector<1x8xf32>
    %14 = arith.select %11, %12, %13 : vector<1x8xi1>, vector<1x8xf32>
    %15 = vector.shape_cast %14 : vector<1x8xf32> to vector<1x8xf32>
    %16 = vector.broadcast %15 : vector<1x8xf32> to vector<8x8xf32>
    %17 = arith.truncf %7 : vector<8x32xf32> to vector<8x32xbf16>
    %c0_7 = arith.constant 0 : index
    %c0_8 = arith.constant 0 : index
    %18 = vector.load %arg4[%c0_7, %c0_8] : memref<32x32xbf16, #tpu.memory_space<vmem>>, vector<32x32xbf16>
    %cst_9 = arith.constant dense<0.000000e+00> : vector<8x32xf32>
    %19 = tpu.matmul %17, %18, %cst_9 {dimension_numbers = #tpu.dot_dimension_numbers<[1], [0], [0], [1], [0, 0, 1, 1], [], []>} : vector<8x32xbf16>, vector<32x32xbf16>, vector<8x32xf32> -> vector<8x32xf32>
    %c0_10 = arith.constant 0 : index
    %c0_11 = arith.constant 0 : index
    %20 = vector.load %arg5[%c0_10, %c0_11] : memref<1x32xf32, #tpu.memory_space<vmem>>, vector<1x32xf32>
    %21 = vector.shape_cast %20 : vector<1x32xf32> to vector<32xf32>
    %22 = vector.shape_cast %21 : vector<32xf32> to vector<1x32xf32>
    %23 = vector.broadcast %22 : vector<1x32xf32> to vector<8x32xf32>
    %24 = arith.addf %19, %23 : vector<8x32xf32>
    %25 = arith.truncf %24 : vector<8x32xf32> to vector<8x32xbf16>
    %c0_12 = arith.constant 0 : index
    %c0_13 = arith.constant 0 : index
    %26 = vector.load %arg19[%c0_12, %c0_13] : memref<8x32xbf16, #tpu.memory_space<vmem>>, vector<8x32xbf16>
    %c0_14 = arith.constant 0 : index
    %c0_15 = arith.constant 0 : index
    %27 = vector.load %arg20[%c0_14, %c0_15] : memref<8x32xbf16, #tpu.memory_space<vmem>>, vector<8x32xbf16>
    %28 = vector.extract_strided_slice %25 {offsets = [0, 0], sizes = [8, 8], strides = [1, 1]} : vector<8x32xbf16> to vector<8x8xbf16>
    %29 = vector.extract_strided_slice %26 {offsets = [0, 0], sizes = [8, 8], strides = [1, 1]} : vector<8x32xbf16> to vector<8x8xbf16>
    %cst_16 = arith.constant dense<0.000000e+00> : vector<8x8xf32>
    %30 = tpu.matmul %28, %29, %cst_16 {dimension_numbers = #tpu.dot_dimension_numbers<[1], [1], [0], [0], [0, 0, 1, 0], [], []>} : vector<8x8xbf16>, vector<8x8xbf16>, vector<8x8xf32> -> vector<8x8xf32>
    %cst_17 = arith.constant 0.353553385 : f32
    %31 = vector.broadcast %cst_17 : f32 to vector<8x8xf32>
    %32 = arith.mulf %30, %31 : vector<8x8xf32>
    %33 = arith.addf %32, %16 : vector<8x8xf32>
    %cst_18 = arith.constant dense<0xFF800000> : vector<8xf32>
    %34 = vector.multi_reduction <maximumf>, %33, %cst_18 [1] : vector<8x8xf32> to vector<8xf32>
    %35 = vector.shape_cast %34 : vector<8xf32> to vector<8x1xf32>
    %36 = vector.broadcast %35 : vector<8x1xf32> to vector<8x8xf32>
    %37 = arith.subf %33, %36 : vector<8x8xf32>
    %38 = math.exp %37 : vector<8x8xf32>
    %cst_19 = arith.constant dense<0.000000e+00> : vector<8xf32>
    %39 = vector.multi_reduction <add>, %38, %cst_19 [1] : vector<8x8xf32> to vector<8xf32>
    %40 = vector.shape_cast %39 : vector<8xf32> to vector<8x1xf32>
    %41 = vector.broadcast %40 : vector<8x1xf32> to vector<8x8xf32>
    %42 = arith.divf %38, %41 : vector<8x8xf32>
    %43 = arith.truncf %42 : vector<8x8xf32> to vector<8x8xbf16>
    %44 = vector.extract_strided_slice %27 {offsets = [0, 0], sizes = [8, 8], strides = [1, 1]} : vector<8x32xbf16> to vector<8x8xbf16>
    %cst_20 = arith.constant dense<0.000000e+00> : vector<8x8xf32>
    %45 = tpu.matmul %43, %44, %cst_20 {dimension_numbers = #tpu.dot_dimension_numbers<[1], [0], [0], [1], [0, 0, 1, 1], [], []>} : vector<8x8xbf16>, vector<8x8xbf16>, vector<8x8xf32> -> vector<8x8xf32>
    %46 = arith.truncf %45 : vector<8x8xf32> to vector<8x8xbf16>
    %47 = vector.extract_strided_slice %25 {offsets = [0, 8], sizes = [8, 8], strides = [1, 1]} : vector<8x32xbf16> to vector<8x8xbf16>
    %48 = vector.extract_strided_slice %26 {offsets = [0, 8], sizes = [8, 8], strides = [1, 1]} : vector<8x32xbf16> to vector<8x8xbf16>
    %cst_21 = arith.constant dense<0.000000e+00> : vector<8x8xf32>
    %49 = tpu.matmul %47, %48, %cst_21 {dimension_numbers = #tpu.dot_dimension_numbers<[1], [1], [0], [0], [0, 0, 1, 0], [], []>} : vector<8x8xbf16>, vector<8x8xbf16>, vector<8x8xf32> -> vector<8x8xf32>
    %cst_22 = arith.constant 0.353553385 : f32
    %50 = vector.broadcast %cst_22 : f32 to vector<8x8xf32>
    %51 = arith.mulf %49, %50 : vector<8x8xf32>
    %52 = arith.addf %51, %16 : vector<8x8xf32>
    %cst_23 = arith.constant dense<0xFF800000> : vector<8xf32>
    %53 = vector.multi_reduction <maximumf>, %52, %cst_23 [1] : vector<8x8xf32> to vector<8xf32>
    %54 = vector.shape_cast %53 : vector<8xf32> to vector<8x1xf32>
    %55 = vector.broadcast %54 : vector<8x1xf32> to vector<8x8xf32>
    %56 = arith.subf %52, %55 : vector<8x8xf32>
    %57 = math.exp %56 : vector<8x8xf32>
    %cst_24 = arith.constant dense<0.000000e+00> : vector<8xf32>
    %58 = vector.multi_reduction <add>, %57, %cst_24 [1] : vector<8x8xf32> to vector<8xf32>
    %59 = vector.shape_cast %58 : vector<8xf32> to vector<8x1xf32>
    %60 = vector.broadcast %59 : vector<8x1xf32> to vector<8x8xf32>
    %61 = arith.divf %57, %60 : vector<8x8xf32>
    %62 = arith.truncf %61 : vector<8x8xf32> to vector<8x8xbf16>
    %63 = vector.extract_strided_slice %27 {offsets = [0, 8], sizes = [8, 8], strides = [1, 1]} : vector<8x32xbf16> to vector<8x8xbf16>
    %cst_25 = arith.constant dense<0.000000e+00> : vector<8x8xf32>
    %64 = tpu.matmul %62, %63, %cst_25 {dimension_numbers = #tpu.dot_dimension_numbers<[1], [0], [0], [1], [0, 0, 1, 1], [], []>} : vector<8x8xbf16>, vector<8x8xbf16>, vector<8x8xf32> -> vector<8x8xf32>
    %65 = arith.truncf %64 : vector<8x8xf32> to vector<8x8xbf16>
    %66 = vector.extract_strided_slice %25 {offsets = [0, 16], sizes = [8, 8], strides = [1, 1]} : vector<8x32xbf16> to vector<8x8xbf16>
    %67 = vector.extract_strided_slice %26 {offsets = [0, 16], sizes = [8, 8], strides = [1, 1]} : vector<8x32xbf16> to vector<8x8xbf16>
    %cst_26 = arith.constant dense<0.000000e+00> : vector<8x8xf32>
    %68 = tpu.matmul %66, %67, %cst_26 {dimension_numbers = #tpu.dot_dimension_numbers<[1], [1], [0], [0], [0, 0, 1, 0], [], []>} : vector<8x8xbf16>, vector<8x8xbf16>, vector<8x8xf32> -> vector<8x8xf32>
    %cst_27 = arith.constant 0.353553385 : f32
    %69 = vector.broadcast %cst_27 : f32 to vector<8x8xf32>
    %70 = arith.mulf %68, %69 : vector<8x8xf32>
    %71 = arith.addf %70, %16 : vector<8x8xf32>
    %cst_28 = arith.constant dense<0xFF800000> : vector<8xf32>
    %72 = vector.multi_reduction <maximumf>, %71, %cst_28 [1] : vector<8x8xf32> to vector<8xf32>
    %73 = vector.shape_cast %72 : vector<8xf32> to vector<8x1xf32>
    %74 = vector.broadcast %73 : vector<8x1xf32> to vector<8x8xf32>
    %75 = arith.subf %71, %74 : vector<8x8xf32>
    %76 = math.exp %75 : vector<8x8xf32>
    %cst_29 = arith.constant dense<0.000000e+00> : vector<8xf32>
    %77 = vector.multi_reduction <add>, %76, %cst_29 [1] : vector<8x8xf32> to vector<8xf32>
    %78 = vector.shape_cast %77 : vector<8xf32> to vector<8x1xf32>
    %79 = vector.broadcast %78 : vector<8x1xf32> to vector<8x8xf32>
    %80 = arith.divf %76, %79 : vector<8x8xf32>
    %81 = arith.truncf %80 : vector<8x8xf32> to vector<8x8xbf16>
    %82 = vector.extract_strided_slice %27 {offsets = [0, 16], sizes = [8, 8], strides = [1, 1]} : vector<8x32xbf16> to vector<8x8xbf16>
    %cst_30 = arith.constant dense<0.000000e+00> : vector<8x8xf32>
    %83 = tpu.matmul %81, %82, %cst_30 {dimension_numbers = #tpu.dot_dimension_numbers<[1], [0], [0], [1], [0, 0, 1, 1], [], []>} : vector<8x8xbf16>, vector<8x8xbf16>, vector<8x8xf32> -> vector<8x8xf32>
    %84 = arith.truncf %83 : vector<8x8xf32> to vector<8x8xbf16>
    %85 = vector.extract_strided_slice %25 {offsets = [0, 24], sizes = [8, 8], strides = [1, 1]} : vector<8x32xbf16> to vector<8x8xbf16>
    %86 = vector.extract_strided_slice %26 {offsets = [0, 24], sizes = [8, 8], strides = [1, 1]} : vector<8x32xbf16> to vector<8x8xbf16>
    %cst_31 = arith.constant dense<0.000000e+00> : vector<8x8xf32>
    %87 = tpu.matmul %85, %86, %cst_31 {dimension_numbers = #tpu.dot_dimension_numbers<[1], [1], [0], [0], [0, 0, 1, 0], [], []>} : vector<8x8xbf16>, vector<8x8xbf16>, vector<8x8xf32> -> vector<8x8xf32>
    %cst_32 = arith.constant 0.353553385 : f32
    %88 = vector.broadcast %cst_32 : f32 to vector<8x8xf32>
    %89 = arith.mulf %87, %88 : vector<8x8xf32>
    %90 = arith.addf %89, %16 : vector<8x8xf32>
    %cst_33 = arith.constant dense<0xFF800000> : vector<8xf32>
    %91 = vector.multi_reduction <maximumf>, %90, %cst_33 [1] : vector<8x8xf32> to vector<8xf32>
    %92 = vector.shape_cast %91 : vector<8xf32> to vector<8x1xf32>
    %93 = vector.broadcast %92 : vector<8x1xf32> to vector<8x8xf32>
    %94 = arith.subf %90, %93 : vector<8x8xf32>
    %95 = math.exp %94 : vector<8x8xf32>
    %cst_34 = arith.constant dense<0.000000e+00> : vector<8xf32>
    %96 = vector.multi_reduction <add>, %95, %cst_34 [1] : vector<8x8xf32> to vector<8xf32>
    %97 = vector.shape_cast %96 : vector<8xf32> to vector<8x1xf32>
    %98 = vector.broadcast %97 : vector<8x1xf32> to vector<8x8xf32>
    %99 = arith.divf %95, %98 : vector<8x8xf32>
    %100 = arith.truncf %99 : vector<8x8xf32> to vector<8x8xbf16>
    %101 = vector.extract_strided_slice %27 {offsets = [0, 24], sizes = [8, 8], strides = [1, 1]} : vector<8x32xbf16> to vector<8x8xbf16>
    %cst_35 = arith.constant dense<0.000000e+00> : vector<8x8xf32>
    %102 = tpu.matmul %100, %101, %cst_35 {dimension_numbers = #tpu.dot_dimension_numbers<[1], [0], [0], [1], [0, 0, 1, 1], [], []>} : vector<8x8xbf16>, vector<8x8xbf16>, vector<8x8xf32> -> vector<8x8xf32>
    %103 = arith.truncf %102 : vector<8x8xf32> to vector<8x8xbf16>
    %104 = tpu.concatenate %46, %65, %84, %103 in 1 : vector<8x8xbf16>, vector<8x8xbf16>, vector<8x8xbf16>, vector<8x8xbf16> -> vector<8x32xbf16>
    %c0_36 = arith.constant 0 : index
    %c0_37 = arith.constant 0 : index
    %105 = vector.load %arg8[%c0_36, %c0_37] : memref<32x32xbf16, #tpu.memory_space<vmem>>, vector<32x32xbf16>
    %cst_38 = arith.constant dense<0.000000e+00> : vector<8x32xf32>
    %106 = tpu.matmul %104, %105, %cst_38 {dimension_numbers = #tpu.dot_dimension_numbers<[1], [0], [0], [1], [0, 0, 1, 1], [], []>} : vector<8x32xbf16>, vector<32x32xbf16>, vector<8x32xf32> -> vector<8x32xf32>
    %c0_39 = arith.constant 0 : index
    %c0_40 = arith.constant 0 : index
    %107 = vector.load %arg9[%c0_39, %c0_40] : memref<1x32xf32, #tpu.memory_space<vmem>>, vector<1x32xf32>
    %108 = vector.shape_cast %107 : vector<1x32xf32> to vector<32xf32>
    %109 = vector.shape_cast %108 : vector<32xf32> to vector<1x32xf32>
    %110 = vector.broadcast %109 : vector<1x32xf32> to vector<8x32xf32>
    %111 = arith.addf %106, %110 : vector<8x32xf32>
    %112 = arith.addf %111, %7 : vector<8x32xf32>
    %c0_41 = arith.constant 0 : index
    %c0_42 = arith.constant 0 : index
    %113 = vector.load %arg10[%c0_41, %c0_42] : memref<1x32xf32, #tpu.memory_space<vmem>>, vector<1x32xf32>
    %114 = vector.shape_cast %113 : vector<1x32xf32> to vector<32xf32>
    %c0_43 = arith.constant 0 : index
    %c0_44 = arith.constant 0 : index
    %115 = vector.load %arg11[%c0_43, %c0_44] : memref<1x32xf32, #tpu.memory_space<vmem>>, vector<1x32xf32>
    %116 = vector.shape_cast %115 : vector<1x32xf32> to vector<32xf32>
    %cst_45 = arith.constant dense<0.000000e+00> : vector<8xf32>
    %117 = vector.multi_reduction <add>, %112, %cst_45 [1] : vector<8x32xf32> to vector<8xf32>
    %118 = vector.shape_cast %117 : vector<8xf32> to vector<8x1xf32>
    %cst_46 = arith.constant 3.200000e+01 : f32
    %119 = vector.broadcast %cst_46 : f32 to vector<8x1xf32>
    %120 = arith.divf %118, %119 : vector<8x1xf32>
    %121 = vector.broadcast %120 : vector<8x1xf32> to vector<8x32xf32>
    %122 = arith.subf %112, %121 : vector<8x32xf32>
    %123 = arith.mulf %122, %122 : vector<8x32xf32>
    %cst_47 = arith.constant dense<0.000000e+00> : vector<8xf32>
    %124 = vector.multi_reduction <add>, %123, %cst_47 [1] : vector<8x32xf32> to vector<8xf32>
    %125 = vector.shape_cast %124 : vector<8xf32> to vector<8x1xf32>
    %cst_48 = arith.constant 3.200000e+01 : f32
    %126 = vector.broadcast %cst_48 : f32 to vector<8x1xf32>
    %127 = arith.divf %125, %126 : vector<8x1xf32>
    %cst_49 = arith.constant 9.99999996E-13 : f32
    %128 = vector.broadcast %cst_49 : f32 to vector<8x1xf32>
    %129 = arith.addf %127, %128 : vector<8x1xf32>
    %130 = math.rsqrt %129 : vector<8x1xf32>
    %131 = vector.broadcast %130 : vector<8x1xf32> to vector<8x32xf32>
    %132 = arith.mulf %122, %131 : vector<8x32xf32>
    %133 = vector.shape_cast %114 : vector<32xf32> to vector<1x32xf32>
    %134 = vector.broadcast %133 : vector<1x32xf32> to vector<8x32xf32>
    %135 = arith.mulf %134, %132 : vector<8x32xf32>
    %136 = vector.shape_cast %116 : vector<32xf32> to vector<1x32xf32>
    %137 = vector.broadcast %136 : vector<1x32xf32> to vector<8x32xf32>
    %138 = arith.addf %135, %137 : vector<8x32xf32>
    %139 = arith.truncf %138 : vector<8x32xf32> to vector<8x32xbf16>
    %c0_50 = arith.constant 0 : index
    %c0_51 = arith.constant 0 : index
    %140 = vector.load %arg12[%c0_50, %c0_51] : memref<32x64xbf16, #tpu.memory_space<vmem>>, vector<32x64xbf16>
    %cst_52 = arith.constant dense<0.000000e+00> : vector<8x64xf32>
    %141 = tpu.matmul %139, %140, %cst_52 {dimension_numbers = #tpu.dot_dimension_numbers<[1], [0], [0], [1], [0, 0, 1, 1], [], []>} : vector<8x32xbf16>, vector<32x64xbf16>, vector<8x64xf32> -> vector<8x64xf32>
    %c0_53 = arith.constant 0 : index
    %c0_54 = arith.constant 0 : index
    %142 = vector.load %arg13[%c0_53, %c0_54] : memref<1x64xf32, #tpu.memory_space<vmem>>, vector<1x64xf32>
    %143 = vector.shape_cast %142 : vector<1x64xf32> to vector<64xf32>
    %144 = vector.shape_cast %143 : vector<64xf32> to vector<1x64xf32>
    %145 = vector.broadcast %144 : vector<1x64xf32> to vector<8x64xf32>
    %146 = arith.addf %141, %145 : vector<8x64xf32>
    %cst_55 = arith.constant 0.000000e+00 : f32
    %147 = vector.broadcast %cst_55 : f32 to vector<8x64xf32>
    %148 = arith.maximumf %146, %147 : vector<8x64xf32>
    %149 = arith.truncf %148 : vector<8x64xf32> to vector<8x64xbf16>
    %c0_56 = arith.constant 0 : index
    %c0_57 = arith.constant 0 : index
    %150 = vector.load %arg14[%c0_56, %c0_57] : memref<64x32xbf16, #tpu.memory_space<vmem>>, vector<64x32xbf16>
    %cst_58 = arith.constant dense<0.000000e+00> : vector<8x32xf32>
    %151 = tpu.matmul %149, %150, %cst_58 {dimension_numbers = #tpu.dot_dimension_numbers<[1], [0], [0], [1], [0, 0, 1, 1], [], []>} : vector<8x64xbf16>, vector<64x32xbf16>, vector<8x32xf32> -> vector<8x32xf32>
    %c0_59 = arith.constant 0 : index
    %c0_60 = arith.constant 0 : index
    %152 = vector.load %arg15[%c0_59, %c0_60] : memref<1x32xf32, #tpu.memory_space<vmem>>, vector<1x32xf32>
    %153 = vector.shape_cast %152 : vector<1x32xf32> to vector<32xf32>
    %154 = vector.shape_cast %153 : vector<32xf32> to vector<1x32xf32>
    %155 = vector.broadcast %154 : vector<1x32xf32> to vector<8x32xf32>
    %156 = arith.addf %151, %155 : vector<8x32xf32>
    %157 = arith.addf %156, %138 : vector<8x32xf32>
    %c0_61 = arith.constant 0 : index
    %c0_62 = arith.constant 0 : index
    %158 = vector.load %arg16[%c0_61, %c0_62] : memref<1x32xf32, #tpu.memory_space<vmem>>, vector<1x32xf32>
    %159 = vector.shape_cast %158 : vector<1x32xf32> to vector<32xf32>
    %c0_63 = arith.constant 0 : index
    %c0_64 = arith.constant 0 : index
    %160 = vector.load %arg17[%c0_63, %c0_64] : memref<1x32xf32, #tpu.memory_space<vmem>>, vector<1x32xf32>
    %161 = vector.shape_cast %160 : vector<1x32xf32> to vector<32xf32>
    %cst_65 = arith.constant dense<0.000000e+00> : vector<8xf32>
    %162 = vector.multi_reduction <add>, %157, %cst_65 [1] : vector<8x32xf32> to vector<8xf32>
    %163 = vector.shape_cast %162 : vector<8xf32> to vector<8x1xf32>
    %cst_66 = arith.constant 3.200000e+01 : f32
    %164 = vector.broadcast %cst_66 : f32 to vector<8x1xf32>
    %165 = arith.divf %163, %164 : vector<8x1xf32>
    %166 = vector.broadcast %165 : vector<8x1xf32> to vector<8x32xf32>
    %167 = arith.subf %157, %166 : vector<8x32xf32>
    %168 = arith.mulf %167, %167 : vector<8x32xf32>
    %cst_67 = arith.constant dense<0.000000e+00> : vector<8xf32>
    %169 = vector.multi_reduction <add>, %168, %cst_67 [1] : vector<8x32xf32> to vector<8xf32>
    %170 = vector.shape_cast %169 : vector<8xf32> to vector<8x1xf32>
    %cst_68 = arith.constant 3.200000e+01 : f32
    %171 = vector.broadcast %cst_68 : f32 to vector<8x1xf32>
    %172 = arith.divf %170, %171 : vector<8x1xf32>
    %cst_69 = arith.constant 9.99999996E-13 : f32
    %173 = vector.broadcast %cst_69 : f32 to vector<8x1xf32>
    %174 = arith.addf %172, %173 : vector<8x1xf32>
    %175 = math.rsqrt %174 : vector<8x1xf32>
    %176 = vector.broadcast %175 : vector<8x1xf32> to vector<8x32xf32>
    %177 = arith.mulf %167, %176 : vector<8x32xf32>
    %178 = vector.shape_cast %159 : vector<32xf32> to vector<1x32xf32>
    %179 = vector.broadcast %178 : vector<1x32xf32> to vector<8x32xf32>
    %180 = arith.mulf %179, %177 : vector<8x32xf32>
    %181 = vector.shape_cast %161 : vector<32xf32> to vector<1x32xf32>
    %182 = vector.broadcast %181 : vector<1x32xf32> to vector<8x32xf32>
    %183 = arith.addf %180, %182 : vector<8x32xf32>
    %c0_70 = arith.constant 0 : index
    %c0_71 = arith.constant 0 : index
    %c0_72 = arith.constant 0 : index
    %184 = vector.load %arg18[%c0_70, %c0_71, %c0_72] : memref<1x8x32xf32, #tpu.memory_space<vmem>>, vector<1x8x32xf32>
    %185 = vector.shape_cast %184 : vector<1x8x32xf32> to vector<8x32xf32>
    %186 = vector.shape_cast %183 : vector<8x32xf32> to vector<1x8x32xf32>
    tpu.vector_store %arg18[%c0_70, %c0_71, %c0_72], %186 {strides = array<i32>} : memref<1x8x32xf32, #tpu.memory_space<vmem>>, vector<1x8x32xf32>,
    return
  }
  func.func @transform_0(%arg0: i32, %arg1: i32) -> (i32, i32, i32) {
    %c0_i32 = arith.constant 0 : i32
    %c0_i32_0 = arith.constant 0 : i32
    %c0_i32_1 = arith.constant 0 : i32
    return %arg0, %c0_i32, %c0_i32_0 : i32, i32, i32
  }
  func.func @transform_1(%arg0: i32, %arg1: i32) -> (i32, i32, i32) {
    %c0_i32 = arith.constant 0 : i32
    %c0_i32_0 = arith.constant 0 : i32
    %c0_i32_1 = arith.constant 0 : i32
    return %arg0, %c0_i32, %c0_i32_0 : i32, i32, i32
  }
  func.func @transform_2(%arg0: i32, %arg1: i32) -> (i32, i32) {
    %c0_i32 = arith.constant 0 : i32
    %c0_i32_0 = arith.constant 0 : i32
    %c0_i32_1 = arith.constant 0 : i32
    return %c0_i32, %c0_i32_0 : i32, i32
  }
  func.func @transform_3(%arg0: i32, %arg1: i32) -> (i32, i32) {
    %c0_i32 = arith.constant 0 : i32
    %c0_i32_0 = arith.constant 0 : i32
    %c0_i32_1 = arith.constant 0 : i32
    return %c0_i32, %c0_i32_0 : i32, i32
  }
  func.func @transform_4(%arg0: i32, %arg1: i32) -> (i32, i32) {
    %c0_i32 = arith.constant 0 : i32
    %c0_i32_0 = arith.constant 0 : i32
    %c0_i32_1 = arith.constant 0 : i32
    return %c0_i32, %c0_i32_0 : i32, i32
  }
  func.func @transform_5(%arg0: i32, %arg1: i32) -> (i32, i32) {
    %c0_i32 = arith.constant 0 : i32
    %c0_i32_0 = arith.constant 0 : i32
    %c0_i32_1 = arith.constant 0 : i32
    return %c0_i32, %c0_i32_0 : i32, i32
  }
  func.func @transform_6(%arg0: i32, %arg1: i32) -> (i32, i32) {
    %c0_i32 = arith.constant 0 : i32
    %c0_i32_0 = arith.constant 0 : i32
    %c0_i32_1 = arith.constant 0 : i32
    return %c0_i32, %c0_i32_0 : i32, i32
  }
  func.func @transform_7(%arg0: i32, %arg1: i32) -> (i32, i32) {
    %c0_i32 = arith.constant 0 : i32
    %c0_i32_0 = arith.constant 0 : i32
    %c0_i32_1 = arith.constant 0 : i32
    return %c0_i32, %c0_i32_0 : i32, i32
  }
  func.func @transform_8(%arg0: i32, %arg1: i32) -> (i32, i32) {
    %c0_i32 = arith.constant 0 : i32
    %c0_i32_0 = arith.constant 0 : i32
    %c0_i32_1 = arith.constant 0 : i32
    return %c0_i32, %c0_i32_0 : i32, i32
  }
  func.func @transform_9(%arg0: i32, %arg1: i32) -> (i32, i32) {
    %c0_i32 = arith.constant 0 : i32
    %c0_i32_0 = arith.constant 0 : i32
    %c0_i32_1 = arith.constant 0 : i32
    return %c0_i32, %c0_i32_0 : i32, i32
  }
  func.func @transform_10(%arg0: i32, %arg1: i32) -> (i32, i32) {
    %c0_i32 = arith.constant 0 : i32
    %c0_i32_0 = arith.constant 0 : i32
    %c0_i32_1 = arith.constant 0 : i32
    return %c0_i32, %c0_i32_0 : i32, i32
  }
  func.func @transform_11(%arg0: i32, %arg1: i32) -> (i32, i32) {
    %c0_i32 = arith.constant 0 : i32
    %c0_i32_0 = arith.constant 0 : i32
    %c0_i32_1 = arith.constant 0 : i32
    return %c0_i32, %c0_i32_0 : i32, i32
  }
  func.func @transform_12(%arg0: i32, %arg1: i32) -> (i32, i32) {
    %c0_i32 = arith.constant 0 : i32
    %c0_i32_0 = arith.constant 0 : i32
    %c0_i32_1 = arith.constant 0 : i32
    return %c0_i32, %c0_i32_0 : i32, i32
  }
  func.func @transform_13(%arg0: i32, %arg1: i32) -> (i32, i32) {
    %c0_i32 = arith.constant 0 : i32
    %c0_i32_0 = arith.constant 0 : i32
    %c0_i32_1 = arith.constant 0 : i32
    return %c0_i32, %c0_i32_0 : i32, i32
  }
  func.func @transform_14(%arg0: i32, %arg1: i32) -> (i32, i32) {
    %c0_i32 = arith.constant 0 : i32
    %c0_i32_0 = arith.constant 0 : i32
    %c0_i32_1 = arith.constant 0 : i32
    return %c0_i32, %c0_i32_0 : i32, i32
  }
  func.func @transform_15(%arg0: i32, %arg1: i32) -> (i32, i32) {
    %c0_i32 = arith.constant 0 : i32
    %c0_i32_0 = arith.constant 0 : i32
    %c0_i32_1 = arith.constant 0 : i32
    return %c0_i32, %c0_i32_0 : i32, i32
  }
  func.func @transform_16(%arg0: i32, %arg1: i32) -> (i32, i32, i32) {
    %c0_i32 = arith.constant 0 : i32
    %c0_i32_0 = arith.constant 0 : i32
    return %arg0, %arg1, %c0_i32 : i32, i32, i32
  }
}

module attributes {stable_mosaic.version = 11 : i64} {
  func.func @_attention_layer_kernel(%arg0: i32, %arg1: i32, %arg2: memref<1x8x32xf32, #tpu.memory_space<vmem>>, %arg3: memref<1x1x8xi32, #tpu.memory_space<vmem>>, %arg4: memref<32x32xbf16, #tpu.memory_space<vmem>>, %arg5: memref<1x32xf32, #tpu.memory_space<vmem>>, %arg6: memref<32x64xbf16, #tpu.memory_space<vmem>>, %arg7: memref<1x64xf32, #tpu.memory_space<vmem>>, %arg8: memref<32x32xbf16, #tpu.memory_space<vmem>>, %arg9: memref<1x32xf32, #tpu.memory_space<vmem>>, %arg10: memref<1x32xf32, #tpu.memory_space<vmem>>, %arg11: memref<1x32xf32, #tpu.memory_space<vmem>>, %arg12: memref<32x64xbf16, #tpu.memory_space<vmem>>, %arg13: memref<1x64xf32, #tpu.memory_space<vmem>>, %arg14: memref<64x32xbf16, #tpu.memory_space<vmem>>, %arg15: memref<1x32xf32, #tpu.memory_space<vmem>>, %arg16: memref<1x32xf32, #tpu.memory_space<vmem>>, %arg17: memref<1x32xf32, #tpu.memory_space<vmem>>, %arg18: memref<1x8x32xf32, #tpu.memory_space<vmem>>, %arg19: memref<8x32xbf16, #tpu.memory_space<vmem>>, %arg20: memref<8x32xbf16, #tpu.memory_space<vmem>>) attributes {dimension_semantics = [#tpu.dimension_semantics<parallel>, #tpu.dimension_semantics<arbitrary>], iteration_bounds = array<i64: 2, 1>, scalar_prefetch = 0 : i64, scratch_operands = 2 : i64, tpu.core_type = #tpu.core_type<tc>, window_params = [{transform_indices = @transform_0, window_bounds = array<i64: 1, 8, 32>}, {transform_indices = @transform_1, window_bounds = array<i64: 1, 1, 8>}, {pipeline_mode = #tpu.pipeline_mode<synchronous>, transform_indices = @transform_2, window_bounds = array<i64: 32, 32>}, {pipeline_mode = #tpu.pipeline_mode<synchronous>, transform_indices = @transform_3, window_bounds = array<i64: 1, 32>}, {pipeline_mode = #tpu.pipeline_mode<synchronous>, transform_indices = @transform_4, window_bounds = array<i64: 32, 64>}, {pipeline_mode = #tpu.pipeline_mode<synchronous>, transform_indices = @transform_5, window_bounds = array<i64: 1, 64>}, {pipeline_mode = #tpu.pipeline_mode<synchronous>, transform_indices = @transform_6, window_bounds = array<i64: 32, 32>}, {pipeline_mode = #tpu.pipeline_mode<synchronous>, transform_indices = @transform_7, window_bounds = array<i64: 1, 32>}, {pipeline_mode = #tpu.pipeline_mode<synchronous>, transform_indices = @transform_8, window_bounds = array<i64: 1, 32>}, {pipeline_mode = #tpu.pipeline_mode<synchronous>, transform_indices = @transform_9, window_bounds = array<i64: 1, 32>}, {pipeline_mode = #tpu.pipeline_mode<synchronous>, transform_indices = @transform_10, window_bounds = array<i64: 32, 64>}, {pipeline_mode = #tpu.pipeline_mode<synchronous>, transform_indices = @transform_11, window_bounds = array<i64: 1, 64>}, {pipeline_mode = #tpu.pipeline_mode<synchronous>, transform_indices = @transform_12, window_bounds = array<i64: 64, 32>}, {pipeline_mode = #tpu.pipeline_mode<synchronous>, transform_indices = @transform_13, window_bounds = array<i64: 1, 32>}, {pipeline_mode = #tpu.pipeline_mode<synchronous>, transform_indices = @transform_14, window_bounds = array<i64: 1, 32>}, {pipeline_mode = #tpu.pipeline_mode<synchronous>, transform_indices = @transform_15, window_bounds = array<i64: 1, 32>}, {transform_indices = @transform_16, window_bounds = array<i64: 1, 8, 32>}]} {
    %c0_i32 = arith.constant 0 : i32
    %0 = arith.cmpi eq, %arg1, %c0_i32 : i32
    %1 = arith.extui %0 : i1 to i32
    %c0_i32_0 = arith.constant 0 : i32
    %2 = arith.cmpi ne, %1, %c0_i32_0 : i32
    scf.if %2 {
      %c0_73 = arith.constant 0 : index
      %c0_74 = arith.constant 0 : index
      %c0_75 = arith.constant 0 : index
      %187 = vector.load %arg2[%c0_73, %c0_74, %c0_75] : memref<1x8x32xf32, #tpu.memory_space<vmem>>, vector<1x8x32xf32>
      %188 = vector.shape_cast %187 : vector<1x8x32xf32> to vector<8x32xf32>
      %189 = arith.truncf %188 : vector<8x32xf32> to vector<8x32xbf16>
      %c0_76 = arith.constant 0 : index
      %c0_77 = arith.constant 0 : index
      %190 = vector.load %arg6[%c0_76, %c0_77] : memref<32x64xbf16, #tpu.memory_space<vmem>>, vector<32x64xbf16>
      %cst_78 = arith.constant dense<0.000000e+00> : vector<8x64xf32>
      %191 = tpu.matmul %189, %190, %cst_78 {dimension_numbers = #tpu.dot_dimension_numbers<[1], [0], [0], [1], [0, 0, 1, 1], [], []>} : vector<8x32xbf16>, vector<32x64xbf16>, vector<8x64xf32> -> vector<8x64xf32>
      %c0_79 = arith.constant 0 : index
      %c0_80 = arith.constant 0 : index
      %192 = vector.load %arg7[%c0_79, %c0_80] : memref<1x64xf32, #tpu.memory_space<vmem>>, vector<1x64xf32>
      %193 = vector.shape_cast %192 : vector<1x64xf32> to vector<64xf32>
      %194 = vector.shape_cast %193 : vector<64xf32> to vector<1x64xf32>
      %195 = vector.broadcast %194 : vector<1x64xf32> to vector<8x64xf32>
      %196 = arith.addf %191, %195 : vector<8x64xf32>
      %197 = vector.extract_strided_slice %196 {offsets = [0, 0], sizes = [8, 32], strides = [1, 1]} : vector<8x64xf32> to vector<8x32xf32>
      %198 = arith.truncf %197 : vector<8x32xf32> to vector<8x32xbf16>
      %c0_81 = arith.constant 0 : index
      %c0_82 = arith.constant 0 : index
      %199 = vector.load %arg19[%c0_81, %c0_82] : memref<8x32xbf16, #tpu.memory_space<vmem>>, vector<8x32xbf16>
      tpu.vector_store %arg19[%c0_81, %c0_82], %198 {strides = array<i32>} : memref<8x32xbf16, #tpu.memory_space<vmem>>, vector<8x32xbf16>,
      %200 = vector.extract_strided_slice %196 {offsets = [0, 32], sizes = [8, 32], strides = [1, 1]} : vector<8x64xf32> to vector<8x32xf32>
      %201 = arith.truncf %200 : vector<8x32xf32> to vector<8x32xbf16>
      %c0_83 = arith.constant 0 : index
      %c0_84 = arith.constant 0 : index
      %202 = vector.load %arg20[%c0_83, %c0_84] : memref<8x32xbf16, #tpu.memory_space<vmem>>, vector<8x32xbf16>
      tpu.vector_store %arg20[%c0_83, %c0_84], %201 {strides = array<i32>} : memref<8x32xbf16, #tpu.memory_space<vmem>>, vector<8x32xbf16>,
    } else {
    }
    %c8_i32 = arith.constant 8 : i32
    %3 = arith.muli %arg1, %c8_i32 : i32
    %4 = tpu.assume_multiple %3, 8 : i32
    %c0 = arith.constant 0 : index
    %5 = arith.index_cast %4 : i32 to index
    %c0_1 = arith.constant 0 : index
    %6 = vector.load %arg2[%c0, %5, %c0_1] : memref<1x8x32xf32, #tpu.memory_space<vmem>>, vector<1x8x32xf32>
    %7 = vector.shape_cast %6 : vector<1x8x32xf32> to vector<8x32xf32>
    %c0_2 = arith.constant 0 : index
    %c0_3 = arith.constant 0 : index
    %c0_4 = arith.constant 0 : index
    %8 = vector.load %arg3[%c0_2, %c0_3, %c0_4] : memref<1x1x8xi32, #tpu.memory_space<vmem>>, vector<1x1x8xi32>
    %9 = vector.shape_cast %8 : vector<1x1x8xi32> to vector<1x8xi32>
    %c0_i32_5 = arith.constant 0 : i32
    %10 = vector.broadcast %c0_i32_5 : i32 to vector<1x8xi32>
    %11 = arith.cmpi eq, %9, %10 : vector<1x8xi32>
    %cst = arith.constant -1.000000e+04 : f32
    %cst_6 = arith.constant 0.000000e+00 : f32
    %12 = vector.broadcast %cst : f32 to vector<1x8xf32>
    %13 = vector.broadcast %cst_6 : f32 to vector<1x8xf32>
    %14 = arith.select %11, %12, %13 : vector<1x8xi1>, vector<1x8xf32>
    %15 = vector.shape_cast %14 : vector<1x8xf32> to vector<1x8xf32>
    %16 = vector.broadcast %15 : vector<1x8xf32> to vector<8x8xf32>
    %17 = arith.truncf %7 : vector<8x32xf32> to vector<8x32xbf16>
    %c0_7 = arith.constant 0 : index
    %c0_8 = arith.constant 0 : index
    %18 = vector.load %arg4[%c0_7, %c0_8] : memref<32x32xbf16, #tpu.memory_space<vmem>>, vector<32x32xbf16>
    %cst_9 = arith.constant dense<0.000000e+00> : vector<8x32xf32>
    %19 = tpu.matmul %17, %18, %cst_9 {dimension_numbers = #tpu.dot_dimension_numbers<[1], [0], [0], [1], [0, 0, 1, 1], [], []>} : vector<8x32xbf16>, vector<32x32xbf16>, vector<8x32xf32> -> vector<8x32xf32>
    %c0_10 = arith.constant 0 : index
    %c0_11 = arith.constant 0 : index
    %20 = vector.load %arg5[%c0_10, %c0_11] : memref<1x32xf32, #tpu.memory_space<vmem>>, vector<1x32xf32>
    %21 = vector.shape_cast %20 : vector<1x32xf32> to vector<32xf32>
    %22 = vector.shape_cast %21 : vector<32xf32> to vector<1x32xf32>
    %23 = vector.broadcast %22 : vector<1x32xf32> to vector<8x32xf32>
    %24 = arith.addf %19, %23 : vector<8x32xf32>
    %25 = arith.truncf %24 : vector<8x32xf32> to vector<8x32xbf16>
    %c0_12 = arith.constant 0 : index
    %c0_13 = arith.constant 0 : index
    %26 = vector.load %arg19[%c0_12, %c0_13] : memref<8x32xbf16, #tpu.memory_space<vmem>>, vector<8x32xbf16>
    %c0_14 = arith.constant 0 : index
    %c0_15 = arith.constant 0 : index
    %27 = vector.load %arg20[%c0_14, %c0_15] : memref<8x32xbf16, #tpu.memory_space<vmem>>, vector<8x32xbf16>
    %28 = vector.extract_strided_slice %25 {offsets = [0, 0], sizes = [8, 8], strides = [1, 1]} : vector<8x32xbf16> to vector<8x8xbf16>
    %29 = vector.extract_strided_slice %26 {offsets = [0, 0], sizes = [8, 8], strides = [1, 1]} : vector<8x32xbf16> to vector<8x8xbf16>
    %cst_16 = arith.constant dense<0.000000e+00> : vector<8x8xf32>
    %30 = tpu.matmul %28, %29, %cst_16 {dimension_numbers = #tpu.dot_dimension_numbers<[1], [1], [0], [0], [0, 0, 1, 0], [], []>} : vector<8x8xbf16>, vector<8x8xbf16>, vector<8x8xf32> -> vector<8x8xf32>
    %cst_17 = arith.constant 0.353553385 : f32
    %31 = vector.broadcast %cst_17 : f32 to vector<8x8xf32>
    %32 = arith.mulf %30, %31 : vector<8x8xf32>
    %33 = arith.addf %32, %16 : vector<8x8xf32>
    %cst_18 = arith.constant dense<0xFF800000> : vector<8xf32>
    %34 = vector.multi_reduction <maximumf>, %33, %cst_18 [1] : vector<8x8xf32> to vector<8xf32>
    %35 = vector.shape_cast %34 : vector<8xf32> to vector<8x1xf32>
    %36 = vector.broadcast %35 : vector<8x1xf32> to vector<8x8xf32>
    %37 = arith.subf %33, %36 : vector<8x8xf32>
    %38 = math.exp %37 : vector<8x8xf32>
    %cst_19 = arith.constant dense<0.000000e+00> : vector<8xf32>
    %39 = vector.multi_reduction <add>, %38, %cst_19 [1] : vector<8x8xf32> to vector<8xf32>
    %40 = vector.shape_cast %39 : vector<8xf32> to vector<8x1xf32>
    %41 = vector.broadcast %40 : vector<8x1xf32> to vector<8x8xf32>
    %42 = arith.divf %38, %41 : vector<8x8xf32>
    %43 = arith.truncf %42 : vector<8x8xf32> to vector<8x8xbf16>
    %44 = vector.extract_strided_slice %27 {offsets = [0, 0], sizes = [8, 8], strides = [1, 1]} : vector<8x32xbf16> to vector<8x8xbf16>
    %cst_20 = arith.constant dense<0.000000e+00> : vector<8x8xf32>
    %45 = tpu.matmul %43, %44, %cst_20 {dimension_numbers = #tpu.dot_dimension_numbers<[1], [0], [0], [1], [0, 0, 1, 1], [], []>} : vector<8x8xbf16>, vector<8x8xbf16>, vector<8x8xf32> -> vector<8x8xf32>
    %46 = arith.truncf %45 : vector<8x8xf32> to vector<8x8xbf16>
    %47 = vector.extract_strided_slice %25 {offsets = [0, 8], sizes = [8, 8], strides = [1, 1]} : vector<8x32xbf16> to vector<8x8xbf16>
    %48 = vector.extract_strided_slice %26 {offsets = [0, 8], sizes = [8, 8], strides = [1, 1]} : vector<8x32xbf16> to vector<8x8xbf16>
    %cst_21 = arith.constant dense<0.000000e+00> : vector<8x8xf32>
    %49 = tpu.matmul %47, %48, %cst_21 {dimension_numbers = #tpu.dot_dimension_numbers<[1], [1], [0], [0], [0, 0, 1, 0], [], []>} : vector<8x8xbf16>, vector<8x8xbf16>, vector<8x8xf32> -> vector<8x8xf32>
    %cst_22 = arith.constant 0.353553385 : f32
    %50 = vector.broadcast %cst_22 : f32 to vector<8x8xf32>
    %51 = arith.mulf %49, %50 : vector<8x8xf32>
    %52 = arith.addf %51, %16 : vector<8x8xf32>
    %cst_23 = arith.constant dense<0xFF800000> : vector<8xf32>
    %53 = vector.multi_reduction <maximumf>, %52, %cst_23 [1] : vector<8x8xf32> to vector<8xf32>
    %54 = vector.shape_cast %53 : vector<8xf32> to vector<8x1xf32>
    %55 = vector.broadcast %54 : vector<8x1xf32> to vector<8x8xf32>
    %56 = arith.subf %52, %55 : vector<8x8xf32>
    %57 = math.exp %56 : vector<8x8xf32>
    %cst_24 = arith.constant dense<0.000000e+00> : vector<8xf32>
    %58 = vector.multi_reduction <add>, %57, %cst_24 [1] : vector<8x8xf32> to vector<8xf32>
    %59 = vector.shape_cast %58 : vector<8xf32> to vector<8x1xf32>
    %60 = vector.broadcast %59 : vector<8x1xf32> to vector<8x8xf32>
    %61 = arith.divf %57, %60 : vector<8x8xf32>
    %62 = arith.truncf %61 : vector<8x8xf32> to vector<8x8xbf16>
    %63 = vector.extract_strided_slice %27 {offsets = [0, 8], sizes = [8, 8], strides = [1, 1]} : vector<8x32xbf16> to vector<8x8xbf16>
    %cst_25 = arith.constant dense<0.000000e+00> : vector<8x8xf32>
    %64 = tpu.matmul %62, %63, %cst_25 {dimension_numbers = #tpu.dot_dimension_numbers<[1], [0], [0], [1], [0, 0, 1, 1], [], []>} : vector<8x8xbf16>, vector<8x8xbf16>, vector<8x8xf32> -> vector<8x8xf32>
    %65 = arith.truncf %64 : vector<8x8xf32> to vector<8x8xbf16>
    %66 = vector.extract_strided_slice %25 {offsets = [0, 16], sizes = [8, 8], strides = [1, 1]} : vector<8x32xbf16> to vector<8x8xbf16>
    %67 = vector.extract_strided_slice %26 {offsets = [0, 16], sizes = [8, 8], strides = [1, 1]} : vector<8x32xbf16> to vector<8x8xbf16>
    %cst_26 = arith.constant dense<0.000000e+00> : vector<8x8xf32>
    %68 = tpu.matmul %66, %67, %cst_26 {dimension_numbers = #tpu.dot_dimension_numbers<[1], [1], [0], [0], [0, 0, 1, 0], [], []>} : vector<8x8xbf16>, vector<8x8xbf16>, vector<8x8xf32> -> vector<8x8xf32>
    %cst_27 = arith.constant 0.353553385 : f32
    %69 = vector.broadcast %cst_27 : f32 to vector<8x8xf32>
    %70 = arith.mulf %68, %69 : vector<8x8xf32>
    %71 = arith.addf %70, %16 : vector<8x8xf32>
    %cst_28 = arith.constant dense<0xFF800000> : vector<8xf32>
    %72 = vector.multi_reduction <maximumf>, %71, %cst_28 [1] : vector<8x8xf32> to vector<8xf32>
    %73 = vector.shape_cast %72 : vector<8xf32> to vector<8x1xf32>
    %74 = vector.broadcast %73 : vector<8x1xf32> to vector<8x8xf32>
    %75 = arith.subf %71, %74 : vector<8x8xf32>
    %76 = math.exp %75 : vector<8x8xf32>
    %cst_29 = arith.constant dense<0.000000e+00> : vector<8xf32>
    %77 = vector.multi_reduction <add>, %76, %cst_29 [1] : vector<8x8xf32> to vector<8xf32>
    %78 = vector.shape_cast %77 : vector<8xf32> to vector<8x1xf32>
    %79 = vector.broadcast %78 : vector<8x1xf32> to vector<8x8xf32>
    %80 = arith.divf %76, %79 : vector<8x8xf32>
    %81 = arith.truncf %80 : vector<8x8xf32> to vector<8x8xbf16>
    %82 = vector.extract_strided_slice %27 {offsets = [0, 16], sizes = [8, 8], strides = [1, 1]} : vector<8x32xbf16> to vector<8x8xbf16>
    %cst_30 = arith.constant dense<0.000000e+00> : vector<8x8xf32>
    %83 = tpu.matmul %81, %82, %cst_30 {dimension_numbers = #tpu.dot_dimension_numbers<[1], [0], [0], [1], [0, 0, 1, 1], [], []>} : vector<8x8xbf16>, vector<8x8xbf16>, vector<8x8xf32> -> vector<8x8xf32>
    %84 = arith.truncf %83 : vector<8x8xf32> to vector<8x8xbf16>
    %85 = vector.extract_strided_slice %25 {offsets = [0, 24], sizes = [8, 8], strides = [1, 1]} : vector<8x32xbf16> to vector<8x8xbf16>
    %86 = vector.extract_strided_slice %26 {offsets = [0, 24], sizes = [8, 8], strides = [1, 1]} : vector<8x32xbf16> to vector<8x8xbf16>
    %cst_31 = arith.constant dense<0.000000e+00> : vector<8x8xf32>
    %87 = tpu.matmul %85, %86, %cst_31 {dimension_numbers = #tpu.dot_dimension_numbers<[1], [1], [0], [0], [0, 0, 1, 0], [], []>} : vector<8x8xbf16>, vector<8x8xbf16>, vector<8x8xf32> -> vector<8x8xf32>
    %cst_32 = arith.constant 0.353553385 : f32
    %88 = vector.broadcast %cst_32 : f32 to vector<8x8xf32>
    %89 = arith.mulf %87, %88 : vector<8x8xf32>
    %90 = arith.addf %89, %16 : vector<8x8xf32>
    %cst_33 = arith.constant dense<0xFF800000> : vector<8xf32>
    %91 = vector.multi_reduction <maximumf>, %90, %cst_33 [1] : vector<8x8xf32> to vector<8xf32>
    %92 = vector.shape_cast %91 : vector<8xf32> to vector<8x1xf32>
    %93 = vector.broadcast %92 : vector<8x1xf32> to vector<8x8xf32>
    %94 = arith.subf %90, %93 : vector<8x8xf32>
    %95 = math.exp %94 : vector<8x8xf32>
    %cst_34 = arith.constant dense<0.000000e+00> : vector<8xf32>
    %96 = vector.multi_reduction <add>, %95, %cst_34 [1] : vector<8x8xf32> to vector<8xf32>
    %97 = vector.shape_cast %96 : vector<8xf32> to vector<8x1xf32>
    %98 = vector.broadcast %97 : vector<8x1xf32> to vector<8x8xf32>
    %99 = arith.divf %95, %98 : vector<8x8xf32>
    %100 = arith.truncf %99 : vector<8x8xf32> to vector<8x8xbf16>
    %101 = vector.extract_strided_slice %27 {offsets = [0, 24], sizes = [8, 8], strides = [1, 1]} : vector<8x32xbf16> to vector<8x8xbf16>
    %cst_35 = arith.constant dense<0.000000e+00> : vector<8x8xf32>
    %102 = tpu.matmul %100, %101, %cst_35 {dimension_numbers = #tpu.dot_dimension_numbers<[1], [0], [0], [1], [0, 0, 1, 1], [], []>} : vector<8x8xbf16>, vector<8x8xbf16>, vector<8x8xf32> -> vector<8x8xf32>
    %103 = arith.truncf %102 : vector<8x8xf32> to vector<8x8xbf16>
    %104 = tpu.concatenate %46, %65, %84, %103 in 1 : vector<8x8xbf16>, vector<8x8xbf16>, vector<8x8xbf16>, vector<8x8xbf16> -> vector<8x32xbf16>
    %c0_36 = arith.constant 0 : index
    %c0_37 = arith.constant 0 : index
    %105 = vector.load %arg8[%c0_36, %c0_37] : memref<32x32xbf16, #tpu.memory_space<vmem>>, vector<32x32xbf16>
    %cst_38 = arith.constant dense<0.000000e+00> : vector<8x32xf32>
    %106 = tpu.matmul %104, %105, %cst_38 {dimension_numbers = #tpu.dot_dimension_numbers<[1], [0], [0], [1], [0, 0, 1, 1], [], []>} : vector<8x32xbf16>, vector<32x32xbf16>, vector<8x32xf32> -> vector<8x32xf32>
    %c0_39 = arith.constant 0 : index
    %c0_40 = arith.constant 0 : index
    %107 = vector.load %arg9[%c0_39, %c0_40] : memref<1x32xf32, #tpu.memory_space<vmem>>, vector<1x32xf32>
    %108 = vector.shape_cast %107 : vector<1x32xf32> to vector<32xf32>
    %109 = vector.shape_cast %108 : vector<32xf32> to vector<1x32xf32>
    %110 = vector.broadcast %109 : vector<1x32xf32> to vector<8x32xf32>
    %111 = arith.addf %106, %110 : vector<8x32xf32>
    %112 = arith.addf %111, %7 : vector<8x32xf32>
    %c0_41 = arith.constant 0 : index
    %c0_42 = arith.constant 0 : index
    %113 = vector.load %arg10[%c0_41, %c0_42] : memref<1x32xf32, #tpu.memory_space<vmem>>, vector<1x32xf32>
    %114 = vector.shape_cast %113 : vector<1x32xf32> to vector<32xf32>
    %c0_43 = arith.constant 0 : index
    %c0_44 = arith.constant 0 : index
    %115 = vector.load %arg11[%c0_43, %c0_44] : memref<1x32xf32, #tpu.memory_space<vmem>>, vector<1x32xf32>
    %116 = vector.shape_cast %115 : vector<1x32xf32> to vector<32xf32>
    %cst_45 = arith.constant dense<0.000000e+00> : vector<8xf32>
    %117 = vector.multi_reduction <add>, %112, %cst_45 [1] : vector<8x32xf32> to vector<8xf32>
    %118 = vector.shape_cast %117 : vector<8xf32> to vector<8x1xf32>
    %cst_46 = arith.constant 3.200000e+01 : f32
    %119 = vector.broadcast %cst_46 : f32 to vector<8x1xf32>
    %120 = arith.divf %118, %119 : vector<8x1xf32>
    %121 = vector.broadcast %120 : vector<8x1xf32> to vector<8x32xf32>
    %122 = arith.subf %112, %121 : vector<8x32xf32>
    %123 = arith.mulf %122, %122 : vector<8x32xf32>
    %cst_47 = arith.constant dense<0.000000e+00> : vector<8xf32>
    %124 = vector.multi_reduction <add>, %123, %cst_47 [1] : vector<8x32xf32> to vector<8xf32>
    %125 = vector.shape_cast %124 : vector<8xf32> to vector<8x1xf32>
    %cst_48 = arith.constant 3.200000e+01 : f32
    %126 = vector.broadcast %cst_48 : f32 to vector<8x1xf32>
    %127 = arith.divf %125, %126 : vector<8x1xf32>
    %cst_49 = arith.constant 9.99999996E-13 : f32
    %128 = vector.broadcast %cst_49 : f32 to vector<8x1xf32>
    %129 = arith.addf %127, %128 : vector<8x1xf32>
    %130 = math.rsqrt %129 : vector<8x1xf32>
    %131 = vector.broadcast %130 : vector<8x1xf32> to vector<8x32xf32>
    %132 = arith.mulf %122, %131 : vector<8x32xf32>
    %133 = vector.shape_cast %114 : vector<32xf32> to vector<1x32xf32>
    %134 = vector.broadcast %133 : vector<1x32xf32> to vector<8x32xf32>
    %135 = arith.mulf %134, %132 : vector<8x32xf32>
    %136 = vector.shape_cast %116 : vector<32xf32> to vector<1x32xf32>
    %137 = vector.broadcast %136 : vector<1x32xf32> to vector<8x32xf32>
    %138 = arith.addf %135, %137 : vector<8x32xf32>
    %139 = arith.truncf %138 : vector<8x32xf32> to vector<8x32xbf16>
    %c0_50 = arith.constant 0 : index
    %c0_51 = arith.constant 0 : index
    %140 = vector.load %arg12[%c0_50, %c0_51] : memref<32x64xbf16, #tpu.memory_space<vmem>>, vector<32x64xbf16>
    %cst_52 = arith.constant dense<0.000000e+00> : vector<8x64xf32>
    %141 = tpu.matmul %139, %140, %cst_52 {dimension_numbers = #tpu.dot_dimension_numbers<[1], [0], [0], [1], [0, 0, 1, 1], [], []>} : vector<8x32xbf16>, vector<32x64xbf16>, vector<8x64xf32> -> vector<8x64xf32>
    %c0_53 = arith.constant 0 : index
    %c0_54 = arith.constant 0 : index
    %142 = vector.load %arg13[%c0_53, %c0_54] : memref<1x64xf32, #tpu.memory_space<vmem>>, vector<1x64xf32>
    %143 = vector.shape_cast %142 : vector<1x64xf32> to vector<64xf32>
    %144 = vector.shape_cast %143 : vector<64xf32> to vector<1x64xf32>
    %145 = vector.broadcast %144 : vector<1x64xf32> to vector<8x64xf32>
    %146 = arith.addf %141, %145 : vector<8x64xf32>
    %cst_55 = arith.constant 0.000000e+00 : f32
    %147 = vector.broadcast %cst_55 : f32 to vector<8x64xf32>
    %148 = arith.maximumf %146, %147 : vector<8x64xf32>
    %149 = arith.truncf %148 : vector<8x64xf32> to vector<8x64xbf16>
    %c0_56 = arith.constant 0 : index
    %c0_57 = arith.constant 0 : index
    %150 = vector.load %arg14[%c0_56, %c0_57] : memref<64x32xbf16, #tpu.memory_space<vmem>>, vector<64x32xbf16>
    %cst_58 = arith.constant dense<0.000000e+00> : vector<8x32xf32>
    %151 = tpu.matmul %149, %150, %cst_58 {dimension_numbers = #tpu.dot_dimension_numbers<[1], [0], [0], [1], [0, 0, 1, 1], [], []>} : vector<8x64xbf16>, vector<64x32xbf16>, vector<8x32xf32> -> vector<8x32xf32>
    %c0_59 = arith.constant 0 : index
    %c0_60 = arith.constant 0 : index
    %152 = vector.load %arg15[%c0_59, %c0_60] : memref<1x32xf32, #tpu.memory_space<vmem>>, vector<1x32xf32>
    %153 = vector.shape_cast %152 : vector<1x32xf32> to vector<32xf32>
    %154 = vector.shape_cast %153 : vector<32xf32> to vector<1x32xf32>
    %155 = vector.broadcast %154 : vector<1x32xf32> to vector<8x32xf32>
    %156 = arith.addf %151, %155 : vector<8x32xf32>
    %157 = arith.addf %156, %138 : vector<8x32xf32>
    %c0_61 = arith.constant 0 : index
    %c0_62 = arith.constant 0 : index
    %158 = vector.load %arg16[%c0_61, %c0_62] : memref<1x32xf32, #tpu.memory_space<vmem>>, vector<1x32xf32>
    %159 = vector.shape_cast %158 : vector<1x32xf32> to vector<32xf32>
    %c0_63 = arith.constant 0 : index
    %c0_64 = arith.constant 0 : index
    %160 = vector.load %arg17[%c0_63, %c0_64] : memref<1x32xf32, #tpu.memory_space<vmem>>, vector<1x32xf32>
    %161 = vector.shape_cast %160 : vector<1x32xf32> to vector<32xf32>
    %cst_65 = arith.constant dense<0.000000e+00> : vector<8xf32>
    %162 = vector.multi_reduction <add>, %157, %cst_65 [1] : vector<8x32xf32> to vector<8xf32>
    %163 = vector.shape_cast %162 : vector<8xf32> to vector<8x1xf32>
    %cst_66 = arith.constant 3.200000e+01 : f32
    %164 = vector.broadcast %cst_66 : f32 to vector<8x1xf32>
    %165 = arith.divf %163, %164 : vector<8x1xf32>
    %166 = vector.broadcast %165 : vector<8x1xf32> to vector<8x32xf32>
    %167 = arith.subf %157, %166 : vector<8x32xf32>
    %168 = arith.mulf %167, %167 : vector<8x32xf32>
    %cst_67 = arith.constant dense<0.000000e+00> : vector<8xf32>
    %169 = vector.multi_reduction <add>, %168, %cst_67 [1] : vector<8x32xf32> to vector<8xf32>
    %170 = vector.shape_cast %169 : vector<8xf32> to vector<8x1xf32>
    %cst_68 = arith.constant 3.200000e+01 : f32
    %171 = vector.broadcast %cst_68 : f32 to vector<8x1xf32>
    %172 = arith.divf %170, %171 : vector<8x1xf32>
    %cst_69 = arith.constant 9.99999996E-13 : f32
    %173 = vector.broadcast %cst_69 : f32 to vector<8x1xf32>
    %174 = arith.addf %172, %173 : vector<8x1xf32>
    %175 = math.rsqrt %174 : vector<8x1xf32>
    %176 = vector.broadcast %175 : vector<8x1xf32> to vector<8x32xf32>
    %177 = arith.mulf %167, %176 : vector<8x32xf32>
    %178 = vector.shape_cast %159 : vector<32xf32> to vector<1x32xf32>
    %179 = vector.broadcast %178 : vector<1x32xf32> to vector<8x32xf32>
    %180 = arith.mulf %179, %177 : vector<8x32xf32>
    %181 = vector.shape_cast %161 : vector<32xf32> to vector<1x32xf32>
    %182 = vector.broadcast %181 : vector<1x32xf32> to vector<8x32xf32>
    %183 = arith.addf %180, %182 : vector<8x32xf32>
    %c0_70 = arith.constant 0 : index
    %c0_71 = arith.constant 0 : index
    %c0_72 = arith.constant 0 : index
    %184 = vector.load %arg18[%c0_70, %c0_71, %c0_72] : memref<1x8x32xf32, #tpu.memory_space<vmem>>, vector<1x8x32xf32>
    %185 = vector.shape_cast %184 : vector<1x8x32xf32> to vector<8x32xf32>
    %186 = vector.shape_cast %183 : vector<8x32xf32> to vector<1x8x32xf32>
    tpu.vector_store %arg18[%c0_70, %c0_71, %c0_72], %186 {strides = array<i32>} : memref<1x8x32xf32, #tpu.memory_space<vmem>>, vector<1x8x32xf32>,
    return
  }
  func.func @transform_0(%arg0: i32, %arg1: i32) -> (i32, i32, i32) {
    %c0_i32 = arith.constant 0 : i32
    %c0_i32_0 = arith.constant 0 : i32
    %c0_i32_1 = arith.constant 0 : i32
    return %arg0, %c0_i32, %c0_i32_0 : i32, i32, i32
  }
  func.func @transform_1(%arg0: i32, %arg1: i32) -> (i32, i32, i32) {
    %c0_i32 = arith.constant 0 : i32
    %c0_i32_0 = arith.constant 0 : i32
    %c0_i32_1 = arith.constant 0 : i32
    return %arg0, %c0_i32, %c0_i32_0 : i32, i32, i32
  }
  func.func @transform_2(%arg0: i32, %arg1: i32) -> (i32, i32) {
    %c0_i32 = arith.constant 0 : i32
    %c0_i32_0 = arith.constant 0 : i32
    %c0_i32_1 = arith.constant 0 : i32
    return %c0_i32, %c0_i32_0 : i32, i32
  }
  func.func @transform_3(%arg0: i32, %arg1: i32) -> (i32, i32) {
    %c0_i32 = arith.constant 0 : i32
    %c0_i32_0 = arith.constant 0 : i32
    %c0_i32_1 = arith.constant 0 : i32
    return %c0_i32, %c0_i32_0 : i32, i32
  }
  func.func @transform_4(%arg0: i32, %arg1: i32) -> (i32, i32) {
    %c0_i32 = arith.constant 0 : i32
    %c0_i32_0 = arith.constant 0 : i32
    %c0_i32_1 = arith.constant 0 : i32
    return %c0_i32, %c0_i32_0 : i32, i32
  }
  func.func @transform_5(%arg0: i32, %arg1: i32) -> (i32, i32) {
    %c0_i32 = arith.constant 0 : i32
    %c0_i32_0 = arith.constant 0 : i32
    %c0_i32_1 = arith.constant 0 : i32
    return %c0_i32, %c0_i32_0 : i32, i32
  }
  func.func @transform_6(%arg0: i32, %arg1: i32) -> (i32, i32) {
    %c0_i32 = arith.constant 0 : i32
    %c0_i32_0 = arith.constant 0 : i32
    %c0_i32_1 = arith.constant 0 : i32
    return %c0_i32, %c0_i32_0 : i32, i32
  }
  func.func @transform_7(%arg0: i32, %arg1: i32) -> (i32, i32) {
    %c0_i32 = arith.constant 0 : i32
    %c0_i32_0 = arith.constant 0 : i32
    %c0_i32_1 = arith.constant 0 : i32
    return %c0_i32, %c0_i32_0 : i32, i32
  }
  func.func @transform_8(%arg0: i32, %arg1: i32) -> (i32, i32) {
    %c0_i32 = arith.constant 0 : i32
    %c0_i32_0 = arith.constant 0 : i32
    %c0_i32_1 = arith.constant 0 : i32
    return %c0_i32, %c0_i32_0 : i32, i32
  }
  func.func @transform_9(%arg0: i32, %arg1: i32) -> (i32, i32) {
    %c0_i32 = arith.constant 0 : i32
    %c0_i32_0 = arith.constant 0 : i32
    %c0_i32_1 = arith.constant 0 : i32
    return %c0_i32, %c0_i32_0 : i32, i32
  }
  func.func @transform_10(%arg0: i32, %arg1: i32) -> (i32, i32) {
    %c0_i32 = arith.constant 0 : i32
    %c0_i32_0 = arith.constant 0 : i32
    %c0_i32_1 = arith.constant 0 : i32
    return %c0_i32, %c0_i32_0 : i32, i32
  }
  func.func @transform_11(%arg0: i32, %arg1: i32) -> (i32, i32) {
    %c0_i32 = arith.constant 0 : i32
    %c0_i32_0 = arith.constant 0 : i32
    %c0_i32_1 = arith.constant 0 : i32
    return %c0_i32, %c0_i32_0 : i32, i32
  }
  func.func @transform_12(%arg0: i32, %arg1: i32) -> (i32, i32) {
    %c0_i32 = arith.constant 0 : i32
    %c0_i32_0 = arith.constant 0 : i32
    %c0_i32_1 = arith.constant 0 : i32
    return %c0_i32, %c0_i32_0 : i32, i32
  }
  func.func @transform_13(%arg0: i32, %arg1: i32) -> (i32, i32) {
    %c0_i32 = arith.constant 0 : i32
    %c0_i32_0 = arith.constant 0 : i32
    %c0_i32_1 = arith.constant 0 : i32
    return %c0_i32, %c0_i32_0 : i32, i32
  }
  func.func @transform_14(%arg0: i32, %arg1: i32) -> (i32, i32) {
    %c0_i32 = arith.constant 0 : i32
    %c0_i32_0 = arith.constant 0 : i32
    %c0_i32_1 = arith.constant 0 : i32
    return %c0_i32, %c0_i32_0 : i32, i32
  }
  func.func @transform_15(%arg0: i32, %arg1: i32) -> (i32, i32) {
    %c0_i32 = arith.constant 0 : i32
    %c0_i32_0 = arith.constant 0 : i32
    %c0_i32_1 = arith.constant 0 : i32
    return %c0_i32, %c0_i32_0 : i32, i32
  }
  func.func @transform_16(%arg0: i32, %arg1: i32) -> (i32, i32, i32) {
    %c0_i32 = arith.constant 0 : i32
    %c0_i32_0 = arith.constant 0 : i32
    return %arg0, %arg1, %c0_i32 : i32, i32, i32
  }
}

</mosaic_0001>

<bundles_post_ra>
// kernel: tpu_custom_call.1
= control target key start
LH: loop header
LB: loop body
LE: loop exit
PB: predicated region body
PF: predicated region fallthrough
CT: control target
= control target key end

     0   :  { %s2828_s0 = inlined_call_operand.vmem [shape: f32[2,8,32], index: 0, kind: input, shape index: {}]   ;;  %s2829_s1 = inlined_call_operand.vmem [shape: s32[2,1,8], index: 1, kind: input, shape index: {}]   ;;  %s2830_s2 = inlined_call_operand.vmem [shape: bf16[32,32], index: 2, kind: input, shape index: {}]   ;;  %s2831_s3 = inlined_call_operand.hbm [shape: f32[1,32], index: 3, kind: input, shape index: {}]   ;;  %s2832_s4 = inlined_call_operand.vmem [shape: bf16[32,64], index: 4, kind: input, shape index: {}]   ;;  %s2833_s5 = inlined_call_operand.hbm [shape: f32[1,64], index: 5, kind: input, shape index: {}]   ;;  %s2834_s6 = inlined_call_operand.hbm [shape: bf16[32,32], index: 6, kind: input, shape index: {}]   ;;  %s2835_s7 = inlined_call_operand.hbm [shape: f32[1,32], index: 7, kind: input, shape index: {}]   ;;  %s2836_s8 = inlined_call_operand.hbm [shape: f32[1,32], index: 8, kind: input, shape index: {}]   ;;  %s2837_s9 = inlined_call_operand.hbm [shape: f32[1,32], index: 9, kind: input, shape index: {}]   ;;  %s2838_s10 = inlined_call_operand.vmem [shape: bf16[32,64], index: 10, kind: input, shape index: {}]   ;;  %s2839_s11 = inlined_call_operand.vmem [shape: f32[1,64], index: 11, kind: input, shape index: {}]   ;;  %s2840_s12 = inlined_call_operand.vmem [shape: bf16[64,32], index: 12, kind: input, shape index: {}]   ;;  %s2841_s13 = inlined_call_operand.vmem [shape: f32[1,32], index: 13, kind: input, shape index: {}]   ;;  %s2842_s14 = inlined_call_operand.vmem [shape: f32[1,32], index: 14, kind: input, shape index: {}]   ;;  %s2843_s15 = inlined_call_operand.vmem [shape: f32[1,32], index: 15, kind: input, shape index: {}]   ;;  %s2844_s16 = inlined_call_operand.hbm [shape: f32[2,8,32], index: 16, kind: output, shape index: {}]  }
   0x1   :  { %2860 = sst [smem:[#allocation30_spill]] %s2828_s0 }
   0x2   :  { %2861 = sst [smem:[#allocation31_spill]] %s2831_s3 }
   0x3   :  { %2862 = sst [smem:[#allocation32_spill]] %s2833_s5 }
   0x4   :  { %2863 = sst [smem:[#allocation33_spill]] %s2835_s7 }
   0x5   :  { %2864 = sst [smem:[#allocation34_spill]] %s2842_s14 }
   0x6   :  { %2865 = sst [smem:[#allocation35_spill]] %s2843_s15 }
   0x7   :  { %2866 = sst [smem:[#allocation36_spill]] %s2844_s16 }
   0x8   :  { %21 = vsyncpa [#allocation5], 0 }
   0x9   :  { %22 = vsyncpa [#allocation8], 0 }
   0xa   :  { %23 = vsyncpa [#allocation11], 0 }
   0xb   :  { %24 = vsyncpa [#allocation14], 0 }
   0xc   :  { %25 = vsyncpa [#allocation6], 0 }
   0xd   :  { %27 = vsyncpa [#allocation6 + $0x1], 0  ;;  %s2410_s21 = smov 0   ;;  %s2412_s22 = smov 0  }
   0xe   :  { %s2414_s23 = smov 0   ;;  %s2416_s24 = smov 0  }
   0xf   :  { %s2418_s25 = smov 0   ;;  %s2420_s26 = smov 0  }
  0x10 LB: > { %2867 = sst [smem:[#allocation21_spill]] %s2285_s21  ;;  %s1696_s27 = sadd.s32 4294967295, %s2305_s26   ;;  %s2305_s26 = sphi %s2420_s26, %s33_s26   ;;  %s2301_s25 = sphi %s2418_s25, %s2902_s25   ;;  %s2297_s24 = sphi %s2416_s24, %s2901_s24   ;;  %s2293_s23 = sphi %s2414_s23, %s2900_s23   ;;  %s2289_s22 = sphi %s2412_s22, %s2899_s22   ;;  %s2285_s21 = sphi %s2410_s21, %s2898_s21  }
  0x11   : > { %2868 = sst [smem:[#allocation22_spill]] %s2289_s22  ;;  %s1697_s28 = sadd.s32 4294967294, %s2305_s26  }
  0x12   : > { %2869 = sst [smem:[#allocation23_spill]] %s2293_s23  ;;  %s45_s29 = sadd.s32 1, %s2301_s25 }
  0x13   : > { %2870 = sst [smem:[#allocation24_spill]] %s2301_s25  ;;  %s400_s30 = sadd.s32 1, %s2293_s23 }
  0x14   : > { %2871 = sst [smem:[#allocation25_spill]] %s2305_s26  ;;  %p47_p0 = scmp.ge.s32.totalorder %s45_s29, 2 }
  0x15   : > { %p410_p1 = scmp.ne.s32.totalorder %s2293_s23, %s2289_s22  ;;  %p411_p2 = scmp.eq.s32.totalorder %s1696_s27, 1 }
  0x16   : > { %p416_p3 = scmp.ne.s32.totalorder %s2289_s22, %s2285_s21  ;;  %s2904_s29 = smov (%p47_p0, %s45_s29), 0 }
  0x17   : > { %2872 = sst [smem:[#allocation26_spill]] %s2904_s29  ;;  %p2450_p4 = por %p411_p2, %p410_p1 }
  0x18   : > { %p417_p5 = scmp.eq.s32.totalorder %s1697_s28, 1  ;;  %s395_s17 = ssub.s32 %s2301_s25, %s2904_s29 }
  0x19   : > { %s2873_s0 = scalar_select %p2450_p4, 1, 0 }
  0x1a   : > { %p1698_p6 = scmp.ge.s32.totalorder %s2305_s26, 1  ;;  %p398_p7 = scmp.eq.s32.totalorder %s395_s17, 0 }
  0x1b   : > { %2874 = sst [smem:[#allocation27_spill]] %s2873_s0  ;;  %p2457_p8 = por %p417_p5, %p416_p3 }
  0x1c   : > { %p424_p9 = scmp.lt.s32.totalorder %s2305_s26, 3  ;;  %p2469_p11 = scmp.eq.s32.totalorder %s1696_s27, 0 }
  0x1d   : > { %s2875_s18 = scalar_select %p2457_p8, 1, 0 }
  0x1e   : > { %s2463_s19 = scalar_select %p398_p7, %s2293_s23, %s400_s30  }
  0x1f   : > { %2876 = sst [smem:[#allocation28_spill]] %s2875_s18  ;;  %p2465_p10 = pnand %p1698_p6, %p424_p9 }
  0x20   : > { %2877 = sst [smem:[#allocation29_spill]] %s2463_s19  ;;  %s2307_s28 = smov [#allocation7]  }
  0x21   : > { %s2878_s20 = scalar_select %p2465_p10, 1, 0 }
  0x22   : > { %s2879_s21 = scalar_select %p2469_p11, 1, 0 }
  0x23   : > { %p1908_p12 = pneg %p2465_p10  ;;  %s454_s17 = sshll.u32 %s2307_s28, 4  ;;  %s455_s17 = int_to_ptr.vmem [resolvable:$true] %s454_s17 }
  0x24   : > { %s2308_s29 = smov [#allocation10]   ;;  %s2881_s5 = sld [smem:[#allocation32_spill]] }
  0x25   : > { %s478_s25 = sshll.u32 %s2308_s29, 4  ;;  %p2477_p13 = pnand %p2469_p11, %p1908_p12  ;;  %s2481_s25 = int_to_ptr.vmem [resolvable:$true] %s478_s25 }
  0x27   : > { %p2491_p1 = pneg %p2477_p13 }
  0x2a   : > { %s2043_s23 = scalar_lea.hbm %s2881_s5, 16 }
  0x2b   : > { %p2044_p0 = scmp.ne.s32.totalorder %s2881_s5, %s2043_s23  ;;  %p2050_p5 = scmp.lt.u32.totalorder %s2043_s23, %s2881_s5 }
  0x2d   : > { %p2046_p2 = pnand %p2491_p1, %p2044_p0 }
  0x2f   : > { %p2047_p3 = pneg %p2046_p2 }
  0x31   : > { %p2052_p6 = pnand %p2050_p5, %p2047_p3 }
  0x33   : > { %2055 = shalt.err (!%p2052_p6)
}
  0x34   : > { %s2056_s19 = scalar_lea.vmem %s455_s17, 16  ;;  %s2063_s26 = scalar_lea.vmem %s455_s17, 32 }
  0x35   : > { %p2057_p7 = scmp.ne.s32.totalorder %s455_s17, %s2056_s19  ;;  %p2064_p8 = scmp.lt.s32.totalorder %s455_s17, %s455_s17 }
  0x36   : > { %p2065_p4 = scmp.lt.s32.totalorder %s2063_s26, %s2056_s19 }
  0x37   : > { %p2059_p9 = pnand %p2057_p7, %p2491_p1 }
  0x38   : > { %p2066_p11 = por %p2065_p4, %p2064_p8 }
  0x39   : > { %p2060_p12 = pneg %p2059_p9 }
  0x3b   : > { %p2067_p10 = pnand %p2066_p11, %p2060_p12 }
  0x3d   : > { %2070 = shalt.err (!%p2067_p10)
}
  0x3e   : > { %1914 = dma.hbm_to_vmem [thread:$0]  (!%p2477_p13), %s2881_s5, 16, %s455_s17, [#allocation8]  }
  0x3f   : > { %s2883_s7 = sld [smem:[#allocation33_spill]] }
  0x45   : > { %s2071_s29 = scalar_lea.hbm %s2883_s7, 16 }
  0x46   : > { %p2072_p0 = scmp.ne.s32.totalorder %s2883_s7, %s2071_s29  ;;  %p2078_p8 = scmp.lt.u32.totalorder %s2071_s29, %s2883_s7 }
  0x48   : > { %p2074_p2 = pnand %p2072_p0, %p2491_p1 }
  0x4a   : > { %p2075_p4 = pneg %p2074_p2 }
  0x4c   : > { %p2080_p10 = pnand %p2078_p8, %p2075_p4 }
  0x4e   : > { %2083 = shalt.err (!%p2080_p10)
}
  0x4f   : > { %s2084_s17 = scalar_lea.vmem %s2481_s25, 16  ;;  %s2091_s14 = scalar_lea.vmem %s2481_s25, 32 }
  0x50   : > { %p2085_p11 = scmp.ne.s32.totalorder %s2481_s25, %s2084_s17  ;;  %p2092_p6 = scmp.lt.s32.totalorder %s2481_s25, %s2481_s25 }
  0x51   : > { %p2093_p7 = scmp.lt.s32.totalorder %s2091_s14, %s2084_s17 }
  0x52   : > { %p2087_p3 = pnand %p2085_p11, %p2491_p1 }
  0x53   : > { %p2094_p9 = por %p2093_p7, %p2092_p6 }
  0x54   : > { %p2088_p5 = pneg %p2087_p3 }
  0x56   : > { %p2095_p12 = pnand %p2094_p9, %p2088_p5 }
  0x58   : > { %2098 = shalt.err (!%p2095_p12)
}
  0x59   : > { %1920 = dma.hbm_to_vmem [thread:$0]  (!%p2477_p13), %s2883_s7, 16, %s2481_s25, [#allocation11]  }
  0x5a   : > { %s2309_s27 = smov [#allocation4]   ;;  %s2310_s23 = smov [#allocation9]  }
  0x5b   : > { %s440_s16 = sshll.u32 %s2309_s27, 4  ;;  %s464_s29 = sshll.u32 %s2310_s23, 4  ;;  %s441_s16 = int_to_ptr.vmem [resolvable:$true] %s440_s16  ;;  %s465_s29 = int_to_ptr.vmem [resolvable:$true] %s464_s29 }
  0x5c   : > { %s2884_s3 = sld [smem:[#allocation31_spill]] }
  0x62   : > { %s2099_s17 = scalar_lea.hbm %s2884_s3, 16 }
  0x63   : > { %p2100_p0 = scmp.ne.s32.totalorder %s2884_s3, %s2099_s17  ;;  %p2106_p8 = scmp.lt.u32.totalorder %s2099_s17, %s2884_s3 }
  0x65   : > { %p2102_p2 = pnand %p2100_p0, %p2491_p1 }
  0x67   : > { %p2103_p4 = pneg %p2102_p2 }
  0x69   : > { %p2108_p10 = pnand %p2106_p8, %p2103_p4 }
  0x6b   : > { %2111 = shalt.err (!%p2108_p10)
}
  0x6c   : > { %s2112_s25 = scalar_lea.vmem %s441_s16, 16  ;;  %s2119_s18 = scalar_lea.vmem %s441_s16, 32 }
  0x6d   : > { %p2113_p11 = scmp.ne.s32.totalorder %s441_s16, %s2112_s25  ;;  %p2120_p6 = scmp.lt.s32.totalorder %s441_s16, %s441_s16 }
  0x6e   : > { %p2121_p7 = scmp.lt.s32.totalorder %s2119_s18, %s2112_s25 }
  0x6f   : > { %p2115_p3 = pnand %p2113_p11, %p2491_p1 }
  0x70   : > { %p2122_p9 = por %p2121_p7, %p2120_p6 }
  0x71   : > { %p2116_p5 = pneg %p2115_p3 }
  0x73   : > { %p2123_p12 = pnand %p2122_p9, %p2116_p5 }
  0x75   : > { %2126 = shalt.err (!%p2123_p12)
}
  0x76   : > { %1911 = dma.hbm_to_vmem [thread:$0]  (!%p2477_p13), %s2884_s3, 16, %s441_s16, [#allocation5]  }
  0x77   : > { %s2127_s19 = scalar_lea.hbm %s2834_s6, 256 }
  0x78   : > { %p2128_p0 = scmp.ne.s32.totalorder %s2834_s6, %s2127_s19  ;;  %p2134_p8 = scmp.lt.u32.totalorder %s2127_s19, %s2834_s6 }
  0x7a   : > { %p2130_p2 = pnand %p2128_p0, %p2491_p1 }
  0x7c   : > { %p2131_p4 = pneg %p2130_p2 }
  0x7e   : > { %p2136_p10 = pnand %p2134_p8, %p2131_p4 }
  0x80   : > { %2139 = shalt.err (!%p2136_p10)
}
  0x81   : > { %s2140_s25 = scalar_lea.vmem %s465_s29, 256  ;;  %p2148_p6 = scmp.lt.s32.totalorder %s465_s29, %s465_s29 }
  0x82   : > { %p2141_p11 = scmp.ne.s32.totalorder %s465_s29, %s2140_s25  ;;  %p2149_p7 = scmp.lt.s32.totalorder %s2140_s25, %s2140_s25 }
  0x84   : > { %p2143_p3 = pnand %p2141_p11, %p2491_p1  ;;  %p2150_p9 = por %p2149_p7, %p2148_p6 }
  0x86   : > { %p2144_p5 = pneg %p2143_p3 }
  0x88   : > { %p2151_p12 = pnand %p2150_p9, %p2144_p5 }
  0x8a   : > { %2154 = shalt.err (!%p2151_p12)
}
  0x8b   : > { %s2311_s16 = smov 64   ;;  %s2312_s18 = smov 4  }
  0x8c   : > { %1917 = dma.hbm_to_vmem [thread:$0]  (!%p2477_p13), %s2834_s6, 256, %s465_s29, [#allocation8], %s2311_s16, %s2311_s16, %s2312_s18  }
  0x8d   : > { %s2313_s0 = smov [#allocation12]   ;;  %s2314_s19 = smov [#allocation13]  }
  0x8e   : > { %s489_s23 = sshll.u32 %s2313_s0, 4  ;;  %s500_s26 = sshll.u32 %s2314_s19, 4  ;;  %s490_s23 = int_to_ptr.vmem [resolvable:$true] %s489_s23  ;;  %s501_s26 = int_to_ptr.vmem [resolvable:$true] %s500_s26 }
  0x8f   : > { %s2155_s15 = scalar_lea.hbm %s2836_s8, 16 }
  0x90   : > { %p2156_p0 = scmp.ne.s32.totalorder %s2836_s8, %s2155_s15  ;;  %p2162_p8 = scmp.lt.u32.totalorder %s2155_s15, %s2836_s8 }
  0x92   : > { %p2158_p2 = pnand %p2156_p0, %p2491_p1 }
  0x94   : > { %p2159_p4 = pneg %p2158_p2 }
  0x96   : > { %p2164_p10 = pnand %p2162_p8, %p2159_p4 }
  0x98   : > { %2167 = shalt.err (!%p2164_p10)
}
  0x99   : > { %s2168_s29 = scalar_lea.vmem %s490_s23, 16  ;;  %s2175_s16 = scalar_lea.vmem %s490_s23, 32 }
  0x9a   : > { %p2169_p11 = scmp.ne.s32.totalorder %s490_s23, %s2168_s29  ;;  %p2176_p6 = scmp.lt.s32.totalorder %s490_s23, %s490_s23 }
  0x9b   : > { %p2177_p7 = scmp.lt.s32.totalorder %s2175_s16, %s2168_s29 }
  0x9c   : > { %p2171_p3 = pnand %p2169_p11, %p2491_p1 }
  0x9d   : > { %p2178_p9 = por %p2177_p7, %p2176_p6 }
  0x9e   : > { %p2172_p5 = pneg %p2171_p3 }
  0xa0   : > { %p2179_p12 = pnand %p2178_p9, %p2172_p5 }
  0xa2   : > { %2182 = shalt.err (!%p2179_p12)
}
  0xa3   : > { %1923 = dma.hbm_to_vmem [thread:$0]  (!%p2477_p13), %s2836_s8, 16, %s490_s23, [#allocation11]  }
  0xa4   : > { %s2183_s5 = scalar_lea.hbm %s2837_s9, 16 }
  0xa5   : > { %p2184_p0 = scmp.ne.s32.totalorder %s2837_s9, %s2183_s5  ;;  %p2190_p8 = scmp.lt.u32.totalorder %s2183_s5, %s2837_s9 }
  0xa7   : > { %p2186_p2 = pnand %p2184_p0, %p2491_p1 }
  0xa9   : > { %p2187_p4 = pneg %p2186_p2 }
  0xab   : > { %p2192_p10 = pnand %p2190_p8, %p2187_p4 }
  0xad   : > { %2195 = shalt.err (!%p2192_p10)
}
  0xae   : > { %s2196_s14 = scalar_lea.vmem %s501_s26, 16  ;;  %s2203_s23 = scalar_lea.vmem %s501_s26, 32 }
  0xaf   : > { %p2197_p11 = scmp.ne.s32.totalorder %s501_s26, %s2196_s14  ;;  %p2204_p6 = scmp.lt.s32.totalorder %s501_s26, %s501_s26 }
  0xb0   : > { %p2205_p7 = scmp.lt.s32.totalorder %s2203_s23, %s2196_s14 }
  0xb1   : > { %p2199_p3 = pnand %p2197_p11, %p2491_p1 }
  0xb2   : > { %p2206_p9 = por %p2205_p7, %p2204_p6 }
  0xb3   : > { %p2200_p5 = pneg %p2199_p3 }
  0xb5   : > { %p2207_p12 = pnand %p2206_p9, %p2200_p5 }
  0xb7   : > { %2210 = shalt.err (!%p2207_p12)
}
  0xb8   : > { %1926 = dma.hbm_to_vmem [thread:$0]  (!%p2477_p13), %s2837_s9, 16, %s501_s26, [#allocation14]  }
  0xb9   : > { %p2885_p0 = scmp.ne.s32.totalorder %s2878_s20, 0 }
  0xba   : > { %p2886_p2 = scmp.ne.s32.totalorder (!%p2885_p0), %s2879_s21, 0 }
  0xbb   : > { %544 = sbr.rel (%p2885_p0) target bundleno = 2731 (0xaab), region = 84 }
  0xc2   : > { %2264 = dma.done.wait (%p2886_p2), [#allocation5], 16  }
  0xc3   : > { %2266 = vsyncadd (%p2886_p2), [#allocation5], 4294967280 }
  0xc4   : > { %2268 = dma.done.wait (%p2886_p2), [#allocation8], 272  }
  0xc5   : > { %2270 = vsyncadd (%p2886_p2), [#allocation8], 4294967024 }
  0xc6   : > { %2272 = dma.done.wait (%p2886_p2), [#allocation11], 32  }
  0xc7   : > { %2274 = vsyncadd (%p2886_p2), [#allocation11], 4294967264 }
  0xc8   : > { %2276 = dma.done.wait (%p2886_p2), [#allocation14], 16  }
  0xc9   : > { %2278 = vsyncadd (%p2886_p2), [#allocation14], 4294967280  ;;  %p616_p13 = scmp.lt.s32.totalorder %s2297_s24, 1  ;;  %v2315_v0 = vmov 0.0   ;;  %vm2316_vm0 = vmmov 0   ;;  %s2887_s26 = sld [smem:[#allocation30_spill]]  ;;  %v714_v33 = vlaneseq }
  0xca   : > { %1790 = vmatprep.subr.bf16.mxu1 %v2315_v0  ;;  %1794 = vmatprep.mubr.msk.bf16.mxu1 %vm2316_vm0, %v2315_v0  ;;  %v2009_v1 = vld [vmem:[%s2832_s4] sm:$0xff]   ;;  %v2010_v2 = vld [vmem:[%s2832_s4 + $0x8] sm:$0xff]   ;;  %vm653_vm1 = vcmask 261120   ;;  %vm698_vm2 = vcmask 257024   ;;  %vm790_vm3 = vcmask 64512   ;;  %s2317_s19 = smov 112  }
  0xcb   : > { %s2626_s20 = scalar_select %p616_p13, %s2297_s24, 1  ;;  %1806 = vmatprep.subr.bf16.mxu0 %v2315_v0  ;;  %1808 = vmatprep.mubr.msk.bf16.mxu0 %vm2316_vm0, %v2315_v0  ;;  %v2011_v4 = vld [vmem:[%s2830_s2] sm:$0xff]   ;;  %v2012_v6 = vld [vmem:[%s2830_s2 + $0x8] sm:$0xff]   ;;  %v715_v35 = vshrl.u32 %v714_v33, 7  ;;  %vm854_vm5 = vcmask 1043456   ;;  %vm1257_vm6 = vcmask 130048  }
  0xcc   : > { %1791 = vmatpush3.bf16.msra.mxu1 %v2009_v1  ;;  %v1715_v7 = vld [vmem:[#allocation7] ss:$0 sm:$0xff]  ;;  %v1720_v14 = vld [vmem:[#allocation4] ss:$0 sm:$0xff]  ;;  %s2318_s17 = smov 120   ;;  %s2319_s14 = smov 104  }
  0xcd   : > { %s1714_s21 = sshll.u32 %s2626_s20, 3  ;;  %1792 = vmatprep.subr.bf16.mxu1 %v2315_v0  ;;  %s622_s25 = scalar_lea.vmem %s2829_s1, %s2626_s20  ;;  %v716_v36 = vsub.s32 0, %v715_v35  ;;  %vm1260_vm7 = vcmask 195584   ;;  %vm1467_vm8 = vcmask 523264  }
  0xce   : > { %v710_v34 = vld [vmem:[%s622_s25] sm:$0x1]  ;;  %s2320_s20 = smov 96   ;;  %s2322_s30 = smov 16  }
  0xcf   : > { %s619_s29 = scalar_lea.vmem %s2887_s26, %s1714_s21  ;;  %vm711_vm4 = vcmp.eq.s32.totalorder %v710_v34, 0  ;;  %s2321_s21 = smov 8  }
  0xd0   : > { %v2641_v3 = vld [vmem:[%s619_s29] sm:$0xff]  ;;  %1793 = vmatpush3.bf16.msra.mxu1 %v2010_v2  ;;  %v712_v37 = vsel %vm711_vm4, -10000.0, %v2315_v0  ;;  %s2323_s28 = smov 24   ;;  %s2890_s16 = sld [smem:[#allocation34_spill]] }
  0xd1   : > { %v629_v5 = vpack.c.bf16 %v2641_v3, %v2641_v3  ;;  %1798 = vmatprep.subr.bf16.mxu1 %v2315_v0  ;;  %v717_v38 = vrot.slane %v712_v37, %v716_v36  ;;  %s2891_s7 = sld [smem:[#allocation35_spill]]  ;;  %s1753_s22 = sshll.u32 %s2297_s24, 7 }
  0xd2   : > { %s2324_s24 = smov [#allocation15]  }
  0xd3   : > { %1795 = vmatmul.mubr.msk.bf16.vlgmr.msra.gmra.mrb[0].mxu1 %vm653_vm1, %v629_v5  ;;  %s2215_s25 = sshll.u32 %s2324_s24, 4  ;;  %s2216_s25 = int_to_ptr.vmem [resolvable:$false] %s2215_s25 }
  0xd4   : > { %1799 = vmatpush3.bf16.msra.mxu1 %v2011_v4  ;;  %1802 = vmatprep.mubr.msk.bf16.mxu1 %vm2316_vm0, %v2315_v0 }
  0xd5   : > { %1800 = vmatprep.subr.bf16.mxu1 %v2315_v0 }
  0xd8   : > { %1801 = vmatpush3.bf16.msra.mxu1 %v2012_v6 }
  0xd9   : > { %1812 = vmatprep.subr.bf16.mxu1 %v2315_v0 }
  0xdb   : > { %1803 = vmatmul.mubr.msk.bf16.vlgmr.msra.gmra.mrb[4].mxu1 %vm653_vm1, %v629_v5 }
  0xdc   : > { %1814 = vmatprep.mubr.msk.bf16.mxu1 %vm2316_vm0, %v2315_v0 }
 0x1a6   : > { %v691_v8 = vpop.f32.mrb[0].mxu1 }
 0x1a7   : > { %v692_v9 = vadd.f32 %v1715_v7, %v691_v8  ;;  %v1796_v10 = vpop.f32.mrb[1].mxu1 }
 0x1a8   : > { %v694_v11 = vpop.f32.mrb[2].mxu1 }
 0x1a9   : > { %v2661_v12 = vpack.c.bf16 %v692_v9, %v692_v9  ;;  %v1797_v13 = vpop.f32.mrb[3].mxu1 }
 0x1ab   : > { %699 = vst.msk [vmem:[#allocation2] sm:$0xf] %vm698_vm2, %v2661_v12 }
 0x1ae   : > { %v781_v15 = vpop.f32.mrb[4].mxu1 }
 0x1af   : > { %v1804_v16 = vpop.f32.mrb[5].mxu1  ;;  %v782_v18 = vadd.f32 %v1720_v14, %v781_v15 }
 0x1b0   : > { %v784_v17 = vpop.f32.mrb[6].mxu1 }
 0x1b1   : > { %v1805_v19 = vpop.f32.mrb[7].mxu1  ;;  %v787_v23 = vpack.c.bf16 %v782_v18, %v782_v18 }
 0x1b2   : > { %v788_v20 = vld [vmem:[#allocation2] sm:$0xf] }
 0x1b3   : > { %v795_v21 = vsel %vm790_vm3, %v788_v20, 0  ;;  %v1726_v22 = vcombine.low %v788_v20, %v788_v20 }
 0x1b4   : > { %1807 = vmatpush3.bf16.xpose.msra.mxu0 %v795_v21 }
 0x1b5   : > { %1021 = vrot.lane.b32.xlu1 %v1726_v22, %s2317_s19  ;;  %905 = vrot.lane.b32.xlu0 %v1726_v22, %s2318_s17 }
 0x1b6   : > { %1818 = vmatprep.subr.bf16.mxu0 %v2315_v0 }
 0x1b9   : > { %1019 = vrot.lane.b32.xlu1 %v787_v23, %s2317_s19  ;;  %900 = vrot.lane.b32.xlu0 %v787_v23, %s2318_s17 }
 0x1bb   : > { %1809 = vmatmul.mubr.msk.bf16.vlgmr.msra.gmra.mrb[0].mxu0 %vm790_vm3, %v787_v23 }
 0x1bc   : > { %1820 = vmatprep.mubr.msk.bf16.mxu0 %vm2316_vm0, %v2315_v0 }
 0x1bd   : > { %1132 = vrot.lane.b32.xlu1 %v787_v23, %s2319_s14  ;;  %1134 = vrot.lane.b32.xlu0 %v1726_v22, %s2319_s14 }
 0x227   : > { %v906_v24 = vpop.permute.xlu0 %905  ;;  %v1022_v26 = vpop.permute.xlu1 %1021 }
 0x228   : > { %v911_v25 = vsel %vm790_vm3, %v906_v24, 0  ;;  %v1027_v28 = vsel %vm790_vm3, %v1022_v26, 0 }
 0x229   : > { %1819 = vmatpush3.bf16.xpose.msra.mxu0 %v911_v25 }
 0x22a   : > { %1830 = vmatprep.subr.bf16.mxu0 %v2315_v0 }
 0x22b   : > { %v901_v27 = vpop.permute.xlu0 %900  ;;  %v1020_v30 = vpop.permute.xlu1 %1019 }
 0x22f   : > { %v1135_v29 = vpop.permute.xlu0 %1134  ;;  %v1133_v32 = vpop.permute.xlu1 %1132 }
 0x230   : > { %1821 = vmatmul.mubr.msk.bf16.vlgmr.msra.gmra.mrb[4].mxu0 %vm790_vm3, %v901_v27  ;;  %v1140_v31 = vsel %vm790_vm3, %v1135_v29, 0 }
 0x231   : > { %1831 = vmatpush3.bf16.xpose.msra.mxu0 %v1027_v28  ;;  %1832 = vmatprep.mubr.msk.bf16.mxu0 %vm2316_vm0, %v2315_v0 }
 0x232   : > { %1842 = vmatprep.subr.bf16.mxu0 %v2315_v0 }
 0x238   : > { %1833 = vmatmul.mubr.msk.bf16.vlgmr.msra.gmra.mrb[8].mxu0 %vm790_vm3, %v1020_v30 }
 0x239   : > { %1843 = vmatpush3.bf16.xpose.msra.mxu0 %v1140_v31  ;;  %1844 = vmatprep.mubr.msk.bf16.mxu0 %vm2316_vm0, %v2315_v0 }
 0x23a   : > { %1854 = vmatprep.subr.bf16.mxu0 %v2315_v0 }
 0x240   : > { %1845 = vmatmul.mubr.msk.bf16.vlgmr.msra.gmra.mrb[12].mxu0 %vm790_vm3, %v1133_v32 }
 0x241   : > { %1858 = vmatprep.mubr.msk.bf16.mxu0 %vm2316_vm0, %v2315_v0 }
 0x28e   : > { %v831_v39 = vpop.f32.mrb[0].mxu0 }
 0x28f   : > { %v837_v40 = vmul.f32 0.35355338, %v831_v39  ;;  %v1810_v41 = vpop.f32.mrb[1].mxu0 }
 0x290   : > { %v834_v42 = vpop.f32.mrb[2].mxu0 }
 0x291   : > { %v1811_v43 = vpop.f32.mrb[3].mxu0  ;;  %v838_v44 = vadd.f32 %v837_v40, %v717_v38 }
 0x293   : > { %v839_v45 = vsel %vm790_vm3, %v838_v44, -inf }
 0x294   : > { %840 = vmax.xlane.f32.xlu0 %v839_v45 }
 0x303   : > { %v947_v46 = vpop.f32.mrb[4].mxu0 }
 0x304   : > { %v953_v47 = vmul.f32 0.35355338, %v947_v46  ;;  %v1822_v48 = vpop.f32.mrb[5].mxu0 }
 0x305   : > { %v950_v49 = vpop.f32.mrb[6].mxu0 }
 0x306   : > { %v1823_v50 = vpop.f32.mrb[7].mxu0  ;;  %v954_v51 = vadd.f32 %v953_v47, %v717_v38 }
 0x308   : > { %v955_v52 = vsel %vm790_vm3, %v954_v51, -inf }
 0x309   : > { %956 = vmax.xlane.f32.xlu1 %v955_v52 }
 0x30b   : > { %v1063_v53 = vpop.f32.mrb[8].mxu0 }
 0x30c   : > { %v1069_v54 = vmul.f32 0.35355338, %v1063_v53  ;;  %v1834_v55 = vpop.f32.mrb[9].mxu0 }
 0x30d   : > { %v1066_v56 = vpop.f32.mrb[10].mxu0  ;;  %v2015_v55 = vld [vmem:[#allocation9] sm:$0xff]  }
 0x30e   : > { %v1835_v57 = vpop.f32.mrb[11].mxu0  ;;  %v1070_v58 = vadd.f32 %v1069_v54, %v717_v38  ;;  %1855 = vmatpush3.bf16.msra.mxu0 %v2015_v55 }
 0x30f   : > { %1856 = vmatprep.subr.bf16.mxu0 %v2315_v0 }
 0x310   : > { %v1071_v59 = vsel %vm790_vm3, %v1070_v58, -inf }
 0x311   : > { %1072 = vmax.xlane.f32.xlu0 %v1071_v59  ;;  %v2016_v59 = vld [vmem:[#allocation9 + $0x8] sm:$0xff]  }
 0x312   : > { %1857 = vmatpush3.bf16.msra.mxu0 %v2016_v59 }
 0x313   : > { %v1176_v60 = vpop.f32.mrb[12].mxu0  ;;  %1870 = vmatprep.subr.bf16.mxu0 %v2315_v0 }
 0x314   : > { %v1182_v61 = vmul.f32 0.35355338, %v1176_v60  ;;  %v1846_v62 = vpop.f32.mrb[13].mxu0 }
 0x315   : > { %v1179_v63 = vpop.f32.mrb[14].mxu0 }
 0x316   : > { %v1847_v1 = vpop.f32.mrb[15].mxu0  ;;  %v1183_v2 = vadd.f32 %v1182_v61, %v717_v38 }
 0x318   : > { %v1184_v4 = vsel %vm790_vm3, %v1183_v2, -inf }
 0x319   : > { %1185 = vmax.xlane.f32.xlu0 %v1184_v4 }
 0x31a   : > { %703 = vrot.lane.b32.xlu1 %v2661_v12, %s2320_s20  ;;  %s2888_s20 = sld [smem:[#allocation22_spill]] }
 0x321   : > { %v841_v5 = vpop.xlane.xlu0 %840 }
 0x322   : > { %v842_v6 = vsub.f32 %v838_v44, %v841_v5 }
 0x324   : > { %v843_v7 = vmul.f32 1.442695, %v842_v6 }
 0x326   : > { %2023 = vpow2.f32 %v843_v7 }
 0x330   : > { %v2024_v8 = vpop.eup %2023 }
 0x331   : > { %v845_v9 = vsel %vm790_vm3, %v2024_v8, 0.0 }
 0x332   : > { %846 = vadd.xlane.f32.xlu0 %v845_v9 }
 0x396   : > { %v957_v10 = vpop.xlane.xlu1 %956 }
 0x397   : > { %v958_v11 = vsub.f32 %v954_v51, %v957_v10 }
 0x399   : > { %v959_v13 = vmul.f32 1.442695, %v958_v11 }
 0x39a   : > { %v704_v14 = vpop.permute.xlu1 %703 }
 0x39b   : > { %2025 = vpow2.f32 %v959_v13  ;;  %706 = vst.msk [vmem:[#allocation3] sm:$0xf] %vm698_vm2, %v704_v14 }
 0x39e   : > { %v1073_v15 = vpop.xlane.xlu0 %1072 }
 0x39f   : > { %v1074_v16 = vsub.f32 %v1070_v58, %v1073_v15 }
 0x3a1   : > { %v1075_v17 = vmul.f32 1.442695, %v1074_v16 }
 0x3a2   : > { %v789_v12 = vld [vmem:[#allocation3] sm:$0xf] }
 0x3a3   : > { %2027 = vpow2.f32 %v1075_v17  ;;  %v856_v18 = vsel %vm854_vm5, %v789_v12, 0  ;;  %v1728_v19 = vcombine.low %v789_v12, %v789_v12  ;;  %v1734_v12 = vld [vmem:[#allocation10] ss:$0 sm:$0xff] }
 0x3a4   : > { %1813 = vmatpush3.bf16.msra.mxu1 %v856_v18 }
 0x3a5   : > { %v2026_v20 = vpop.eup %2025  ;;  %970 = vrot.lane.b32.xlu1 %v1728_v19, %s2318_s17  ;;  %1824 = vmatprep.subr.bf16.mxu1 %v2315_v0  ;;  %s2892_s17 = sld [smem:[#allocation36_spill]] }
 0x3a6   : > { %v1186_v21 = vpop.xlane.xlu0 %1185  ;;  %v961_v22 = vsel %vm790_vm3, %v2026_v20, 0.0 }
 0x3a7   : > { %v1187_v23 = vsub.f32 %v1183_v2, %v1186_v21  ;;  %962 = vadd.xlane.f32.xlu0 %v961_v22 }
 0x3a9   : > { %v1188_v24 = vmul.f32 1.442695, %v1187_v23  ;;  %1196 = vrot.lane.b32.xlu1 %v1728_v19, %s2319_s14 }
 0x3ab   : > { %2029 = vpow2.f32 %v1188_v24  ;;  %s2780_s14 = scalar_lea.hbm %s2892_s17, %s1753_s22 }
 0x3ad   : > { %v2028_v25 = vpop.eup %2027 }
 0x3ae   : > { %v1077_v26 = vsel %vm790_vm3, %v2028_v25, 0.0 }
 0x3af   : > { %1078 = vadd.xlane.f32.xlu0 %v1077_v26 }
 0x3b5   : > { %v2030_v27 = vpop.eup %2029 }
 0x3b6   : > { %v1190_v28 = vsel %vm790_vm3, %v2030_v27, 0.0 }
 0x3b7   : > { %1191 = vadd.xlane.f32.xlu0 %v1190_v28 }
 0x3bf   : > { %v847_v29 = vpop.xlane.xlu0 %846 }
 0x3c0   : > { %2031 = vrcp.f32 %v847_v29 }
 0x3ca   : > { %v2032_v30 = vpop.eup %2031 }
 0x3cb   : > { %v849_v31 = vmul.f32 %v2032_v30, %v2024_v8  ;;  %v2017_v30 = vld [vmem:[%s2838_s10] sm:$0xff]  }
 0x3cd   : > { %1083 = vrot.lane.b32.xlu0 %v1728_v19, %s2317_s19  ;;  %v850_v32 = vpack.c.bf16 %v849_v31, %v849_v31  ;;  %v2019_v31 = vld [vmem:[%s2840_s12] sm:$0xff]  }
 0x3cf   : > { %1815 = vmatmul.mubr.msk.bf16.vlgmr.msra.gmra.mrb[8].mxu1 %vm790_vm3, %v850_v32  ;;  %v2020_v32 = vld [vmem:[%s2840_s12 + $0x8] sm:$0xff]  }
 0x3d0   : > { %1826 = vmatprep.mubr.msk.bf16.mxu1 %vm2316_vm0, %v2315_v0 }
 0x417   : > { %v971_v33 = vpop.permute.xlu1 %970 }
 0x418   : > { %v976_v34 = vsel %vm854_vm5, %v971_v33, 0 }
 0x419   : > { %1825 = vmatpush3.bf16.msra.mxu1 %v976_v34 }
 0x41a   : > { %1836 = vmatprep.subr.bf16.mxu1 %v2315_v0 }
 0x41b   : > { %v1197_v45 = vpop.permute.xlu1 %1196 }
 0x41c   : > { %v1202_v47 = vsel %vm854_vm5, %v1197_v45, 0  ;;  %v1740_v45 = vld [vmem:[%s2839_s11] ss:$0 sm:$0xff] }
 0x434   : > { %v963_v35 = vpop.xlane.xlu0 %962 }
 0x435   : > { %2033 = vrcp.f32 %v963_v35 }
 0x43c   : > { %v1079_v36 = vpop.xlane.xlu0 %1078 }
 0x43d   : > { %2035 = vrcp.f32 %v1079_v36 }
 0x43f   : > { %v2034_v37 = vpop.eup %2033 }
 0x440   : > { %v965_v38 = vmul.f32 %v2034_v37, %v2026_v20  ;;  %v1738_v37 = vld [vmem:[#allocation12] ss:$0 sm:$0xff] }
 0x442   : > { %v966_v39 = vpack.c.bf16 %v965_v38, %v965_v38 }
 0x444   : > { %1827 = vmatmul.mubr.msk.bf16.vlgmr.msra.gmra.mrb[12].mxu1 %vm790_vm3, %v966_v39  ;;  %v1192_v40 = vpop.xlane.xlu0 %1191  ;;  %v1739_v39 = vld [vmem:[#allocation13] ss:$0 sm:$0xff] }
 0x445   : > { %2037 = vrcp.f32 %v1192_v40  ;;  %1838 = vmatprep.mubr.msk.bf16.mxu1 %vm2316_vm0, %v2315_v0 }
 0x447   : > { %v2036_v41 = vpop.eup %2035 }
 0x448   : > { %v1081_v42 = vmul.f32 %v2036_v41, %v2028_v25  ;;  %v1084_v43 = vpop.permute.xlu0 %1083 }
 0x449   : > { %v1089_v44 = vsel %vm854_vm5, %v1084_v43, 0  ;;  %v2021_v43 = vld [vmem:[%s2840_s12 + $0x10] sm:$0xff]  }
 0x44a   : > { %1837 = vmatpush3.bf16.msra.mxu1 %v1089_v44  ;;  %v1082_v46 = vpack.c.bf16 %v1081_v42, %v1081_v42  ;;  %v2022_v44 = vld [vmem:[%s2840_s12 + $0x18] sm:$0xff]  }
 0x44b   : > { %1848 = vmatprep.subr.bf16.mxu1 %v2315_v0 }
 0x44d   : > { %1839 = vmatmul.mubr.msk.bf16.vlgmr.msra.gmra.mrb[16].mxu1 %vm790_vm3, %v1082_v46 }
 0x44e   : > { %1849 = vmatpush3.bf16.msra.mxu1 %v1202_v47  ;;  %1850 = vmatprep.mubr.msk.bf16.mxu1 %vm2316_vm0, %v2315_v0 }
 0x44f   : > { %v2038_v48 = vpop.eup %2037  ;;  %1862 = vmatprep.subr.bf16.mxu1 %v2315_v0 }
 0x450   : > { %v1194_v49 = vmul.f32 %v2038_v48, %v2030_v27 }
 0x452   : > { %v1195_v50 = vpack.c.bf16 %v1194_v49, %v1194_v49 }
 0x455   : > { %1851 = vmatmul.mubr.msk.bf16.vlgmr.msra.gmra.mrb[20].mxu1 %vm790_vm3, %v1195_v50 }
 0x456   : > { %1866 = vmatprep.mubr.msk.bf16.mxu1 %vm2316_vm0, %v2315_v0  ;;  %1863 = vmatpush3.bf16.msra.mxu1 %v2017_v30 }
 0x457   : > { %1864 = vmatprep.subr.bf16.mxu1 %v2315_v0 }
 0x4a2   : > { %v892_v51 = vpop.f32.mrb[8].mxu1 }
 0x4a3   : > { %v1816_v52 = vpop.f32.mrb[9].mxu1  ;;  %v898_v13 = vpack.c.bf16 %v892_v51, %v892_v51 }
 0x4a4   : > { %v895_v53 = vpop.f32.mrb[10].mxu1 }
 0x4a5   : > { %v1817_v54 = vpop.f32.mrb[11].mxu1 }
 0x517   : > { %v1012_v56 = vpop.f32.mrb[12].mxu1 }
 0x518   : > { %v1018_v57 = vpack.c.bf16 %v1012_v56, %v1012_v56  ;;  %v1828_v58 = vpop.f32.mrb[13].mxu1 }
 0x519   : > { %v1015_v60 = vpop.f32.mrb[14].mxu1 }
 0x51a   : > { %1246 = vrot.lane.b32.xlu1 %v1018_v57, %s2321_s21  ;;  %v1829_v61 = vpop.f32.mrb[15].mxu1  ;;  %s613_s21 = sand.u32 1, %s2888_s20   ;;  %s2217_s20 = scalar_lea.vmem %s2216_s25, 256 }
 0x51b   : > { %s1543_s23 = scalar_lea.sflag [#allocation6], %s613_s21 }
 0x520   : > { %v1125_v62 = vpop.f32.mrb[16].mxu1 }
 0x521   : > { %v1131_v63 = vpack.c.bf16 %v1125_v62, %v1125_v62  ;;  %v1840_v1 = vpop.f32.mrb[17].mxu1 }
 0x522   : > { %v1128_v2 = vpop.f32.mrb[18].mxu1 }
 0x523   : > { %1249 = vrot.lane.b32.xlu1 %v1131_v63, %s2322_s30  ;;  %v1841_v4 = vpop.f32.mrb[19].mxu1  ;;  %s1713_s30 = sshll.u32 %s613_s21, 3 }
 0x524   : > { %s615_s5 = scalar_lea.vmem [#allocation15], %s1713_s30 }
 0x525   : > { %s1557_s27 = sshll.u32 %s615_s5, 4  ;;  %s2782_s27 = int_to_ptr.vmem [resolvable:$true] %s1557_s27 }
 0x526   : > { %s2211_s15 = scalar_lea.vmem %s2782_s27, 128  ;;  %p2218_p11 = scmp.lt.s32.totalorder %s2782_s27, %s2216_s25 }
 0x527   : > { %p2212_p1 = scmp.ne.s32.totalorder %s2782_s27, %s2211_s15  ;;  %p2219_p3 = scmp.lt.s32.totalorder %s2217_s20, %s2211_s15 }
 0x528   : > { %v1238_v5 = vpop.f32.mrb[20].mxu1 }
 0x529   : > { %v1244_v6 = vpack.c.bf16 %v1238_v5, %v1238_v5  ;;  %v1852_v7 = vpop.f32.mrb[21].mxu1  ;;  %p2220_p5 = por %p2219_p3, %p2218_p11 }
 0x52a   : > { %v1241_v8 = vpop.f32.mrb[22].mxu1  ;;  %v1750_v7 = vld [vmem:[%s2890_s16] ss:$0 sm:$0xff] }
 0x52b   : > { %1252 = vrot.lane.b32.xlu1 %v1244_v6, %s2323_s28  ;;  %v1853_v9 = vpop.f32.mrb[23].mxu1  ;;  %s2889_s28 = sld [smem:[#allocation27_spill]] }
 0x52c   : > { %v1751_v9 = vld [vmem:[%s2891_s7] ss:$0 sm:$0xff] }
 0x531   : > { %p2893_p4 = scmp.ne.s32.totalorder %s2889_s28, 0 }
 0x533   : > { %p2213_p8 = pnand %p2212_p1, %p2893_p4 }
 0x535   : > { %p2214_p10 = pneg %p2213_p8 }
 0x537   : > { %p2221_p6 = pnand %p2220_p5, %p2214_p10 }
 0x58c   : > { %v1247_v10 = vpop.permute.xlu1 %1246 }
 0x58d   : > { %v1256_v14 = vsel %vm790_vm3, %v898_v13, %v1247_v10 }
 0x595   : > { %v1250_v11 = vpop.permute.xlu1 %1249 }
 0x596   : > { %v1259_v15 = vsel %vm1257_vm6, %v1256_v14, %v1250_v11 }
 0x59d   : > { %v1253_v16 = vpop.permute.xlu1 %1252 }
 0x59e   : > { %v1262_v17 = vsel %vm1260_vm7, %v1259_v15, %v1253_v16 }
 0x59f   : > { %1859 = vmatmul.mubr.msk.bf16.vlgmr.msra.gmra.mrb[16].mxu0 %vm653_vm1, %v1262_v17 }
 0x5a0   : > { %1878 = vmatprep.mubr.msk.bf16.mxu0 %vm2316_vm0, %v2315_v0  ;;  %1871 = vmatpush3.bf16.msra.mxu0 %v2019_v31 }
 0x5a1   : > { %1872 = vmatprep.subr.bf16.mxu0 %v2315_v0 }
 0x5a4   : > { %1873 = vmatpush3.bf16.msra.mxu0 %v2020_v32 }
 0x5a5   : > { %1874 = vmatprep.subr.bf16.mxu0 %v2315_v0 }
 0x5a8   : > { %1875 = vmatpush3.bf16.msra.mxu0 %v2021_v43 }
 0x5a9   : > { %1876 = vmatprep.subr.bf16.mxu0 %v2315_v0  ;;  %v1744_v0 = vld [vmem:[%s2841_s13] ss:$0 sm:$0xff] }
 0x5ac   : > { %1877 = vmatpush3.bf16.msra.mxu0 %v2022_v44 }
 0x672   : > { %v1322_v18 = vpop.f32.mrb[16].mxu0 }
 0x673   : > { %v1323_v19 = vadd.f32 %v1734_v12, %v1322_v18  ;;  %v1860_v20 = vpop.f32.mrb[17].mxu0 }
 0x674   : > { %v1325_v21 = vpop.f32.mrb[18].mxu0 }
 0x675   : > { %v1861_v22 = vpop.f32.mrb[19].mxu0  ;;  %v1328_v23 = vadd.f32 %v1323_v19, %v2641_v3  ;;  %v2018_v3 = vld [vmem:[%s2838_s10 + $0x8] sm:$0xff]  }
 0x676   : > { %1865 = vmatpush3.bf16.msra.mxu1 %v2018_v3 }
 0x677   : > { %v1331_v24 = vsel %vm653_vm1, %v1328_v23, 0.0 }
 0x678   : > { %1332 = vadd.xlane.f32.xlu1 %v1331_v24 }
 0x705   : > { %v1333_v25 = vpop.xlane.xlu1 %1332 }
 0x706   : > { %v1335_v26 = vmul.f32 0.03125, %v1333_v25 }
 0x708   : > { %v1336_v27 = vsub.f32 %v1328_v23, %v1335_v26 }
 0x70a   : > { %v1337_v28 = vmul.f32 %v1336_v27, %v1336_v27 }
 0x70c   : > { %v1338_v29 = vsel %vm653_vm1, %v1337_v28, 0.0 }
 0x70d   : > { %1339 = vadd.xlane.f32.xlu0 %v1338_v29 }
 0x79a   : > { %v1340_v33 = vpop.xlane.xlu0 %1339 }
 0x79b   : > { %v1341_v34 = vmul.f32 0.03125, %v1340_v33 }
 0x79d   : > { %v1342_v35 = vadd.f32 1e-12, %v1341_v34 }
 0x79f   : > { %2039 = vrsqrt.f32 %v1342_v35 }
 0x7a9   : > { %v2040_v36 = vpop.eup %2039 }
 0x7aa   : > { %v1344_v38 = vmul.f32 %v2040_v36, %v1336_v27 }
 0x7ac   : > { %v1351_v40 = vmul.f32 %v1738_v37, %v1344_v38 }
 0x7ae   : > { %v1358_v41 = vadd.f32 %v1739_v39, %v1351_v40 }
 0x7b0   : > { %v1359_v42 = vpack.c.bf16 %v1358_v41, %v1358_v41 }
 0x7b2   : > { %1867 = vmatmul.mubr.msk.bf16.vlgmr.msra.gmra.mrb[24].mxu1 %vm653_vm1, %v1359_v42 }
 0x885   : > { %v1420_v46 = vpop.f32.mrb[24].mxu1 }
 0x886   : > { %v1421_v47 = vadd.f32 %v1740_v45, %v1420_v46  ;;  %v1868_v48 = vpop.f32.mrb[25].mxu1 }
 0x887   : > { %v1423_v49 = vpop.f32.mrb[26].mxu1 }
 0x888   : > { %v1426_v50 = vmax.f32 %v1421_v47, 0.0  ;;  %v1869_v51 = vpop.f32.mrb[27].mxu1 }
 0x88a   : > { %v1427_v52 = vpack.c.bf16 %v1426_v50, %v1426_v50 }
 0x88c   : > { %1879 = vmatmul.mubr.msk.bf16.vlgmr.msra.gmra.mrb[20].mxu0 %vm1467_vm8, %v1427_v52 }
 0x95f   : > { %v1505_v53 = vpop.f32.mrb[20].mxu0 }
 0x960   : > { %v1506_v54 = vadd.f32 %v1744_v0, %v1505_v53  ;;  %v1880_v55 = vpop.f32.mrb[21].mxu0 }
 0x961   : > { %v1508_v56 = vpop.f32.mrb[22].mxu0 }
 0x962   : > { %v1881_v57 = vpop.f32.mrb[23].mxu0  ;;  %v1511_v58 = vadd.f32 %v1506_v54, %v1358_v41 }
 0x964   : > { %v1514_v59 = vsel %vm653_vm1, %v1511_v58, 0.0 }
 0x965   : > { %1515 = vadd.xlane.f32.xlu0 %v1514_v59 }
 0x9f2   : > { %v1516_v60 = vpop.xlane.xlu0 %1515 }
 0x9f3   : > { %v1517_v61 = vmul.f32 0.03125, %v1516_v60 }
 0x9f5   : > { %v1518_v62 = vsub.f32 %v1511_v58, %v1517_v61 }
 0x9f7   : > { %v1519_v63 = vmul.f32 %v1518_v62, %v1518_v62 }
 0x9f9   : > { %v1520_v1 = vsel %vm653_vm1, %v1519_v63, 0.0 }
 0x9fa   : > { %1521 = vadd.xlane.f32.xlu1 %v1520_v1 }
 0xa87   : > { %v1522_v2 = vpop.xlane.xlu1 %1521 }
 0xa88   : > { %v1523_v4 = vmul.f32 0.03125, %v1522_v2 }
 0xa8a   : > { %v1524_v5 = vadd.f32 1e-12, %v1523_v4 }
 0xa8c   : > { %2041 = vrsqrt.f32 %v1524_v5 }
 0xa96   : > { %v2042_v6 = vpop.eup %2041 }
 0xa97   : > { %v1526_v8 = vmul.f32 %v2042_v6, %v1518_v62 }
 0xa99   : > { %v1533_v10 = vmul.f32 %v1750_v7, %v1526_v8 }
 0xa9b   : > { %v1540_v11 = vadd.f32 %v1751_v9, %v1533_v10 }
 0xa9d   : > { %1541 = vst.msk [vmem:[%s615_s5] sm:$0xff] %vm653_vm1, %v1540_v11 }
 0xa9e   : > { %2224 = shalt.err (!%p2221_p6)
}
 0xa9f   : > { %s2225_s21 = scalar_lea.hbm %s2780_s14, 128  ;;  %s2229_s29 = scalar_lea.hbm %s2892_s17, 256 }
 0xaa0   : > { %p2226_p7 = scmp.ne.s32.totalorder %s2780_s14, %s2225_s21  ;;  %p2230_p0 = scmp.lt.u32.totalorder %s2780_s14, %s2892_s17 }
 0xaa1   : > { %p2231_p2 = scmp.lt.u32.totalorder %s2229_s29, %s2225_s21  ;;  %p2233_p1 = scmp.lt.u32.totalorder %s2225_s21, %s2780_s14 }
 0xaa2   : > { %p2227_p9 = pnand %p2226_p7, %p2893_p4 }
 0xaa3   : > { %p2232_p13 = por %p2231_p2, %p2230_p0 }
 0xaa4   : > { %p2228_p12 = pneg %p2227_p9 }
 0xaa5   : > { %p2234_p8 = por %p2233_p1, %p2232_p13 }
 0xaa7   : > { %p2235_p10 = pnand %p2234_p8, %p2228_p12 }
 0xaa9   : > { %2238 = shalt.err (!%p2235_p10)
}
 0xaaa   : > { %1906 = dma.vmem_to_hbm [thread:$0]  (%p2893_p4), %s2782_s27, 128, %s2780_s14, %s1543_s23  }
 0xaab PF: > { %s2894_s18 = sld [smem:[#allocation25_spill]]  ;;  %s2895_s7 = sld [smem:[#allocation21_spill]] }
 0xaac   : > { %s2896_s22 = sld [smem:[#allocation28_spill]] }
 0xab1   : > { %p1943_p11 = scmp.ge.s32.totalorder %s2894_s18, 2  ;;  %s1569_s5 = sand.u32 1, %s2895_s7  }
 0xab2   : > { %p2897_p3 = scmp.ne.s32.totalorder %s2896_s22, 0  ;;  %s1570_s0 = scalar_lea.sflag [#allocation6], %s1569_s5 }
 0xab4   : > { %p1928_p5 = pnand %p1943_p11, %p2897_p3 }
 0xab6   : > { %2280 = dma.done.wait (!%p1928_p5), %s1570_s0, 128  }
 0xab7   : > { %2282 = vsyncadd (!%p1928_p5), %s1570_s0, 4294967168  ;;  %s33_s26 = sadd.s32 1, %s2894_s18   ;;  %s2898_s21 = sld [smem:[#allocation22_spill]] }
 0xab8   : > { %p30_p6 = scmp.ge.s32.totalorder %s33_s26, 4   ;;  %s2899_s22 = sld [smem:[#allocation23_spill]] }
 0xab9   : > { %s2900_s23 = sld [smem:[#allocation29_spill]]  ;;  %s2901_s24 = sld [smem:[#allocation24_spill]] }
 0xaba   : > { %s2902_s25 = sld [smem:[#allocation26_spill]]  ;;  %32 = sbr.rel (!%p30_p6) target bundleno = 16 (0x10), region = 152 }
 0xac1   :  { %1575 = vsyncpa [#allocation5], 1 }
 0xac2   :  { %1577 = vsyncpa [#allocation5 + $0x1], 1 }
 0xac3   :  { %1578 = vsyncpa [#allocation8], 1 }
 0xac4   :  { %1579 = vsyncpa [#allocation11], 1 }
 0xac5   :  { %1580 = vsyncpa [#allocation14], 1 }
 0xac6   :  { %1581 = vsyncpa [#allocation6], 1 }
 0xac7   :  { %1583 = vsyncpa [#allocation6 + $0x1], 1 }

// kernel: tpu_custom_call.1
= control target key start
LH: loop header
LB: loop body
LE: loop exit
PB: predicated region body
PF: predicated region fallthrough
CT: control target
= control target key end

     0   :  { %s2828_s0 = inlined_call_operand.vmem [shape: f32[2,8,32], index: 0, kind: input, shape index: {}]   ;;  %s2829_s1 = inlined_call_operand.vmem [shape: s32[2,1,8], index: 1, kind: input, shape index: {}]   ;;  %s2830_s2 = inlined_call_operand.vmem [shape: bf16[32,32], index: 2, kind: input, shape index: {}]   ;;  %s2831_s3 = inlined_call_operand.hbm [shape: f32[1,32], index: 3, kind: input, shape index: {}]   ;;  %s2832_s4 = inlined_call_operand.vmem [shape: bf16[32,64], index: 4, kind: input, shape index: {}]   ;;  %s2833_s5 = inlined_call_operand.hbm [shape: f32[1,64], index: 5, kind: input, shape index: {}]   ;;  %s2834_s6 = inlined_call_operand.hbm [shape: bf16[32,32], index: 6, kind: input, shape index: {}]   ;;  %s2835_s7 = inlined_call_operand.hbm [shape: f32[1,32], index: 7, kind: input, shape index: {}]   ;;  %s2836_s8 = inlined_call_operand.hbm [shape: f32[1,32], index: 8, kind: input, shape index: {}]   ;;  %s2837_s9 = inlined_call_operand.hbm [shape: f32[1,32], index: 9, kind: input, shape index: {}]   ;;  %s2838_s10 = inlined_call_operand.vmem [shape: bf16[32,64], index: 10, kind: input, shape index: {}]   ;;  %s2839_s11 = inlined_call_operand.vmem [shape: f32[1,64], index: 11, kind: input, shape index: {}]   ;;  %s2840_s12 = inlined_call_operand.vmem [shape: bf16[64,32], index: 12, kind: input, shape index: {}]   ;;  %s2841_s13 = inlined_call_operand.vmem [shape: f32[1,32], index: 13, kind: input, shape index: {}]   ;;  %s2842_s14 = inlined_call_operand.vmem [shape: f32[1,32], index: 14, kind: input, shape index: {}]   ;;  %s2843_s15 = inlined_call_operand.vmem [shape: f32[1,32], index: 15, kind: input, shape index: {}]   ;;  %s2844_s16 = inlined_call_operand.hbm [shape: f32[2,8,32], index: 16, kind: output, shape index: {}]  }
   0x1   :  { %2860 = sst [smem:[#allocation30_spill]] %s2828_s0 }
   0x2   :  { %2861 = sst [smem:[#allocation31_spill]] %s2831_s3 }
   0x3   :  { %2862 = sst [smem:[#allocation32_spill]] %s2833_s5 }
   0x4   :  { %2863 = sst [smem:[#allocation33_spill]] %s2835_s7 }
   0x5   :  { %2864 = sst [smem:[#allocation34_spill]] %s2842_s14 }
   0x6   :  { %2865 = sst [smem:[#allocation35_spill]] %s2843_s15 }
   0x7   :  { %2866 = sst [smem:[#allocation36_spill]] %s2844_s16 }
   0x8   :  { %21 = vsyncpa [#allocation5], 0 }
   0x9   :  { %22 = vsyncpa [#allocation8], 0 }
   0xa   :  { %23 = vsyncpa [#allocation11], 0 }
   0xb   :  { %24 = vsyncpa [#allocation14], 0 }
   0xc   :  { %25 = vsyncpa [#allocation6], 0 }
   0xd   :  { %27 = vsyncpa [#allocation6 + $0x1], 0  ;;  %s2410_s21 = smov 0   ;;  %s2412_s22 = smov 0  }
   0xe   :  { %s2414_s23 = smov 0   ;;  %s2416_s24 = smov 0  }
   0xf   :  { %s2418_s25 = smov 0   ;;  %s2420_s26 = smov 0  }
  0x10 LB: > { %2867 = sst [smem:[#allocation21_spill]] %s2285_s21  ;;  %s1696_s27 = sadd.s32 4294967295, %s2305_s26   ;;  %s2305_s26 = sphi %s2420_s26, %s33_s26   ;;  %s2301_s25 = sphi %s2418_s25, %s2902_s25   ;;  %s2297_s24 = sphi %s2416_s24, %s2901_s24   ;;  %s2293_s23 = sphi %s2414_s23, %s2900_s23   ;;  %s2289_s22 = sphi %s2412_s22, %s2899_s22   ;;  %s2285_s21 = sphi %s2410_s21, %s2898_s21  }
  0x11   : > { %2868 = sst [smem:[#allocation22_spill]] %s2289_s22  ;;  %s1697_s28 = sadd.s32 4294967294, %s2305_s26  }
  0x12   : > { %2869 = sst [smem:[#allocation23_spill]] %s2293_s23  ;;  %s45_s29 = sadd.s32 1, %s2301_s25 }
  0x13   : > { %2870 = sst [smem:[#allocation24_spill]] %s2301_s25  ;;  %s400_s30 = sadd.s32 1, %s2293_s23 }
  0x14   : > { %2871 = sst [smem:[#allocation25_spill]] %s2305_s26  ;;  %p47_p0 = scmp.ge.s32.totalorder %s45_s29, 2 }
  0x15   : > { %p410_p1 = scmp.ne.s32.totalorder %s2293_s23, %s2289_s22  ;;  %p411_p2 = scmp.eq.s32.totalorder %s1696_s27, 1 }
  0x16   : > { %p416_p3 = scmp.ne.s32.totalorder %s2289_s22, %s2285_s21  ;;  %s2904_s29 = smov (%p47_p0, %s45_s29), 0 }
  0x17   : > { %2872 = sst [smem:[#allocation26_spill]] %s2904_s29  ;;  %p2450_p4 = por %p411_p2, %p410_p1 }
  0x18   : > { %p417_p5 = scmp.eq.s32.totalorder %s1697_s28, 1  ;;  %s395_s17 = ssub.s32 %s2301_s25, %s2904_s29 }
  0x19   : > { %s2873_s0 = scalar_select %p2450_p4, 1, 0 }
  0x1a   : > { %p1698_p6 = scmp.ge.s32.totalorder %s2305_s26, 1  ;;  %p398_p7 = scmp.eq.s32.totalorder %s395_s17, 0 }
  0x1b   : > { %2874 = sst [smem:[#allocation27_spill]] %s2873_s0  ;;  %p2457_p8 = por %p417_p5, %p416_p3 }
  0x1c   : > { %p424_p9 = scmp.lt.s32.totalorder %s2305_s26, 3  ;;  %p2469_p11 = scmp.eq.s32.totalorder %s1696_s27, 0 }
  0x1d   : > { %s2875_s18 = scalar_select %p2457_p8, 1, 0 }
  0x1e   : > { %s2463_s19 = scalar_select %p398_p7, %s2293_s23, %s400_s30  }
  0x1f   : > { %2876 = sst [smem:[#allocation28_spill]] %s2875_s18  ;;  %p2465_p10 = pnand %p1698_p6, %p424_p9 }
  0x20   : > { %2877 = sst [smem:[#allocation29_spill]] %s2463_s19  ;;  %s2307_s28 = smov [#allocation7]  }
  0x21   : > { %s2878_s20 = scalar_select %p2465_p10, 1, 0 }
  0x22   : > { %s2879_s21 = scalar_select %p2469_p11, 1, 0 }
  0x23   : > { %p1908_p12 = pneg %p2465_p10  ;;  %s454_s17 = sshll.u32 %s2307_s28, 4  ;;  %s455_s17 = int_to_ptr.vmem [resolvable:$true] %s454_s17 }
  0x24   : > { %s2308_s29 = smov [#allocation10]   ;;  %s2881_s5 = sld [smem:[#allocation32_spill]] }
  0x25   : > { %s478_s25 = sshll.u32 %s2308_s29, 4  ;;  %p2477_p13 = pnand %p2469_p11, %p1908_p12  ;;  %s2481_s25 = int_to_ptr.vmem [resolvable:$true] %s478_s25 }
  0x27   : > { %p2491_p1 = pneg %p2477_p13 }
  0x2a   : > { %s2043_s23 = scalar_lea.hbm %s2881_s5, 16 }
  0x2b   : > { %p2044_p0 = scmp.ne.s32.totalorder %s2881_s5, %s2043_s23  ;;  %p2050_p5 = scmp.lt.u32.totalorder %s2043_s23, %s2881_s5 }
  0x2d   : > { %p2046_p2 = pnand %p2491_p1, %p2044_p0 }
  0x2f   : > { %p2047_p3 = pneg %p2046_p2 }
  0x31   : > { %p2052_p6 = pnand %p2050_p5, %p2047_p3 }
  0x33   : > { %2055 = shalt.err (!%p2052_p6)
}
  0x34   : > { %s2056_s19 = scalar_lea.vmem %s455_s17, 16  ;;  %s2063_s26 = scalar_lea.vmem %s455_s17, 32 }
  0x35   : > { %p2057_p7 = scmp.ne.s32.totalorder %s455_s17, %s2056_s19  ;;  %p2064_p8 = scmp.lt.s32.totalorder %s455_s17, %s455_s17 }
  0x36   : > { %p2065_p4 = scmp.lt.s32.totalorder %s2063_s26, %s2056_s19 }
  0x37   : > { %p2059_p9 = pnand %p2057_p7, %p2491_p1 }
  0x38   : > { %p2066_p11 = por %p2065_p4, %p2064_p8 }
  0x39   : > { %p2060_p12 = pneg %p2059_p9 }
  0x3b   : > { %p2067_p10 = pnand %p2066_p11, %p2060_p12 }
  0x3d   : > { %2070 = shalt.err (!%p2067_p10)
}
  0x3e   : > { %1914 = dma.hbm_to_vmem [thread:$0]  (!%p2477_p13), %s2881_s5, 16, %s455_s17, [#allocation8]  }
  0x3f   : > { %s2883_s7 = sld [smem:[#allocation33_spill]] }
  0x45   : > { %s2071_s29 = scalar_lea.hbm %s2883_s7, 16 }
  0x46   : > { %p2072_p0 = scmp.ne.s32.totalorder %s2883_s7, %s2071_s29  ;;  %p2078_p8 = scmp.lt.u32.totalorder %s2071_s29, %s2883_s7 }
  0x48   : > { %p2074_p2 = pnand %p2072_p0, %p2491_p1 }
  0x4a   : > { %p2075_p4 = pneg %p2074_p2 }
  0x4c   : > { %p2080_p10 = pnand %p2078_p8, %p2075_p4 }
  0x4e   : > { %2083 = shalt.err (!%p2080_p10)
}
  0x4f   : > { %s2084_s17 = scalar_lea.vmem %s2481_s25, 16  ;;  %s2091_s14 = scalar_lea.vmem %s2481_s25, 32 }
  0x50   : > { %p2085_p11 = scmp.ne.s32.totalorder %s2481_s25, %s2084_s17  ;;  %p2092_p6 = scmp.lt.s32.totalorder %s2481_s25, %s2481_s25 }
  0x51   : > { %p2093_p7 = scmp.lt.s32.totalorder %s2091_s14, %s2084_s17 }
  0x52   : > { %p2087_p3 = pnand %p2085_p11, %p2491_p1 }
  0x53   : > { %p2094_p9 = por %p2093_p7, %p2092_p6 }
  0x54   : > { %p2088_p5 = pneg %p2087_p3 }
  0x56   : > { %p2095_p12 = pnand %p2094_p9, %p2088_p5 }
  0x58   : > { %2098 = shalt.err (!%p2095_p12)
}
  0x59   : > { %1920 = dma.hbm_to_vmem [thread:$0]  (!%p2477_p13), %s2883_s7, 16, %s2481_s25, [#allocation11]  }
  0x5a   : > { %s2309_s27 = smov [#allocation4]   ;;  %s2310_s23 = smov [#allocation9]  }
  0x5b   : > { %s440_s16 = sshll.u32 %s2309_s27, 4  ;;  %s464_s29 = sshll.u32 %s2310_s23, 4  ;;  %s441_s16 = int_to_ptr.vmem [resolvable:$true] %s440_s16  ;;  %s465_s29 = int_to_ptr.vmem [resolvable:$true] %s464_s29 }
  0x5c   : > { %s2884_s3 = sld [smem:[#allocation31_spill]] }
  0x62   : > { %s2099_s17 = scalar_lea.hbm %s2884_s3, 16 }
  0x63   : > { %p2100_p0 = scmp.ne.s32.totalorder %s2884_s3, %s2099_s17  ;;  %p2106_p8 = scmp.lt.u32.totalorder %s2099_s17, %s2884_s3 }
  0x65   : > { %p2102_p2 = pnand %p2100_p0, %p2491_p1 }
  0x67   : > { %p2103_p4 = pneg %p2102_p2 }
  0x69   : > { %p2108_p10 = pnand %p2106_p8, %p2103_p4 }
  0x6b   : > { %2111 = shalt.err (!%p2108_p10)
}
  0x6c   : > { %s2112_s25 = scalar_lea.vmem %s441_s16, 16  ;;  %s2119_s18 = scalar_lea.vmem %s441_s16, 32 }
  0x6d   : > { %p2113_p11 = scmp.ne.s32.totalorder %s441_s16, %s2112_s25  ;;  %p2120_p6 = scmp.lt.s32.totalorder %s441_s16, %s441_s16 }
  0x6e   : > { %p2121_p7 = scmp.lt.s32.totalorder %s2119_s18, %s2112_s25 }
  0x6f   : > { %p2115_p3 = pnand %p2113_p11, %p2491_p1 }
  0x70   : > { %p2122_p9 = por %p2121_p7, %p2120_p6 }
  0x71   : > { %p2116_p5 = pneg %p2115_p3 }
  0x73   : > { %p2123_p12 = pnand %p2122_p9, %p2116_p5 }
  0x75   : > { %2126 = shalt.err (!%p2123_p12)
}
  0x76   : > { %1911 = dma.hbm_to_vmem [thread:$0]  (!%p2477_p13), %s2884_s3, 16, %s441_s16, [#allocation5]  }
  0x77   : > { %s2127_s19 = scalar_lea.hbm %s2834_s6, 256 }
  0x78   : > { %p2128_p0 = scmp.ne.s32.totalorder %s2834_s6, %s2127_s19  ;;  %p2134_p8 = scmp.lt.u32.totalorder %s2127_s19, %s2834_s6 }
  0x7a   : > { %p2130_p2 = pnand %p2128_p0, %p2491_p1 }
  0x7c   : > { %p2131_p4 = pneg %p2130_p2 }
  0x7e   : > { %p2136_p10 = pnand %p2134_p8, %p2131_p4 }
  0x80   : > { %2139 = shalt.err (!%p2136_p10)
}
  0x81   : > { %s2140_s25 = scalar_lea.vmem %s465_s29, 256  ;;  %p2148_p6 = scmp.lt.s32.totalorder %s465_s29, %s465_s29 }
  0x82   : > { %p2141_p11 = scmp.ne.s32.totalorder %s465_s29, %s2140_s25  ;;  %p2149_p7 = scmp.lt.s32.totalorder %s2140_s25, %s2140_s25 }
  0x84   : > { %p2143_p3 = pnand %p2141_p11, %p2491_p1  ;;  %p2150_p9 = por %p2149_p7, %p2148_p6 }
  0x86   : > { %p2144_p5 = pneg %p2143_p3 }
  0x88   : > { %p2151_p12 = pnand %p2150_p9, %p2144_p5 }
  0x8a   : > { %2154 = shalt.err (!%p2151_p12)
}
  0x8b   : > { %s2311_s16 = smov 64   ;;  %s2312_s18 = smov 4  }
  0x8c   : > { %1917 = dma.hbm_to_vmem [thread:$0]  (!%p2477_p13), %s2834_s6, 256, %s465_s29, [#allocation8], %s2311_s16, %s2311_s16, %s2312_s18  }
  0x8d   : > { %s2313_s0 = smov [#allocation12]   ;;  %s2314_s19 = smov [#allocation13]  }
  0x8e   : > { %s489_s23 = sshll.u32 %s2313_s0, 4  ;;  %s500_s26 = sshll.u32 %s2314_s19, 4  ;;  %s490_s23 = int_to_ptr.vmem [resolvable:$true] %s489_s23  ;;  %s501_s26 = int_to_ptr.vmem [resolvable:$true] %s500_s26 }
  0x8f   : > { %s2155_s15 = scalar_lea.hbm %s2836_s8, 16 }
  0x90   : > { %p2156_p0 = scmp.ne.s32.totalorder %s2836_s8, %s2155_s15  ;;  %p2162_p8 = scmp.lt.u32.totalorder %s2155_s15, %s2836_s8 }
  0x92   : > { %p2158_p2 = pnand %p2156_p0, %p2491_p1 }
  0x94   : > { %p2159_p4 = pneg %p2158_p2 }
  0x96   : > { %p2164_p10 = pnand %p2162_p8, %p2159_p4 }
  0x98   : > { %2167 = shalt.err (!%p2164_p10)
}
  0x99   : > { %s2168_s29 = scalar_lea.vmem %s490_s23, 16  ;;  %s2175_s16 = scalar_lea.vmem %s490_s23, 32 }
  0x9a   : > { %p2169_p11 = scmp.ne.s32.totalorder %s490_s23, %s2168_s29  ;;  %p2176_p6 = scmp.lt.s32.totalorder %s490_s23, %s490_s23 }
  0x9b   : > { %p2177_p7 = scmp.lt.s32.totalorder %s2175_s16, %s2168_s29 }
  0x9c   : > { %p2171_p3 = pnand %p2169_p11, %p2491_p1 }
  0x9d   : > { %p2178_p9 = por %p2177_p7, %p2176_p6 }
  0x9e   : > { %p2172_p5 = pneg %p2171_p3 }
  0xa0   : > { %p2179_p12 = pnand %p2178_p9, %p2172_p5 }
  0xa2   : > { %2182 = shalt.err (!%p2179_p12)
}
  0xa3   : > { %1923 = dma.hbm_to_vmem [thread:$0]  (!%p2477_p13), %s2836_s8, 16, %s490_s23, [#allocation11]  }
  0xa4   : > { %s2183_s5 = scalar_lea.hbm %s2837_s9, 16 }
  0xa5   : > { %p2184_p0 = scmp.ne.s32.totalorder %s2837_s9, %s2183_s5  ;;  %p2190_p8 = scmp.lt.u32.totalorder %s2183_s5, %s2837_s9 }
  0xa7   : > { %p2186_p2 = pnand %p2184_p0, %p2491_p1 }
  0xa9   : > { %p2187_p4 = pneg %p2186_p2 }
  0xab   : > { %p2192_p10 = pnand %p2190_p8, %p2187_p4 }
  0xad   : > { %2195 = shalt.err (!%p2192_p10)
}
  0xae   : > { %s2196_s14 = scalar_lea.vmem %s501_s26, 16  ;;  %s2203_s23 = scalar_lea.vmem %s501_s26, 32 }
  0xaf   : > { %p2197_p11 = scmp.ne.s32.totalorder %s501_s26, %s2196_s14  ;;  %p2204_p6 = scmp.lt.s32.totalorder %s501_s26, %s501_s26 }
  0xb0   : > { %p2205_p7 = scmp.lt.s32.totalorder %s2203_s23, %s2196_s14 }
  0xb1   : > { %p2199_p3 = pnand %p2197_p11, %p2491_p1 }
  0xb2   : > { %p2206_p9 = por %p2205_p7, %p2204_p6 }
  0xb3   : > { %p2200_p5 = pneg %p2199_p3 }
  0xb5   : > { %p2207_p12 = pnand %p2206_p9, %p2200_p5 }
  0xb7   : > { %2210 = shalt.err (!%p2207_p12)
}
  0xb8   : > { %1926 = dma.hbm_to_vmem [thread:$0]  (!%p2477_p13), %s2837_s9, 16, %s501_s26, [#allocation14]  }
  0xb9   : > { %p2885_p0 = scmp.ne.s32.totalorder %s2878_s20, 0 }
  0xba   : > { %p2886_p2 = scmp.ne.s32.totalorder (!%p2885_p0), %s2879_s21, 0 }
  0xbb   : > { %544 = sbr.rel (%p2885_p0) target bundleno = 2731 (0xaab), region = 84 }
  0xc2   : > { %2264 = dma.done.wait (%p2886_p2), [#allocation5], 16  }
  0xc3   : > { %2266 = vsyncadd (%p2886_p2), [#allocation5], 4294967280 }
  0xc4   : > { %2268 = dma.done.wait (%p2886_p2), [#allocation8], 272  }
  0xc5   : > { %2270 = vsyncadd (%p2886_p2), [#allocation8], 4294967024 }
  0xc6   : > { %2272 = dma.done.wait (%p2886_p2), [#allocation11], 32  }
  0xc7   : > { %2274 = vsyncadd (%p2886_p2), [#allocation11], 4294967264 }
  0xc8   : > { %2276 = dma.done.wait (%p2886_p2), [#allocation14], 16  }
  0xc9   : > { %2278 = vsyncadd (%p2886_p2), [#allocation14], 4294967280  ;;  %p616_p13 = scmp.lt.s32.totalorder %s2297_s24, 1  ;;  %v2315_v0 = vmov 0.0   ;;  %vm2316_vm0 = vmmov 0   ;;  %s2887_s26 = sld [smem:[#allocation30_spill]]  ;;  %v714_v33 = vlaneseq }
  0xca   : > { %1790 = vmatprep.subr.bf16.mxu1 %v2315_v0  ;;  %1794 = vmatprep.mubr.msk.bf16.mxu1 %vm2316_vm0, %v2315_v0  ;;  %v2009_v1 = vld [vmem:[%s2832_s4] sm:$0xff]   ;;  %v2010_v2 = vld [vmem:[%s2832_s4 + $0x8] sm:$0xff]   ;;  %vm653_vm1 = vcmask 261120   ;;  %vm698_vm2 = vcmask 257024   ;;  %vm790_vm3 = vcmask 64512   ;;  %s2317_s19 = smov 112  }
  0xcb   : > { %s2626_s20 = scalar_select %p616_p13, %s2297_s24, 1  ;;  %1806 = vmatprep.subr.bf16.mxu0 %v2315_v0  ;;  %1808 = vmatprep.mubr.msk.bf16.mxu0 %vm2316_vm0, %v2315_v0  ;;  %v2011_v4 = vld [vmem:[%s2830_s2] sm:$0xff]   ;;  %v2012_v6 = vld [vmem:[%s2830_s2 + $0x8] sm:$0xff]   ;;  %v715_v35 = vshrl.u32 %v714_v33, 7  ;;  %vm854_vm5 = vcmask 1043456   ;;  %vm1257_vm6 = vcmask 130048  }
  0xcc   : > { %1791 = vmatpush3.bf16.msra.mxu1 %v2009_v1  ;;  %v1715_v7 = vld [vmem:[#allocation7] ss:$0 sm:$0xff]  ;;  %v1720_v14 = vld [vmem:[#allocation4] ss:$0 sm:$0xff]  ;;  %s2318_s17 = smov 120   ;;  %s2319_s14 = smov 104  }
  0xcd   : > { %s1714_s21 = sshll.u32 %s2626_s20, 3  ;;  %1792 = vmatprep.subr.bf16.mxu1 %v2315_v0  ;;  %s622_s25 = scalar_lea.vmem %s2829_s1, %s2626_s20  ;;  %v716_v36 = vsub.s32 0, %v715_v35  ;;  %vm1260_vm7 = vcmask 195584   ;;  %vm1467_vm8 = vcmask 523264  }
  0xce   : > { %v710_v34 = vld [vmem:[%s622_s25] sm:$0x1]  ;;  %s2320_s20 = smov 96   ;;  %s2322_s30 = smov 16  }
  0xcf   : > { %s619_s29 = scalar_lea.vmem %s2887_s26, %s1714_s21  ;;  %vm711_vm4 = vcmp.eq.s32.totalorder %v710_v34, 0  ;;  %s2321_s21 = smov 8  }
  0xd0   : > { %v2641_v3 = vld [vmem:[%s619_s29] sm:$0xff]  ;;  %1793 = vmatpush3.bf16.msra.mxu1 %v2010_v2  ;;  %v712_v37 = vsel %vm711_vm4, -10000.0, %v2315_v0  ;;  %s2323_s28 = smov 24   ;;  %s2890_s16 = sld [smem:[#allocation34_spill]] }
  0xd1   : > { %v629_v5 = vpack.c.bf16 %v2641_v3, %v2641_v3  ;;  %1798 = vmatprep.subr.bf16.mxu1 %v2315_v0  ;;  %v717_v38 = vrot.slane %v712_v37, %v716_v36  ;;  %s2891_s7 = sld [smem:[#allocation35_spill]]  ;;  %s1753_s22 = sshll.u32 %s2297_s24, 7 }
  0xd2   : > { %s2324_s24 = smov [#allocation15]  }
  0xd3   : > { %1795 = vmatmul.mubr.msk.bf16.vlgmr.msra.gmra.mrb[0].mxu1 %vm653_vm1, %v629_v5  ;;  %s2215_s25 = sshll.u32 %s2324_s24, 4  ;;  %s2216_s25 = int_to_ptr.vmem [resolvable:$false] %s2215_s25 }
  0xd4   : > { %1799 = vmatpush3.bf16.msra.mxu1 %v2011_v4  ;;  %1802 = vmatprep.mubr.msk.bf16.mxu1 %vm2316_vm0, %v2315_v0 }
  0xd5   : > { %1800 = vmatprep.subr.bf16.mxu1 %v2315_v0 }
  0xd8   : > { %1801 = vmatpush3.bf16.msra.mxu1 %v2012_v6 }
  0xd9   : > { %1812 = vmatprep.subr.bf16.mxu1 %v2315_v0 }
  0xdb   : > { %1803 = vmatmul.mubr.msk.bf16.vlgmr.msra.gmra.mrb[4].mxu1 %vm653_vm1, %v629_v5 }
  0xdc   : > { %1814 = vmatprep.mubr.msk.bf16.mxu1 %vm2316_vm0, %v2315_v0 }
 0x1a6   : > { %v691_v8 = vpop.f32.mrb[0].mxu1 }
 0x1a7   : > { %v692_v9 = vadd.f32 %v1715_v7, %v691_v8  ;;  %v1796_v10 = vpop.f32.mrb[1].mxu1 }
 0x1a8   : > { %v694_v11 = vpop.f32.mrb[2].mxu1 }
 0x1a9   : > { %v2661_v12 = vpack.c.bf16 %v692_v9, %v692_v9  ;;  %v1797_v13 = vpop.f32.mrb[3].mxu1 }
 0x1ab   : > { %699 = vst.msk [vmem:[#allocation2] sm:$0xf] %vm698_vm2, %v2661_v12 }
 0x1ae   : > { %v781_v15 = vpop.f32.mrb[4].mxu1 }
 0x1af   : > { %v1804_v16 = vpop.f32.mrb[5].mxu1  ;;  %v782_v18 = vadd.f32 %v1720_v14, %v781_v15 }
 0x1b0   : > { %v784_v17 = vpop.f32.mrb[6].mxu1 }
 0x1b1   : > { %v1805_v19 = vpop.f32.mrb[7].mxu1  ;;  %v787_v23 = vpack.c.bf16 %v782_v18, %v782_v18 }
 0x1b2   : > { %v788_v20 = vld [vmem:[#allocation2] sm:$0xf] }
 0x1b3   : > { %v795_v21 = vsel %vm790_vm3, %v788_v20, 0  ;;  %v1726_v22 = vcombine.low %v788_v20, %v788_v20 }
 0x1b4   : > { %1807 = vmatpush3.bf16.xpose.msra.mxu0 %v795_v21 }
 0x1b5   : > { %1021 = vrot.lane.b32.xlu1 %v1726_v22, %s2317_s19  ;;  %905 = vrot.lane.b32.xlu0 %v1726_v22, %s2318_s17 }
 0x1b6   : > { %1818 = vmatprep.subr.bf16.mxu0 %v2315_v0 }
 0x1b9   : > { %1019 = vrot.lane.b32.xlu1 %v787_v23, %s2317_s19  ;;  %900 = vrot.lane.b32.xlu0 %v787_v23, %s2318_s17 }
 0x1bb   : > { %1809 = vmatmul.mubr.msk.bf16.vlgmr.msra.gmra.mrb[0].mxu0 %vm790_vm3, %v787_v23 }
 0x1bc   : > { %1820 = vmatprep.mubr.msk.bf16.mxu0 %vm2316_vm0, %v2315_v0 }
 0x1bd   : > { %1132 = vrot.lane.b32.xlu1 %v787_v23, %s2319_s14  ;;  %1134 = vrot.lane.b32.xlu0 %v1726_v22, %s2319_s14 }
 0x227   : > { %v906_v24 = vpop.permute.xlu0 %905  ;;  %v1022_v26 = vpop.permute.xlu1 %1021 }
 0x228   : > { %v911_v25 = vsel %vm790_vm3, %v906_v24, 0  ;;  %v1027_v28 = vsel %vm790_vm3, %v1022_v26, 0 }
 0x229   : > { %1819 = vmatpush3.bf16.xpose.msra.mxu0 %v911_v25 }
 0x22a   : > { %1830 = vmatprep.subr.bf16.mxu0 %v2315_v0 }
 0x22b   : > { %v901_v27 = vpop.permute.xlu0 %900  ;;  %v1020_v30 = vpop.permute.xlu1 %1019 }
 0x22f   : > { %v1135_v29 = vpop.permute.xlu0 %1134  ;;  %v1133_v32 = vpop.permute.xlu1 %1132 }
 0x230   : > { %1821 = vmatmul.mubr.msk.bf16.vlgmr.msra.gmra.mrb[4].mxu0 %vm790_vm3, %v901_v27  ;;  %v1140_v31 = vsel %vm790_vm3, %v1135_v29, 0 }
 0x231   : > { %1831 = vmatpush3.bf16.xpose.msra.mxu0 %v1027_v28  ;;  %1832 = vmatprep.mubr.msk.bf16.mxu0 %vm2316_vm0, %v2315_v0 }
 0x232   : > { %1842 = vmatprep.subr.bf16.mxu0 %v2315_v0 }
 0x238   : > { %1833 = vmatmul.mubr.msk.bf16.vlgmr.msra.gmra.mrb[8].mxu0 %vm790_vm3, %v1020_v30 }
 0x239   : > { %1843 = vmatpush3.bf16.xpose.msra.mxu0 %v1140_v31  ;;  %1844 = vmatprep.mubr.msk.bf16.mxu0 %vm2316_vm0, %v2315_v0 }
 0x23a   : > { %1854 = vmatprep.subr.bf16.mxu0 %v2315_v0 }
 0x240   : > { %1845 = vmatmul.mubr.msk.bf16.vlgmr.msra.gmra.mrb[12].mxu0 %vm790_vm3, %v1133_v32 }
 0x241   : > { %1858 = vmatprep.mubr.msk.bf16.mxu0 %vm2316_vm0, %v2315_v0 }
 0x28e   : > { %v831_v39 = vpop.f32.mrb[0].mxu0 }
 0x28f   : > { %v837_v40 = vmul.f32 0.35355338, %v831_v39  ;;  %v1810_v41 = vpop.f32.mrb[1].mxu0 }
 0x290   : > { %v834_v42 = vpop.f32.mrb[2].mxu0 }
 0x291   : > { %v1811_v43 = vpop.f32.mrb[3].mxu0  ;;  %v838_v44 = vadd.f32 %v837_v40, %v717_v38 }
 0x293   : > { %v839_v45 = vsel %vm790_vm3, %v838_v44, -inf }
 0x294   : > { %840 = vmax.xlane.f32.xlu0 %v839_v45 }
 0x303   : > { %v947_v46 = vpop.f32.mrb[4].mxu0 }
 0x304   : > { %v953_v47 = vmul.f32 0.35355338, %v947_v46  ;;  %v1822_v48 = vpop.f32.mrb[5].mxu0 }
 0x305   : > { %v950_v49 = vpop.f32.mrb[6].mxu0 }
 0x306   : > { %v1823_v50 = vpop.f32.mrb[7].mxu0  ;;  %v954_v51 = vadd.f32 %v953_v47, %v717_v38 }
 0x308   : > { %v955_v52 = vsel %vm790_vm3, %v954_v51, -inf }
 0x309   : > { %956 = vmax.xlane.f32.xlu1 %v955_v52 }
 0x30b   : > { %v1063_v53 = vpop.f32.mrb[8].mxu0 }
 0x30c   : > { %v1069_v54 = vmul.f32 0.35355338, %v1063_v53  ;;  %v1834_v55 = vpop.f32.mrb[9].mxu0 }
 0x30d   : > { %v1066_v56 = vpop.f32.mrb[10].mxu0  ;;  %v2015_v55 = vld [vmem:[#allocation9] sm:$0xff]  }
 0x30e   : > { %v1835_v57 = vpop.f32.mrb[11].mxu0  ;;  %v1070_v58 = vadd.f32 %v1069_v54, %v717_v38  ;;  %1855 = vmatpush3.bf16.msra.mxu0 %v2015_v55 }
 0x30f   : > { %1856 = vmatprep.subr.bf16.mxu0 %v2315_v0 }
 0x310   : > { %v1071_v59 = vsel %vm790_vm3, %v1070_v58, -inf }
 0x311   : > { %1072 = vmax.xlane.f32.xlu0 %v1071_v59  ;;  %v2016_v59 = vld [vmem:[#allocation9 + $0x8] sm:$0xff]  }
 0x312   : > { %1857 = vmatpush3.bf16.msra.mxu0 %v2016_v59 }
 0x313   : > { %v1176_v60 = vpop.f32.mrb[12].mxu0  ;;  %1870 = vmatprep.subr.bf16.mxu0 %v2315_v0 }
 0x314   : > { %v1182_v61 = vmul.f32 0.35355338, %v1176_v60  ;;  %v1846_v62 = vpop.f32.mrb[13].mxu0 }
 0x315   : > { %v1179_v63 = vpop.f32.mrb[14].mxu0 }
 0x316   : > { %v1847_v1 = vpop.f32.mrb[15].mxu0  ;;  %v1183_v2 = vadd.f32 %v1182_v61, %v717_v38 }
 0x318   : > { %v1184_v4 = vsel %vm790_vm3, %v1183_v2, -inf }
 0x319   : > { %1185 = vmax.xlane.f32.xlu0 %v1184_v4 }
 0x31a   : > { %703 = vrot.lane.b32.xlu1 %v2661_v12, %s2320_s20  ;;  %s2888_s20 = sld [smem:[#allocation22_spill]] }
 0x321   : > { %v841_v5 = vpop.xlane.xlu0 %840 }
 0x322   : > { %v842_v6 = vsub.f32 %v838_v44, %v841_v5 }
 0x324   : > { %v843_v7 = vmul.f32 1.442695, %v842_v6 }
 0x326   : > { %2023 = vpow2.f32 %v843_v7 }
 0x330   : > { %v2024_v8 = vpop.eup %2023 }
 0x331   : > { %v845_v9 = vsel %vm790_vm3, %v2024_v8, 0.0 }
 0x332   : > { %846 = vadd.xlane.f32.xlu0 %v845_v9 }
 0x396   : > { %v957_v10 = vpop.xlane.xlu1 %956 }
 0x397   : > { %v958_v11 = vsub.f32 %v954_v51, %v957_v10 }
 0x399   : > { %v959_v13 = vmul.f32 1.442695, %v958_v11 }
 0x39a   : > { %v704_v14 = vpop.permute.xlu1 %703 }
 0x39b   : > { %2025 = vpow2.f32 %v959_v13  ;;  %706 = vst.msk [vmem:[#allocation3] sm:$0xf] %vm698_vm2, %v704_v14 }
 0x39e   : > { %v1073_v15 = vpop.xlane.xlu0 %1072 }
 0x39f   : > { %v1074_v16 = vsub.f32 %v1070_v58, %v1073_v15 }
 0x3a1   : > { %v1075_v17 = vmul.f32 1.442695, %v1074_v16 }
 0x3a2   : > { %v789_v12 = vld [vmem:[#allocation3] sm:$0xf] }
 0x3a3   : > { %2027 = vpow2.f32 %v1075_v17  ;;  %v856_v18 = vsel %vm854_vm5, %v789_v12, 0  ;;  %v1728_v19 = vcombine.low %v789_v12, %v789_v12  ;;  %v1734_v12 = vld [vmem:[#allocation10] ss:$0 sm:$0xff] }
 0x3a4   : > { %1813 = vmatpush3.bf16.msra.mxu1 %v856_v18 }
 0x3a5   : > { %v2026_v20 = vpop.eup %2025  ;;  %970 = vrot.lane.b32.xlu1 %v1728_v19, %s2318_s17  ;;  %1824 = vmatprep.subr.bf16.mxu1 %v2315_v0  ;;  %s2892_s17 = sld [smem:[#allocation36_spill]] }
 0x3a6   : > { %v1186_v21 = vpop.xlane.xlu0 %1185  ;;  %v961_v22 = vsel %vm790_vm3, %v2026_v20, 0.0 }
 0x3a7   : > { %v1187_v23 = vsub.f32 %v1183_v2, %v1186_v21  ;;  %962 = vadd.xlane.f32.xlu0 %v961_v22 }
 0x3a9   : > { %v1188_v24 = vmul.f32 1.442695, %v1187_v23  ;;  %1196 = vrot.lane.b32.xlu1 %v1728_v19, %s2319_s14 }
 0x3ab   : > { %2029 = vpow2.f32 %v1188_v24  ;;  %s2780_s14 = scalar_lea.hbm %s2892_s17, %s1753_s22 }
 0x3ad   : > { %v2028_v25 = vpop.eup %2027 }
 0x3ae   : > { %v1077_v26 = vsel %vm790_vm3, %v2028_v25, 0.0 }
 0x3af   : > { %1078 = vadd.xlane.f32.xlu0 %v1077_v26 }
 0x3b5   : > { %v2030_v27 = vpop.eup %2029 }
 0x3b6   : > { %v1190_v28 = vsel %vm790_vm3, %v2030_v27, 0.0 }
 0x3b7   : > { %1191 = vadd.xlane.f32.xlu0 %v1190_v28 }
 0x3bf   : > { %v847_v29 = vpop.xlane.xlu0 %846 }
 0x3c0   : > { %2031 = vrcp.f32 %v847_v29 }
 0x3ca   : > { %v2032_v30 = vpop.eup %2031 }
 0x3cb   : > { %v849_v31 = vmul.f32 %v2032_v30, %v2024_v8  ;;  %v2017_v30 = vld [vmem:[%s2838_s10] sm:$0xff]  }
 0x3cd   : > { %1083 = vrot.lane.b32.xlu0 %v1728_v19, %s2317_s19  ;;  %v850_v32 = vpack.c.bf16 %v849_v31, %v849_v31  ;;  %v2019_v31 = vld [vmem:[%s2840_s12] sm:$0xff]  }
 0x3cf   : > { %1815 = vmatmul.mubr.msk.bf16.vlgmr.msra.gmra.mrb[8].mxu1 %vm790_vm3, %v850_v32  ;;  %v2020_v32 = vld [vmem:[%s2840_s12 + $0x8] sm:$0xff]  }
 0x3d0   : > { %1826 = vmatprep.mubr.msk.bf16.mxu1 %vm2316_vm0, %v2315_v0 }
 0x417   : > { %v971_v33 = vpop.permute.xlu1 %970 }
 0x418   : > { %v976_v34 = vsel %vm854_vm5, %v971_v33, 0 }
 0x419   : > { %1825 = vmatpush3.bf16.msra.mxu1 %v976_v34 }
 0x41a   : > { %1836 = vmatprep.subr.bf16.mxu1 %v2315_v0 }
 0x41b   : > { %v1197_v45 = vpop.permute.xlu1 %1196 }
 0x41c   : > { %v1202_v47 = vsel %vm854_vm5, %v1197_v45, 0  ;;  %v1740_v45 = vld [vmem:[%s2839_s11] ss:$0 sm:$0xff] }
 0x434   : > { %v963_v35 = vpop.xlane.xlu0 %962 }
 0x435   : > { %2033 = vrcp.f32 %v963_v35 }
 0x43c   : > { %v1079_v36 = vpop.xlane.xlu0 %1078 }
 0x43d   : > { %2035 = vrcp.f32 %v1079_v36 }
 0x43f   : > { %v2034_v37 = vpop.eup %2033 }
 0x440   : > { %v965_v38 = vmul.f32 %v2034_v37, %v2026_v20  ;;  %v1738_v37 = vld [vmem:[#allocation12] ss:$0 sm:$0xff] }
 0x442   : > { %v966_v39 = vpack.c.bf16 %v965_v38, %v965_v38 }
 0x444   : > { %1827 = vmatmul.mubr.msk.bf16.vlgmr.msra.gmra.mrb[12].mxu1 %vm790_vm3, %v966_v39  ;;  %v1192_v40 = vpop.xlane.xlu0 %1191  ;;  %v1739_v39 = vld [vmem:[#allocation13] ss:$0 sm:$0xff] }
 0x445   : > { %2037 = vrcp.f32 %v1192_v40  ;;  %1838 = vmatprep.mubr.msk.bf16.mxu1 %vm2316_vm0, %v2315_v0 }
 0x447   : > { %v2036_v41 = vpop.eup %2035 }
 0x448   : > { %v1081_v42 = vmul.f32 %v2036_v41, %v2028_v25  ;;  %v1084_v43 = vpop.permute.xlu0 %1083 }
 0x449   : > { %v1089_v44 = vsel %vm854_vm5, %v1084_v43, 0  ;;  %v2021_v43 = vld [vmem:[%s2840_s12 + $0x10] sm:$0xff]  }
 0x44a   : > { %1837 = vmatpush3.bf16.msra.mxu1 %v1089_v44  ;;  %v1082_v46 = vpack.c.bf16 %v1081_v42, %v1081_v42  ;;  %v2022_v44 = vld [vmem:[%s2840_s12 + $0x18] sm:$0xff]  }
 0x44b   : > { %1848 = vmatprep.subr.bf16.mxu1 %v2315_v0 }
 0x44d   : > { %1839 = vmatmul.mubr.msk.bf16.vlgmr.msra.gmra.mrb[16].mxu1 %vm790_vm3, %v1082_v46 }
 0x44e   : > { %1849 = vmatpush3.bf16.msra.mxu1 %v1202_v47  ;;  %1850 = vmatprep.mubr.msk.bf16.mxu1 %vm2316_vm0, %v2315_v0 }
 0x44f   : > { %v2038_v48 = vpop.eup %2037  ;;  %1862 = vmatprep.subr.bf16.mxu1 %v2315_v0 }
 0x450   : > { %v1194_v49 = vmul.f32 %v2038_v48, %v2030_v27 }
 0x452   : > { %v1195_v50 = vpack.c.bf16 %v1194_v49, %v1194_v49 }
 0x455   : > { %1851 = vmatmul.mubr.msk.bf16.vlgmr.msra.gmra.mrb[20].mxu1 %vm790_vm3, %v1195_v50 }
 0x456   : > { %1866 = vmatprep.mubr.msk.bf16.mxu1 %vm2316_vm0, %v2315_v0  ;;  %1863 = vmatpush3.bf16.msra.mxu1 %v2017_v30 }
 0x457   : > { %1864 = vmatprep.subr.bf16.mxu1 %v2315_v0 }
 0x4a2   : > { %v892_v51 = vpop.f32.mrb[8].mxu1 }
 0x4a3   : > { %v1816_v52 = vpop.f32.mrb[9].mxu1  ;;  %v898_v13 = vpack.c.bf16 %v892_v51, %v892_v51 }
 0x4a4   : > { %v895_v53 = vpop.f32.mrb[10].mxu1 }
 0x4a5   : > { %v1817_v54 = vpop.f32.mrb[11].mxu1 }
 0x517   : > { %v1012_v56 = vpop.f32.mrb[12].mxu1 }
 0x518   : > { %v1018_v57 = vpack.c.bf16 %v1012_v56, %v1012_v56  ;;  %v1828_v58 = vpop.f32.mrb[13].mxu1 }
 0x519   : > { %v1015_v60 = vpop.f32.mrb[14].mxu1 }
 0x51a   : > { %1246 = vrot.lane.b32.xlu1 %v1018_v57, %s2321_s21  ;;  %v1829_v61 = vpop.f32.mrb[15].mxu1  ;;  %s613_s21 = sand.u32 1, %s2888_s20   ;;  %s2217_s20 = scalar_lea.vmem %s2216_s25, 256 }
 0x51b   : > { %s1543_s23 = scalar_lea.sflag [#allocation6], %s613_s21 }
 0x520   : > { %v1125_v62 = vpop.f32.mrb[16].mxu1 }
 0x521   : > { %v1131_v63 = vpack.c.bf16 %v1125_v62, %v1125_v62  ;;  %v1840_v1 = vpop.f32.mrb[17].mxu1 }
 0x522   : > { %v1128_v2 = vpop.f32.mrb[18].mxu1 }
 0x523   : > { %1249 = vrot.lane.b32.xlu1 %v1131_v63, %s2322_s30  ;;  %v1841_v4 = vpop.f32.mrb[19].mxu1  ;;  %s1713_s30 = sshll.u32 %s613_s21, 3 }
 0x524   : > { %s615_s5 = scalar_lea.vmem [#allocation15], %s1713_s30 }
 0x525   : > { %s1557_s27 = sshll.u32 %s615_s5, 4  ;;  %s2782_s27 = int_to_ptr.vmem [resolvable:$true] %s1557_s27 }
 0x526   : > { %s2211_s15 = scalar_lea.vmem %s2782_s27, 128  ;;  %p2218_p11 = scmp.lt.s32.totalorder %s2782_s27, %s2216_s25 }
 0x527   : > { %p2212_p1 = scmp.ne.s32.totalorder %s2782_s27, %s2211_s15  ;;  %p2219_p3 = scmp.lt.s32.totalorder %s2217_s20, %s2211_s15 }
 0x528   : > { %v1238_v5 = vpop.f32.mrb[20].mxu1 }
 0x529   : > { %v1244_v6 = vpack.c.bf16 %v1238_v5, %v1238_v5  ;;  %v1852_v7 = vpop.f32.mrb[21].mxu1  ;;  %p2220_p5 = por %p2219_p3, %p2218_p11 }
 0x52a   : > { %v1241_v8 = vpop.f32.mrb[22].mxu1  ;;  %v1750_v7 = vld [vmem:[%s2890_s16] ss:$0 sm:$0xff] }
 0x52b   : > { %1252 = vrot.lane.b32.xlu1 %v1244_v6, %s2323_s28  ;;  %v1853_v9 = vpop.f32.mrb[23].mxu1  ;;  %s2889_s28 = sld [smem:[#allocation27_spill]] }
 0x52c   : > { %v1751_v9 = vld [vmem:[%s2891_s7] ss:$0 sm:$0xff] }
 0x531   : > { %p2893_p4 = scmp.ne.s32.totalorder %s2889_s28, 0 }
 0x533   : > { %p2213_p8 = pnand %p2212_p1, %p2893_p4 }
 0x535   : > { %p2214_p10 = pneg %p2213_p8 }
 0x537   : > { %p2221_p6 = pnand %p2220_p5, %p2214_p10 }
 0x58c   : > { %v1247_v10 = vpop.permute.xlu1 %1246 }
 0x58d   : > { %v1256_v14 = vsel %vm790_vm3, %v898_v13, %v1247_v10 }
 0x595   : > { %v1250_v11 = vpop.permute.xlu1 %1249 }
 0x596   : > { %v1259_v15 = vsel %vm1257_vm6, %v1256_v14, %v1250_v11 }
 0x59d   : > { %v1253_v16 = vpop.permute.xlu1 %1252 }
 0x59e   : > { %v1262_v17 = vsel %vm1260_vm7, %v1259_v15, %v1253_v16 }
 0x59f   : > { %1859 = vmatmul.mubr.msk.bf16.vlgmr.msra.gmra.mrb[16].mxu0 %vm653_vm1, %v1262_v17 }
 0x5a0   : > { %1878 = vmatprep.mubr.msk.bf16.mxu0 %vm2316_vm0, %v2315_v0  ;;  %1871 = vmatpush3.bf16.msra.mxu0 %v2019_v31 }
 0x5a1   : > { %1872 = vmatprep.subr.bf16.mxu0 %v2315_v0 }
 0x5a4   : > { %1873 = vmatpush3.bf16.msra.mxu0 %v2020_v32 }
 0x5a5   : > { %1874 = vmatprep.subr.bf16.mxu0 %v2315_v0 }
 0x5a8   : > { %1875 = vmatpush3.bf16.msra.mxu0 %v2021_v43 }
 0x5a9   : > { %1876 = vmatprep.subr.bf16.mxu0 %v2315_v0  ;;  %v1744_v0 = vld [vmem:[%s2841_s13] ss:$0 sm:$0xff] }
 0x5ac   : > { %1877 = vmatpush3.bf16.msra.mxu0 %v2022_v44 }
 0x672   : > { %v1322_v18 = vpop.f32.mrb[16].mxu0 }
 0x673   : > { %v1323_v19 = vadd.f32 %v1734_v12, %v1322_v18  ;;  %v1860_v20 = vpop.f32.mrb[17].mxu0 }
 0x674   : > { %v1325_v21 = vpop.f32.mrb[18].mxu0 }
 0x675   : > { %v1861_v22 = vpop.f32.mrb[19].mxu0  ;;  %v1328_v23 = vadd.f32 %v1323_v19, %v2641_v3  ;;  %v2018_v3 = vld [vmem:[%s2838_s10 + $0x8] sm:$0xff]  }
 0x676   : > { %1865 = vmatpush3.bf16.msra.mxu1 %v2018_v3 }
 0x677   : > { %v1331_v24 = vsel %vm653_vm1, %v1328_v23, 0.0 }
 0x678   : > { %1332 = vadd.xlane.f32.xlu1 %v1331_v24 }
 0x705   : > { %v1333_v25 = vpop.xlane.xlu1 %1332 }
 0x706   : > { %v1335_v26 = vmul.f32 0.03125, %v1333_v25 }
 0x708   : > { %v1336_v27 = vsub.f32 %v1328_v23, %v1335_v26 }
 0x70a   : > { %v1337_v28 = vmul.f32 %v1336_v27, %v1336_v27 }
 0x70c   : > { %v1338_v29 = vsel %vm653_vm1, %v1337_v28, 0.0 }
 0x70d   : > { %1339 = vadd.xlane.f32.xlu0 %v1338_v29 }
 0x79a   : > { %v1340_v33 = vpop.xlane.xlu0 %1339 }
 0x79b   : > { %v1341_v34 = vmul.f32 0.03125, %v1340_v33 }
 0x79d   : > { %v1342_v35 = vadd.f32 1e-12, %v1341_v34 }
 0x79f   : > { %2039 = vrsqrt.f32 %v1342_v35 }
 0x7a9   : > { %v2040_v36 = vpop.eup %2039 }
 0x7aa   : > { %v1344_v38 = vmul.f32 %v2040_v36, %v1336_v27 }
 0x7ac   : > { %v1351_v40 = vmul.f32 %v1738_v37, %v1344_v38 }
 0x7ae   : > { %v1358_v41 = vadd.f32 %v1739_v39, %v1351_v40 }
 0x7b0   : > { %v1359_v42 = vpack.c.bf16 %v1358_v41, %v1358_v41 }
 0x7b2   : > { %1867 = vmatmul.mubr.msk.bf16.vlgmr.msra.gmra.mrb[24].mxu1 %vm653_vm1, %v1359_v42 }
 0x885   : > { %v1420_v46 = vpop.f32.mrb[24].mxu1 }
 0x886   : > { %v1421_v47 = vadd.f32 %v1740_v45, %v1420_v46  ;;  %v1868_v48 = vpop.f32.mrb[25].mxu1 }
 0x887   : > { %v1423_v49 = vpop.f32.mrb[26].mxu1 }
 0x888   : > { %v1426_v50 = vmax.f32 %v1421_v47, 0.0  ;;  %v1869_v51 = vpop.f32.mrb[27].mxu1 }
 0x88a   : > { %v1427_v52 = vpack.c.bf16 %v1426_v50, %v1426_v50 }
 0x88c   : > { %1879 = vmatmul.mubr.msk.bf16.vlgmr.msra.gmra.mrb[20].mxu0 %vm1467_vm8, %v1427_v52 }
 0x95f   : > { %v1505_v53 = vpop.f32.mrb[20].mxu0 }
 0x960   : > { %v1506_v54 = vadd.f32 %v1744_v0, %v1505_v53  ;;  %v1880_v55 = vpop.f32.mrb[21].mxu0 }
 0x961   : > { %v1508_v56 = vpop.f32.mrb[22].mxu0 }
 0x962   : > { %v1881_v57 = vpop.f32.mrb[23].mxu0  ;;  %v1511_v58 = vadd.f32 %v1506_v54, %v1358_v41 }
 0x964   : > { %v1514_v59 = vsel %vm653_vm1, %v1511_v58, 0.0 }
 0x965   : > { %1515 = vadd.xlane.f32.xlu0 %v1514_v59 }
 0x9f2   : > { %v1516_v60 = vpop.xlane.xlu0 %1515 }
 0x9f3   : > { %v1517_v61 = vmul.f32 0.03125, %v1516_v60 }
 0x9f5   : > { %v1518_v62 = vsub.f32 %v1511_v58, %v1517_v61 }
 0x9f7   : > { %v1519_v63 = vmul.f32 %v1518_v62, %v1518_v62 }
 0x9f9   : > { %v1520_v1 = vsel %vm653_vm1, %v1519_v63, 0.0 }
 0x9fa   : > { %1521 = vadd.xlane.f32.xlu1 %v1520_v1 }
 0xa87   : > { %v1522_v2 = vpop.xlane.xlu1 %1521 }
 0xa88   : > { %v1523_v4 = vmul.f32 0.03125, %v1522_v2 }
 0xa8a   : > { %v1524_v5 = vadd.f32 1e-12, %v1523_v4 }
 0xa8c   : > { %2041 = vrsqrt.f32 %v1524_v5 }
 0xa96   : > { %v2042_v6 = vpop.eup %2041 }
 0xa97   : > { %v1526_v8 = vmul.f32 %v2042_v6, %v1518_v62 }
 0xa99   : > { %v1533_v10 = vmul.f32 %v1750_v7, %v1526_v8 }
 0xa9b   : > { %v1540_v11 = vadd.f32 %v1751_v9, %v1533_v10 }
 0xa9d   : > { %1541 = vst.msk [vmem:[%s615_s5] sm:$0xff] %vm653_vm1, %v1540_v11 }
 0xa9e   : > { %2224 = shalt.err (!%p2221_p6)
}
 0xa9f   : > { %s2225_s21 = scalar_lea.hbm %s2780_s14, 128  ;;  %s2229_s29 = scalar_lea.hbm %s2892_s17, 256 }
 0xaa0   : > { %p2226_p7 = scmp.ne.s32.totalorder %s2780_s14, %s2225_s21  ;;  %p2230_p0 = scmp.lt.u32.totalorder %s2780_s14, %s2892_s17 }
 0xaa1   : > { %p2231_p2 = scmp.lt.u32.totalorder %s2229_s29, %s2225_s21  ;;  %p2233_p1 = scmp.lt.u32.totalorder %s2225_s21, %s2780_s14 }
 0xaa2   : > { %p2227_p9 = pnand %p2226_p7, %p2893_p4 }
 0xaa3   : > { %p2232_p13 = por %p2231_p2, %p2230_p0 }
 0xaa4   : > { %p2228_p12 = pneg %p2227_p9 }
 0xaa5   : > { %p2234_p8 = por %p2233_p1, %p2232_p13 }
 0xaa7   : > { %p2235_p10 = pnand %p2234_p8, %p2228_p12 }
 0xaa9   : > { %2238 = shalt.err (!%p2235_p10)
}
 0xaaa   : > { %1906 = dma.vmem_to_hbm [thread:$0]  (%p2893_p4), %s2782_s27, 128, %s2780_s14, %s1543_s23  }
 0xaab PF: > { %s2894_s18 = sld [smem:[#allocation25_spill]]  ;;  %s2895_s7 = sld [smem:[#allocation21_spill]] }
 0xaac   : > { %s2896_s22 = sld [smem:[#allocation28_spill]] }
 0xab1   : > { %p1943_p11 = scmp.ge.s32.totalorder %s2894_s18, 2  ;;  %s1569_s5 = sand.u32 1, %s2895_s7  }
 0xab2   : > { %p2897_p3 = scmp.ne.s32.totalorder %s2896_s22, 0  ;;  %s1570_s0 = scalar_lea.sflag [#allocation6], %s1569_s5 }
 0xab4   : > { %p1928_p5 = pnand %p1943_p11, %p2897_p3 }
 0xab6   : > { %2280 = dma.done.wait (!%p1928_p5), %s1570_s0, 128  }
 0xab7   : > { %2282 = vsyncadd (!%p1928_p5), %s1570_s0, 4294967168  ;;  %s33_s26 = sadd.s32 1, %s2894_s18   ;;  %s2898_s21 = sld [smem:[#allocation22_spill]] }
 0xab8   : > { %p30_p6 = scmp.ge.s32.totalorder %s33_s26, 4   ;;  %s2899_s22 = sld [smem:[#allocation23_spill]] }
 0xab9   : > { %s2900_s23 = sld [smem:[#allocation29_spill]]  ;;  %s2901_s24 = sld [smem:[#allocation24_spill]] }
 0xaba   : > { %s2902_s25 = sld [smem:[#allocation26_spill]]  ;;  %32 = sbr.rel (!%p30_p6) target bundleno = 16 (0x10), region = 152 }
 0xac1   :  { %1575 = vsyncpa [#allocation5], 1 }
 0xac2   :  { %1577 = vsyncpa [#allocation5 + $0x1], 1 }
 0xac3   :  { %1578 = vsyncpa [#allocation8], 1 }
 0xac4   :  { %1579 = vsyncpa [#allocation11], 1 }
 0xac5   :  { %1580 = vsyncpa [#allocation14], 1 }
 0xac6   :  { %1581 = vsyncpa [#allocation6], 1 }
 0xac7   :  { %1583 = vsyncpa [#allocation6 + $0x1], 1 }

</bundles_post_ra>
